<compile_context>
chip_gen: v6e
topology: v6e:2x2x1
jax: 0.10.0
libtpu: 0.0.40
codegen_flags: <defaults>
</compile_context>

<pallas_src>
import jax
import jax.numpy as jnp
from jax.experimental import pallas as pl
from jax.experimental.pallas import tpu as pltpu


def _round_up(a, b):
    return ((a + b - 1) // b) * b


def _residual_block_kernel(x_ref, w1_ref, w2_ref, o_ref):
    # x_ref : (TM, C)   current batch tile (f32)
    # w1_ref: (C, C)    Linear1 weight, (in, out) layout, bf16
    # w2_ref: (C, C)    Linear2 weight, (in, out) layout, bf16
    x_bf = x_ref[...].astype(jnp.bfloat16)                 # MXU input dtype
    h = jnp.dot(x_bf, w1_ref[...], preferred_element_type=jnp.float32)
    h = jnp.maximum(h, 0.0)                                # ReLU (f32, VPU)
    h = jnp.dot(h.astype(jnp.bfloat16), w2_ref[...],
                preferred_element_type=jnp.float32)
    h = jnp.maximum(h, 0.0)                                # ReLU (f32, VPU)
    # Re-read the resident input tile for the residual add (keeps the live
    # range of the f32 copy short -> less vreg pressure at large tm).
    o_ref[...] = (x_ref[...].astype(jnp.float32) + h).astype(o_ref.dtype)


def prepare_weights(w1, w2):
    """Hoisted one-time conversion from PyTorch (out, in) f32 layout to the
    kernel's (in, out) bf16 layout. Call once at model init, not per forward."""
    return w1.T.astype(jnp.bfloat16), w2.T.astype(jnp.bfloat16)


def residual_block(x, w1_t, w2_t, *, tm=256):
    """x: (N, C) activations (f32); w1_t, w2_t: (C, C) bf16 weights in
    (in, out) layout (see prepare_weights)."""
    N, C = x.shape
    assert w1_t.shape == (C, C) and w2_t.shape == (C, C)

    # Pick an effective batch tile: large, multiple of 8, never bigger than
    # the (padded) batch so tiny inputs don't waste compute.
    tm = max(8, min(tm, _round_up(N, 8)))
    n_pad = _round_up(N, tm)
    if n_pad != N:
        x = jnp.pad(x, ((0, n_pad - N), (0, 0)))

    # VMEM budget: double-buffered in/out activation tiles + both weights
    # (+ headroom for the f32 intermediates). Capped well below v7x's 64 MiB.
    x_bytes = x.dtype.itemsize
    w_bytes = w1_t.dtype.itemsize
    vmem_budget = (
        2 * 2 * tm * C * x_bytes      # x in + out tiles, double-buffered
        + 2 * 2 * C * C * w_bytes     # W1 + W2 (conservatively 2x buffered)
        + 3 * tm * C * 4              # f32/bf16 intermediates headroom
    )
    vmem_limit = min(max(int(vmem_budget * 1.5), 16 * 1024 * 1024),
                     48 * 1024 * 1024)

    out = pl.pallas_call(
        _residual_block_kernel,
        out_shape=jax.ShapeDtypeStruct((n_pad, C), x.dtype),
        grid_spec=pltpu.PrefetchScalarGridSpec(
            num_scalar_prefetch=0,
            grid=(n_pad // tm,),
            in_specs=[
                pl.BlockSpec((tm, C), lambda i: (i, 0)),   # x tile over batch
                pl.BlockSpec((C, C), lambda i: (0, 0)),    # W1 resident
                pl.BlockSpec((C, C), lambda i: (0, 0)),    # W2 resident
            ],
            out_specs=pl.BlockSpec((tm, C), lambda i: (i, 0)),
        ),
        compiler_params=pltpu.CompilerParams(
            dimension_semantics=("parallel",),   # v7x: shards tiles across TCs
            vmem_limit_bytes=vmem_limit,
        ),
    )(x, w1_t, w2_t)

    return out[:N] if n_pad != N else out


def residual_block_ref(x, w1, w2):
    """Pure-f32 reference with PyTorch-layout (out, in) weights."""
    h = jnp.maximum(x @ w1.T, 0.0)
    h = jnp.maximum(h @ w2.T, 0.0)
    return x + h


if __name__ == "__main__":
    key = jax.random.PRNGKey(0)
    k_x, k_w1, k_w2 = jax.random.split(key, 3)

    # nChn=512 matches the module default; N=512 gives 2 parallel grid steps
    # at tm=256 (keeps both v7x TensorCores busy) while staying small.
    N, C = 512, 512
    x = jax.random.normal(k_x, (N, C), dtype=jnp.float32)

    # Deterministic Kaiming-uniform-like init, matching nn.Linear shapes (out, in).
    bound = 1.0 / jnp.sqrt(C)
    w1 = jax.random.uniform(k_w1, (C, C), jnp.float32, -bound, bound)
    w2 = jax.random.uniform(k_w2, (C, C), jnp.float32, -bound, bound)

    # One-time weight prep (transpose + bf16 cast) hoisted out of the forward.
    w1_t, w2_t = prepare_weights(w1, w2)

    out = residual_block(x, w1_t, w2_t, tm=256)
    jax.block_until_ready(out)

    ref = residual_block_ref(x, w1, w2)
    assert out.shape == (N, C)
    # bf16 matmul inputs with f32 accumulation -> loosened tolerance vs f32 ref.
    assert jnp.allclose(out, ref, atol=5e-2, rtol=5e-2), (
        float(jnp.max(jnp.abs(out - ref))))
    print("KERNEL_OK")
</pallas_src>

<mosaic_0001>
module attributes {stable_mosaic.version = 11 : i64} {
  func.func @_residual_block_kernel(%arg0: i32, %arg1: memref<256x512xf32, #tpu.memory_space<vmem>>, %arg2: memref<512x512xbf16, #tpu.memory_space<vmem>>, %arg3: memref<512x512xbf16, #tpu.memory_space<vmem>>, %arg4: memref<256x512xf32, #tpu.memory_space<vmem>>) attributes {dimension_semantics = [#tpu.dimension_semantics<parallel>], iteration_bounds = array<i64: 2>, scalar_prefetch = 0 : i64, scratch_operands = 0 : i64, tpu.core_type = #tpu.core_type<tc>, window_params = [{transform_indices = @transform_0, window_bounds = array<i64: 256, 512>}, {pipeline_mode = #tpu.pipeline_mode<synchronous>, transform_indices = @transform_1, window_bounds = array<i64: 512, 512>}, {pipeline_mode = #tpu.pipeline_mode<synchronous>, transform_indices = @transform_2, window_bounds = array<i64: 512, 512>}, {transform_indices = @transform_3, window_bounds = array<i64: 256, 512>}]} {
    %c0 = arith.constant 0 : index
    %c0_0 = arith.constant 0 : index
    %0 = vector.load %arg1[%c0, %c0_0] : memref<256x512xf32, #tpu.memory_space<vmem>>, vector<256x512xf32>
    %1 = arith.truncf %0 : vector<256x512xf32> to vector<256x512xbf16>
    %c0_1 = arith.constant 0 : index
    %c0_2 = arith.constant 0 : index
    %2 = vector.load %arg2[%c0_1, %c0_2] : memref<512x512xbf16, #tpu.memory_space<vmem>>, vector<512x512xbf16>
    %cst = arith.constant dense<0.000000e+00> : vector<256x512xf32>
    %3 = tpu.matmul %1, %2, %cst {dimension_numbers = #tpu.dot_dimension_numbers<[1], [0], [0], [1], [0, 0, 1, 1], [], []>} : vector<256x512xbf16>, vector<512x512xbf16>, vector<256x512xf32> -> vector<256x512xf32>
    %cst_3 = arith.constant 0.000000e+00 : f32
    %4 = vector.broadcast %cst_3 : f32 to vector<256x512xf32>
    %5 = arith.maximumf %3, %4 : vector<256x512xf32>
    %6 = arith.truncf %5 : vector<256x512xf32> to vector<256x512xbf16>
    %c0_4 = arith.constant 0 : index
    %c0_5 = arith.constant 0 : index
    %7 = vector.load %arg3[%c0_4, %c0_5] : memref<512x512xbf16, #tpu.memory_space<vmem>>, vector<512x512xbf16>
    %cst_6 = arith.constant dense<0.000000e+00> : vector<256x512xf32>
    %8 = tpu.matmul %6, %7, %cst_6 {dimension_numbers = #tpu.dot_dimension_numbers<[1], [0], [0], [1], [0, 0, 1, 1], [], []>} : vector<256x512xbf16>, vector<512x512xbf16>, vector<256x512xf32> -> vector<256x512xf32>
    %cst_7 = arith.constant 0.000000e+00 : f32
    %9 = vector.broadcast %cst_7 : f32 to vector<256x512xf32>
    %10 = arith.maximumf %8, %9 : vector<256x512xf32>
    %c0_8 = arith.constant 0 : index
    %c0_9 = arith.constant 0 : index
    %11 = vector.load %arg1[%c0_8, %c0_9] : memref<256x512xf32, #tpu.memory_space<vmem>>, vector<256x512xf32>
    %12 = arith.addf %11, %10 : vector<256x512xf32>
    %c0_10 = arith.constant 0 : index
    %c0_11 = arith.constant 0 : index
    %13 = vector.load %arg4[%c0_10, %c0_11] : memref<256x512xf32, #tpu.memory_space<vmem>>, vector<256x512xf32>
    tpu.vector_store %arg4[%c0_10, %c0_11], %12 {strides = array<i32>} : memref<256x512xf32, #tpu.memory_space<vmem>>, vector<256x512xf32>,
    return
  }
  func.func @transform_0(%arg0: i32) -> (i32, i32) {
    %c0_i32 = arith.constant 0 : i32
    %c0_i32_0 = arith.constant 0 : i32
    return %arg0, %c0_i32 : i32, i32
  }
  func.func @transform_1(%arg0: i32) -> (i32, i32) {
    %c0_i32 = arith.constant 0 : i32
    %c0_i32_0 = arith.constant 0 : i32
    %c0_i32_1 = arith.constant 0 : i32
    return %c0_i32, %c0_i32_0 : i32, i32
  }
  func.func @transform_2(%arg0: i32) -> (i32, i32) {
    %c0_i32 = arith.constant 0 : i32
    %c0_i32_0 = arith.constant 0 : i32
    %c0_i32_1 = arith.constant 0 : i32
    return %c0_i32, %c0_i32_0 : i32, i32
  }
  func.func @transform_3(%arg0: i32) -> (i32, i32) {
    %c0_i32 = arith.constant 0 : i32
    %c0_i32_0 = arith.constant 0 : i32
    return %arg0, %c0_i32 : i32, i32
  }
}

</mosaic_0001>

<bundles_post_ra>
// kernel: tpu_custom_call.1
= control target key start
LH: loop header
LB: loop body
LE: loop exit
PB: predicated region body
PF: predicated region fallthrough
CT: control target
= control target key end

     0   :  { %8 = vsyncpa [#allocation3], 0  ;;  %s7055_s0 = inlined_call_operand.hbm [shape: f32[512,512], index: 0, kind: input, shape index: {}]   ;;  %s7056_s1 = inlined_call_operand.hbm [shape: bf16[512,512], index: 1, kind: input, shape index: {}]   ;;  %s7057_s2 = inlined_call_operand.hbm [shape: bf16[512,512], index: 2, kind: input, shape index: {}]   ;;  %s7058_s3 = inlined_call_operand.hbm [shape: f32[512,512], index: 3, kind: output, shape index: {}]  }
   0x1   :  { %10 = vsyncpa [#allocation3 + $0x1], 0 }
   0x2   :  { %11 = vsyncpa [#allocation6], 0 }
   0x3   :  { %12 = vsyncpa [#allocation4], 0 }
   0x4   :  { %14 = vsyncpa [#allocation4 + $0x1], 0  ;;  %s5221_s12 = smov 0   ;;  %s5223_s13 = smov 0  }
   0x5   :  { %s5225_s14 = smov 0   ;;  %s5227_s15 = smov 0  }
   0x6 LB: > { %s5242_s16 = sadd.s32 4294967295, %s5189_s15   ;;  %s4176_s17 = sadd.s32 4294967294, %s5189_s15   ;;  %s5189_s15 = sphi %s5227_s15, %s7181_s15   ;;  %s5185_s14 = sphi %s5225_s14, %s7180_s14   ;;  %s5181_s13 = sphi %s5223_s13, %s7179_s13   ;;  %s5177_s12 = sphi %s5221_s12, %s7178_s12  }
   0x7   : > { %p40_p0 = scmp.ne.s32.totalorder %s5181_s13, %s5177_s12  ;;  %p7059_p1 = scmp.eq.s32.totalorder %s5242_s16, 0 }
   0x8   : > { %p112_p3 = scmp.eq.s32.totalorder %s4176_s17, 1  ;;  %p4177_p5 = scmp.ge.s32.totalorder %s5189_s15, 1 }
   0x9   : > { %p5251_p4 = por %p7059_p1, %p40_p0  ;;  %p119_p7 = scmp.lt.s32.totalorder %s5189_s15, 3 }
   0xa   : > { %p5256_p6 = por %p112_p3, %p40_p0  ;;  %s5191_s21 = smov [#allocation5]  }
   0xb   : > { %s7092_s18 = scalar_select %p5251_p4, 1, 0 }
   0xc   : > { %s7093_s19 = scalar_select %p5256_p6, 1, 0 }
   0xd   : > { %p5261_p8 = pnand %p4177_p5, %p119_p7  ;;  %s131_s22 = sshll.u32 %s5191_s21, 4  ;;  %s132_s22 = int_to_ptr.vmem [resolvable:$true] %s131_s22 }
   0xe   : > { %s5192_s24 = smov [#allocation7]   ;;  %s5052_s26 = scalar_lea.vmem %s132_s22, 16384 }
   0xf   : > { %s7094_s20 = scalar_select %p5261_p8, 1, 0 }
  0x10   : > { %p4468_p9 = pneg %p5261_p8  ;;  %s144_s25 = sshll.u32 %s5192_s24, 4  ;;  %s145_s25 = int_to_ptr.vmem [resolvable:$true] %s144_s25 }
  0x11   : > { %p5053_p13 = scmp.ne.s32.totalorder %s132_s22, %s5052_s26  ;;  %p5060_p5 = scmp.lt.s32.totalorder %s132_s22, %s132_s22 }
  0x12   : > { %p5270_p11 = pnand %p4468_p9, %p7059_p1  ;;  %p5061_p7 = scmp.lt.s32.totalorder %s5052_s26, %s5052_s26 }
  0x14   : > { %p5043_p12 = pneg %p5270_p11  ;;  %p5062_p10 = por %p5061_p7, %p5060_p5 }
  0x16   : > { %p5055_p0 = pnand %p5053_p13, %p5043_p12 }
  0x18   : > { %p5056_p3 = pneg %p5055_p0 }
  0x1a   : > { %p5063_p9 = pnand %p5062_p10, %p5056_p3 }
  0x1c   : > { %5066 = shalt.err (!%p5063_p9)
}
  0x1d   : > { %s5193_s27 = smov 256   ;;  %s5194_s28 = smov 16  }
  0x1e   : > { %4471 = dma.hbm_to_vmem [thread:$0]  (!%p5270_p11), %s7056_s1, 16384, %s132_s22, [#allocation6], %s5193_s27, %s5193_s27, %s5194_s28  }
  0x1f   : > { %s5078_s4 = scalar_lea.vmem %s145_s25, 16384  ;;  %p5086_p2 = scmp.lt.s32.totalorder %s145_s25, %s145_s25 }
  0x20   : > { %p5079_p1 = scmp.ne.s32.totalorder %s145_s25, %s5078_s4  ;;  %p5087_p6 = scmp.lt.s32.totalorder %s5078_s4, %s5078_s4 }
  0x22   : > { %p5081_p13 = pnand %p5079_p1, %p5043_p12  ;;  %p5088_p5 = por %p5087_p6, %p5086_p2 }
  0x24   : > { %p5082_p0 = pneg %p5081_p13 }
  0x26   : > { %p5089_p10 = pnand %p5088_p5, %p5082_p0 }
  0x28   : > { %5092 = shalt.err (!%p5089_p10)
}
  0x29   : > { %4474 = dma.hbm_to_vmem [thread:$0]  (!%p5270_p11), %s7057_s2, 16384, %s145_s25, [#allocation6], %s5193_s27, %s5193_s27, %s5194_s28  }
  0x2a   : > { %s5293_s7 = sadd.s32 1, %s5189_s15   ;;  %s27_s8 = sadd.s32 1, %s5185_s14 }
  0x2b   : > { %s24_s9 = ssub.s32 %s5189_s15, %s5293_s7  ;;  %p34_p1 = scmp.ne.s32.totalorder %s5185_s14, %s5181_s13 }
  0x2c   : > { %p25_p2 = scmp.eq.s32.totalorder %s24_s9, 0  ;;  %p35_p6 = scmp.eq.s32.totalorder %s5189_s15, 0 }
  0x2d   : > { %p7096_p12 = scmp.eq.s32.totalorder %s5242_s16, 1  ;;  %p4485_p7 = scmp.lt.s32.totalorder %s5189_s15, 2 }
  0x2e   : > { %s5309_s11 = scalar_select %p25_p2, %s5185_s14, %s27_s8  }
  0x2f   : > { %p5303_p3 = por %p7096_p12, %p34_p1  ;;  %p36_p9 = por %p35_p6, %p34_p1 }
  0x30   : > { %s158_s17 = sand.u32 1, %s5185_s14   ;;  %s4453_s22 = sshll.u32 %s5189_s15, 14 }
  0x31   : > { %s7097_s10 = scalar_select %p5303_p3, 1, 0 }
  0x32   : > { %s4181_s21 = sshll.u32 %s158_s17, 10  ;;  %s5316_s25 = scalar_lea.hbm %s7055_s0, %s4453_s22 }
  0x33   : > { %s162_s26 = scalar_lea.vmem [#allocation2], %s4181_s21  ;;  %p5320_p11 = pnand %p4485_p7, %p36_p9 }
  0x34   : > { %s170_s27 = sshll.u32 %s162_s26, 4  ;;  %s5324_s29 = scalar_lea.sflag [#allocation3], %s158_s17  ;;  %s5318_s27 = int_to_ptr.vmem [resolvable:$true] %s170_s27 }
  0x35   : > { %s5093_s30 = scalar_lea.hbm %s5316_s25, 16384  ;;  %p5095_p0 = pneg %p5320_p11 }
  0x36   : > { %p5094_p13 = scmp.ne.s32.totalorder %s5316_s25, %s5093_s30  ;;  %s5098_s6 = scalar_lea.hbm %s7055_s0, 32768 }
  0x37   : > { %p5099_p1 = scmp.lt.s32.totalorder %s5316_s25, %s7055_s0  ;;  %p5100_p2 = scmp.lt.s32.totalorder %s5098_s6, %s5093_s30 }
  0x38   : > { %p5096_p5 = pnand %p5095_p0, %p5094_p13 }
  0x39   : > { %p5101_p6 = por %p5100_p2, %p5099_p1 }
  0x3a   : > { %p5097_p10 = pneg %p5096_p5 }
  0x3c   : > { %p5102_p12 = pnand %p5101_p6, %p5097_p10 }
  0x3e   : > { %5105 = shalt.err (!%p5102_p12)
}
  0x3f   : > { %s5106_s17 = scalar_lea.vmem %s5318_s27, 16384  ;;  %s5195_s21 = smov [#allocation2]  }
  0x40   : > { %p5107_p7 = scmp.ne.s32.totalorder %s5318_s27, %s5106_s17  ;;  %s5111_s22 = sshll.u32 %s5195_s21, 4  ;;  %s5112_s22 = int_to_ptr.vmem [resolvable:$false] %s5111_s22 }
  0x41   : > { %s5113_s23 = scalar_lea.vmem %s5112_s22, 32768  ;;  %p5114_p5 = scmp.lt.s32.totalorder %s5318_s27, %s5112_s22 }
  0x42   : > { %p5109_p9 = pnand %p5107_p7, %p5095_p0  ;;  %p5115_p3 = scmp.lt.s32.totalorder %s5113_s23, %s5106_s17 }
  0x44   : > { %p5110_p13 = pneg %p5109_p9  ;;  %p5116_p4 = por %p5115_p3, %p5114_p5 }
  0x46   : > { %p5117_p8 = pnand %p5116_p4, %p5110_p13 }
  0x48   : > { %5120 = shalt.err (!%p5117_p8)
}
  0x49   : > { %s5196_s24 = smov 512   ;;  %s5197_s26 = smov 32  }
  0x4a   : > { %4478 = dma.hbm_to_vmem [thread:$0]  (!%p5320_p11), %s5316_s25, 16384, %s5318_s27, %s5324_s29, %s5196_s24, %s5196_s24, %s5197_s26  }
  0x4b   : > { %p7099_p0 = scmp.ne.s32.totalorder %s7094_s20, 0 }
  0x4d   : > { %182 = sbr.rel (%p7099_p0) target bundleno = 956 (0x3bc), region = 32 }
  0x52   : > { %s5348_s30 = sand.u32 1, %s5181_s13   ;;  %p7100_p4 = scmp.ne.s32.totalorder %s7092_s18, 0 }
  0x53   : > { %s4186_s4 = sshll.u32 %s5348_s30, 10  ;;  %s185_s5 = scalar_lea.sflag [#allocation3], %s5348_s30 }
  0x54   : > { %s5354_s6 = scalar_lea.vmem [#allocation2], %s4186_s4 }
  0x55   : > { %5164 = dma.done.wait (%p7100_p4), %s185_s5, 16384  }
  0x56   : > { %5166 = vsyncadd (%p7100_p4), %s185_s5, 4294950912  ;;  %p7101_p8 = scmp.eq.s32.totalorder %s5242_s16, 0 }
  0x58   : > { %5168 = dma.done.wait (%p7101_p8), [#allocation6], 32768   ;;  %p7102_p3 = pmov %p7101_p8 }
  0x59   : > { %v4529_v0 = vld [vmem:[#allocation5 + $0xe4] ss:$16 sps:$4 sm:$0xff]   ;;  %v4533_v2 = vld [vmem:[#allocation5 + $0xe0] ss:$16 sps:$4 sm:$0xff]   ;;  %v222_v46 = vld [vmem:[%s5354_s6 + $0x8] sm:$0xff]  ;;  %s6467_s18 = scalar_lea.vmem [#allocation8], %s4186_s4 }
  0x5a   : > { %5170 = vsyncadd (%p7102_p3), [#allocation6], 4294934528  ;;  %v4531_v1 = vld [vmem:[#allocation5 + $0x2e4] ss:$16 sps:$4 sm:$0xff]   ;;  %1181 = vmatprep.subr.bf16.mxu0 %v4529_v0  ;;  %v4534_v3 = vld [vmem:[#allocation5 + $0x2e0] ss:$16 sps:$4 sm:$0xff]  }
  0x5b   : > { %1374 = vmatprep.subr.bf16.mxu1 %v4531_v1  ;;  %v4535_v4 = vld [vmem:[#allocation5 + $0xc4] ss:$16 sps:$4 sm:$0xff]   ;;  %1182 = vmatpush1.bf16.msra.mxu0 %v4533_v2  ;;  %v4539_v6 = vld [vmem:[#allocation5 + $0xc0] ss:$16 sps:$4 sm:$0xff]   ;;  %v226_v47 = vld [vmem:[%s5354_s6 + $0x28] sm:$0xff]  ;;  %s4455_s20 = sshll.u32 %s5242_s16, 14 }
  0x5c   : > { %1375 = vmatpush1.bf16.msra.mxu1 %v4534_v3  ;;  %v4537_v5 = vld [vmem:[#allocation5 + $0x2c4] ss:$16 sps:$4 sm:$0xff]   ;;  %1183 = vmatprep.subr.bf16.mxu0 %v4535_v4  ;;  %v4540_v7 = vld [vmem:[#allocation5 + $0x2c0] ss:$16 sps:$4 sm:$0xff]   ;;  %v224_v48 = vld [vmem:[%s5354_s6 + $0x18] sm:$0xff]  ;;  %v5368_v53 = vpack.c.bf16 %v226_v47, %v222_v46  ;;  %s4084_s25 = sshll.u32 %s6467_s18, 4  ;;  %s7007_s29 = scalar_lea.hbm %s7058_s3, %s4455_s20  ;;  %s7009_s25 = int_to_ptr.vmem [resolvable:$true] %s4084_s25 }
  0x5d   : > { %1376 = vmatprep.subr.bf16.mxu1 %v4537_v5  ;;  %v4541_v8 = vld [vmem:[#allocation5 + $0xa4] ss:$16 sps:$4 sm:$0xff]   ;;  %v4545_v10 = vld [vmem:[#allocation5 + $0xa0] ss:$16 sps:$4 sm:$0xff]   ;;  %v228_v49 = vld [vmem:[%s5354_s6 + $0x38] sm:$0xff]  ;;  %s4070_s16 = scalar_lea.sflag [#allocation4], %s5348_s30 }
  0x5e   : > { %v4543_v9 = vld [vmem:[#allocation5 + $0x2a4] ss:$16 sps:$4 sm:$0xff]   ;;  %v4546_v11 = vld [vmem:[#allocation5 + $0x2a0] ss:$16 sps:$4 sm:$0xff]   ;;  %v5370_v54 = vpack.c.bf16 %v228_v49, %v224_v48  ;;  %1213 = vmatprep.mubr.bf16.mxu0 %v5368_v53  ;;  %v4648_v46 = vld [vmem:[#allocation5 + $0x28c] ss:$16 sps:$4 sm:$0xff]  }
  0x5f   : > { %1184 = vmatpush1.bf16.msra.mxu0 %v4539_v6  ;;  %v4547_v12 = vld [vmem:[#allocation5 + $0x84] ss:$16 sps:$4 sm:$0xff]   ;;  %v4551_v14 = vld [vmem:[#allocation5 + $0x80] ss:$16 sps:$4 sm:$0xff]   ;;  %v246_v48 = vld [vmem:[%s5354_s6 + $0xc8] sm:$0xff]  ;;  %s5121_s8 = scalar_lea.vmem %s7009_s25, 16384 }
  0x60   : > { %1377 = vmatpush1.bf16.msra.mxu1 %v4540_v7  ;;  %1185 = vmatprep.subr.bf16.mxu0 %v4541_v8  ;;  %v4549_v13 = vld [vmem:[#allocation5 + $0x284] ss:$16 sps:$4 sm:$0xff]   ;;  %v4552_v15 = vld [vmem:[#allocation5 + $0x280] ss:$16 sps:$4 sm:$0xff]   ;;  %v250_v49 = vld [vmem:[%s5354_s6 + $0xe8] sm:$0xff]  ;;  %p5122_p11 = scmp.ne.s32.totalorder %s7009_s25, %s5121_s8  ;;  %p7175_p10 = scmp.ne.s32.totalorder %s7097_s10, 0 }
  0x61   : > { %1378 = vmatprep.subr.bf16.mxu1 %v4543_v9  ;;  %v4553_v16 = vld [vmem:[#allocation5 + $0x64] ss:$16 sps:$4 sm:$0xff]   ;;  %v4557_v18 = vld [vmem:[#allocation5 + $0x60] ss:$16 sps:$4 sm:$0xff]   ;;  %1406 = vmatprep.mubr.bf16.mxu1 %v5370_v54  ;;  %s5198_s9 = smov [#allocation8]  }
  0x62   : > { %v4555_v17 = vld [vmem:[#allocation5 + $0x264] ss:$16 sps:$4 sm:$0xff]   ;;  %v4558_v19 = vld [vmem:[#allocation5 + $0x260] ss:$16 sps:$4 sm:$0xff]   ;;  %p5123_p1 = pnand %p5122_p11, %p7175_p10  ;;  %s5125_s17 = sshll.u32 %s5198_s9, 4  ;;  %s5126_s17 = int_to_ptr.vmem [resolvable:$false] %s5125_s17 }
  0x63   : > { %1186 = vmatpush1.bf16.msra.mxu0 %v4545_v10  ;;  %v4559_v20 = vld [vmem:[#allocation5 + $0x44] ss:$16 sps:$4 sm:$0xff]   ;;  %v4563_v22 = vld [vmem:[#allocation5 + $0x40] ss:$16 sps:$4 sm:$0xff]   ;;  %v4627_v10 = vld [vmem:[#allocation5 + $0xec] ss:$16 sps:$4 sm:$0xff]   ;;  %p5128_p6 = scmp.lt.s32.totalorder %s7009_s25, %s5126_s17 }
  0x64   : > { %1379 = vmatpush1.bf16.msra.mxu1 %v4546_v11  ;;  %1187 = vmatprep.subr.bf16.mxu0 %v4547_v12  ;;  %v4561_v21 = vld [vmem:[#allocation5 + $0x244] ss:$16 sps:$4 sm:$0xff]   ;;  %v4564_v23 = vld [vmem:[#allocation5 + $0x240] ss:$16 sps:$4 sm:$0xff]   ;;  %v4630_v11 = vld [vmem:[#allocation5 + $0x2ec] ss:$16 sps:$4 sm:$0xff]   ;;  %p5124_p2 = pneg %p5123_p1 }
  0x65   : > { %1380 = vmatprep.subr.bf16.mxu1 %v4549_v13  ;;  %v4565_v24 = vld [vmem:[#allocation5 + $0x24] ss:$16 sps:$4 sm:$0xff]   ;;  %v4569_v26 = vld [vmem:[#allocation5 + $0x20] ss:$16 sps:$4 sm:$0xff]   ;;  %v230_v12 = vld [vmem:[%s5354_s6 + $0x48] sm:$0xff]  ;;  %s5127_s21 = scalar_lea.vmem %s5126_s17, 32768 }
  0x66   : > { %v4567_v25 = vld [vmem:[#allocation5 + $0x224] ss:$16 sps:$4 sm:$0xff]   ;;  %v4570_v27 = vld [vmem:[#allocation5 + $0x220] ss:$16 sps:$4 sm:$0xff]   ;;  %v234_v13 = vld [vmem:[%s5354_s6 + $0x68] sm:$0xff]  ;;  %p5129_p12 = scmp.lt.s32.totalorder %s5127_s21, %s5121_s8 }
  0x67   : > { %1188 = vmatpush1.bf16.msra.mxu0 %v4551_v14  ;;  %v4571_v28 = vld [vmem:[#allocation5 + $0x4] ss:$16 sps:$4 sm:$0xff]   ;;  %v4575_v30 = vld [vmem:[#allocation5] ss:$16 sps:$4 sm:$0xff]   ;;  %v232_v14 = vld [vmem:[%s5354_s6 + $0x58] sm:$0xff] }
  0x68   : > { %1381 = vmatpush1.bf16.msra.mxu1 %v4552_v15  ;;  %1189 = vmatprep.subr.bf16.mxu0 %v4553_v16  ;;  %v4573_v29 = vld [vmem:[#allocation5 + $0x204] ss:$16 sps:$4 sm:$0xff]   ;;  %v4576_v31 = vld [vmem:[#allocation5 + $0x200] ss:$16 sps:$4 sm:$0xff]   ;;  %v236_v15 = vld [vmem:[%s5354_s6 + $0x78] sm:$0xff]  ;;  %p5130_p7 = por %p5129_p12, %p5128_p6 }
  0x69   : > { %1382 = vmatprep.subr.bf16.mxu1 %v4555_v17  ;;  %v4577_v32 = vld [vmem:[#allocation5 + $0x1e4] ss:$16 sps:$4 sm:$0xff]   ;;  %v4581_v34 = vld [vmem:[#allocation5 + $0x1e0] ss:$16 sps:$4 sm:$0xff]  }
  0x6a   : > { %v4579_v33 = vld [vmem:[#allocation5 + $0x3e4] ss:$16 sps:$4 sm:$0xff]   ;;  %v4582_v35 = vld [vmem:[#allocation5 + $0x3e0] ss:$16 sps:$4 sm:$0xff]   ;;  %p5131_p9 = pnand %p5130_p7, %p5124_p2 }
  0x6b   : > { %1190 = vmatpush1.bf16.msra.mxu0 %v4557_v18  ;;  %v4583_v36 = vld [vmem:[#allocation5 + $0x1c4] ss:$16 sps:$4 sm:$0xff]   ;;  %v4587_v38 = vld [vmem:[#allocation5 + $0x1c0] ss:$16 sps:$4 sm:$0xff]   ;;  %v4625_v18 = vld [vmem:[#allocation5 + $0xe8] ss:$16 sps:$4 sm:$0xff]  }
  0x6c   : > { %1383 = vmatpush1.bf16.msra.mxu1 %v4558_v19  ;;  %1191 = vmatprep.subr.bf16.mxu0 %v4559_v20  ;;  %v4585_v37 = vld [vmem:[#allocation5 + $0x3c4] ss:$16 sps:$4 sm:$0xff]   ;;  %v4588_v39 = vld [vmem:[#allocation5 + $0x3c0] ss:$16 sps:$4 sm:$0xff]   ;;  %v4628_v19 = vld [vmem:[#allocation5 + $0x2e8] ss:$16 sps:$4 sm:$0xff]   ;;  %v5386_v20 = vpack.c.bf16 %v234_v13, %v230_v12 }
  0x6d   : > { %1384 = vmatprep.subr.bf16.mxu1 %v4561_v21  ;;  %v4589_v40 = vld [vmem:[#allocation5 + $0x1a4] ss:$16 sps:$4 sm:$0xff]   ;;  %v4593_v42 = vld [vmem:[#allocation5 + $0x1a0] ss:$16 sps:$4 sm:$0xff]   ;;  %v5388_v21 = vpack.c.bf16 %v236_v15, %v232_v14  ;;  %v4663_v12 = vld [vmem:[#allocation5 + $0x2c] ss:$16 sps:$4 sm:$0xff]  }
  0x6e   : > { %v4591_v41 = vld [vmem:[#allocation5 + $0x3a4] ss:$16 sps:$4 sm:$0xff]   ;;  %v4594_v43 = vld [vmem:[#allocation5 + $0x3a0] ss:$16 sps:$4 sm:$0xff]   ;;  %v4666_v13 = vld [vmem:[#allocation5 + $0x22c] ss:$16 sps:$4 sm:$0xff]  }
  0x6f   : > { %1192 = vmatpush1.bf16.msra.mxu0 %v4563_v22  ;;  %v4595_v44 = vld [vmem:[#allocation5 + $0x184] ss:$16 sps:$4 sm:$0xff]   ;;  %v4599_v50 = vld [vmem:[#allocation5 + $0x180] ss:$16 sps:$4 sm:$0xff]   ;;  %v4633_v22 = vld [vmem:[#allocation5 + $0xcc] ss:$16 sps:$4 sm:$0xff]  }
  0x70   : > { %1385 = vmatpush1.bf16.msra.mxu1 %v4564_v23  ;;  %1193 = vmatprep.subr.bf16.mxu0 %v4565_v24  ;;  %v4597_v45 = vld [vmem:[#allocation5 + $0x384] ss:$16 sps:$4 sm:$0xff]   ;;  %v4600_v51 = vld [vmem:[#allocation5 + $0x380] ss:$16 sps:$4 sm:$0xff]  }
  0x71   : > { %1386 = vmatprep.subr.bf16.mxu1 %v4567_v25  ;;  %v4601_v52 = vld [vmem:[#allocation5 + $0x164] ss:$16 sps:$4 sm:$0xff]   ;;  %v4605_v56 = vld [vmem:[#allocation5 + $0x160] ss:$16 sps:$4 sm:$0xff]  }
  0x72   : > { %v4603_v55 = vld [vmem:[#allocation5 + $0x364] ss:$16 sps:$4 sm:$0xff]   ;;  %v4606_v57 = vld [vmem:[#allocation5 + $0x360] ss:$16 sps:$4 sm:$0xff]  }
  0x73   : > { %1194 = vmatpush1.bf16.msra.mxu0 %v4569_v26  ;;  %v4607_v58 = vld [vmem:[#allocation5 + $0x144] ss:$16 sps:$4 sm:$0xff]   ;;  %v4611_v60 = vld [vmem:[#allocation5 + $0x140] ss:$16 sps:$4 sm:$0xff]  }
  0x74   : > { %1387 = vmatpush1.bf16.msra.mxu1 %v4570_v27  ;;  %1195 = vmatprep.subr.bf16.mxu0 %v4571_v28  ;;  %v4609_v59 = vld [vmem:[#allocation5 + $0x344] ss:$16 sps:$4 sm:$0xff]   ;;  %v4612_v61 = vld [vmem:[#allocation5 + $0x340] ss:$16 sps:$4 sm:$0xff]   ;;  %v4631_v27 = vld [vmem:[#allocation5 + $0xc8] ss:$16 sps:$4 sm:$0xff]  }
  0x75   : > { %1388 = vmatprep.subr.bf16.mxu1 %v4573_v29  ;;  %v4613_v62 = vld [vmem:[#allocation5 + $0x124] ss:$16 sps:$4 sm:$0xff]   ;;  %v4617_v0 = vld [vmem:[#allocation5 + $0x120] ss:$16 sps:$4 sm:$0xff]   ;;  %v4634_v28 = vld [vmem:[#allocation5 + $0x2c8] ss:$16 sps:$4 sm:$0xff]  }
  0x76   : > { %v4615_v63 = vld [vmem:[#allocation5 + $0x324] ss:$16 sps:$4 sm:$0xff]   ;;  %v4618_v1 = vld [vmem:[#allocation5 + $0x320] ss:$16 sps:$4 sm:$0xff]   ;;  %v4636_v29 = vld [vmem:[#allocation5 + $0x2cc] ss:$16 sps:$4 sm:$0xff]  }
  0x77   : > { %1196 = vmatpush1.bf16.msra.mxu0 %v4575_v30  ;;  %v4619_v2 = vld [vmem:[#allocation5 + $0x104] ss:$16 sps:$4 sm:$0xff]   ;;  %v4623_v4 = vld [vmem:[#allocation5 + $0x100] ss:$16 sps:$4 sm:$0xff]   ;;  %v238_v30 = vld [vmem:[%s5354_s6 + $0x88] sm:$0xff] }
  0x78   : > { %1389 = vmatpush1.bf16.msra.mxu1 %v4576_v31  ;;  %1197 = vmatprep.subr.bf16.mxu0 %v4577_v32  ;;  %v4621_v3 = vld [vmem:[#allocation5 + $0x304] ss:$16 sps:$4 sm:$0xff]   ;;  %v4624_v5 = vld [vmem:[#allocation5 + $0x300] ss:$16 sps:$4 sm:$0xff]   ;;  %v242_v31 = vld [vmem:[%s5354_s6 + $0xa8] sm:$0xff] }
  0x79   : > { %1390 = vmatprep.subr.bf16.mxu1 %v4579_v33  ;;  %v221_v6 = vld [vmem:[%s5354_s6] sm:$0xff]  ;;  %v223_v8 = vld [vmem:[%s5354_s6 + $0x10] sm:$0xff]  ;;  %v240_v32 = vld [vmem:[%s5354_s6 + $0x98] sm:$0xff] }
  0x7a   : > { %v225_v7 = vld [vmem:[%s5354_s6 + $0x20] sm:$0xff]  ;;  %v227_v9 = vld [vmem:[%s5354_s6 + $0x30] sm:$0xff]  ;;  %v244_v33 = vld [vmem:[%s5354_s6 + $0xb8] sm:$0xff] }
  0x7b   : > { %1198 = vmatpush2.bf16.msra.mxu0 %v4581_v34  ;;  %v5382_v16 = vpack.c.bf16 %v225_v7, %v221_v6  ;;  %v5384_v17 = vpack.c.bf16 %v227_v9, %v223_v8  ;;  %v229_v23 = vld [vmem:[%s5354_s6 + $0x40] sm:$0xff]  ;;  %v231_v25 = vld [vmem:[%s5354_s6 + $0x50] sm:$0xff]  ;;  %v4639_v34 = vld [vmem:[#allocation5 + $0xac] ss:$16 sps:$4 sm:$0xff]  }
  0x7c   : > { %1391 = vmatpush2.bf16.msra.mxu1 %v4582_v35  ;;  %1199 = vmatprep.subr.bf16.mxu0 %v4583_v36  ;;  %v233_v24 = vld [vmem:[%s5354_s6 + $0x60] sm:$0xff]  ;;  %v235_v26 = vld [vmem:[%s5354_s6 + $0x70] sm:$0xff]  ;;  %v4642_v35 = vld [vmem:[#allocation5 + $0x2ac] ss:$16 sps:$4 sm:$0xff]  }
  0x7d   : > { %1392 = vmatprep.subr.bf16.mxu1 %v4585_v37  ;;  %v5402_v36 = vpack.c.bf16 %v233_v24, %v229_v23  ;;  %v5404_v37 = vpack.c.bf16 %v235_v26, %v231_v25  ;;  %v243_v47 = vld [vmem:[%s5354_s6 + $0xb0] sm:$0xff]  ;;  %v254_v6 = vld [vmem:[%s5354_s6 + $0x108] sm:$0xff]  ;;  %v256_v8 = vld [vmem:[%s5354_s6 + $0x118] sm:$0xff] }
  0x7e   : > { %v258_v7 = vld [vmem:[%s5354_s6 + $0x128] sm:$0xff]  ;;  %v260_v9 = vld [vmem:[%s5354_s6 + $0x138] sm:$0xff]  ;;  %v253_v24 = vld [vmem:[%s5354_s6 + $0x100] sm:$0xff] }
  0x7f   : > { %1200 = vmatpush2.bf16.msra.mxu0 %v4587_v38  ;;  %v5406_v38 = vpack.c.bf16 %v242_v31, %v238_v30  ;;  %v4664_v23 = vld [vmem:[#allocation5 + $0x228] ss:$16 sps:$4 sm:$0xff]   ;;  %v257_v25 = vld [vmem:[%s5354_s6 + $0x120] sm:$0xff]  ;;  %v255_v26 = vld [vmem:[%s5354_s6 + $0x110] sm:$0xff] }
  0x80   : > { %1393 = vmatpush2.bf16.msra.mxu1 %v4588_v39  ;;  %1201 = vmatprep.subr.bf16.mxu0 %v4589_v40  ;;  %v5408_v39 = vpack.c.bf16 %v244_v33, %v240_v32  ;;  %v4637_v40 = vld [vmem:[#allocation5 + $0xa8] ss:$16 sps:$4 sm:$0xff]  }
  0x81   : > { %1394 = vmatprep.subr.bf16.mxu1 %v4591_v41  ;;  %v4640_v41 = vld [vmem:[#allocation5 + $0x2a8] ss:$16 sps:$4 sm:$0xff]  }
  0x82   : > { %v262_v30 = vld [vmem:[%s5354_s6 + $0x148] sm:$0xff]  ;;  %v264_v32 = vld [vmem:[%s5354_s6 + $0x158] sm:$0xff] }
  0x83   : > { %1202 = vmatpush2.bf16.msra.mxu0 %v4593_v42  ;;  %v237_v42 = vld [vmem:[%s5354_s6 + $0x80] sm:$0xff]  ;;  %v266_v31 = vld [vmem:[%s5354_s6 + $0x168] sm:$0xff]  ;;  %v268_v33 = vld [vmem:[%s5354_s6 + $0x178] sm:$0xff] }
  0x84   : > { %1395 = vmatpush2.bf16.msra.mxu1 %v4594_v43  ;;  %1203 = vmatprep.subr.bf16.mxu0 %v4595_v44  ;;  %v241_v43 = vld [vmem:[%s5354_s6 + $0xa0] sm:$0xff]  ;;  %v239_v44 = vld [vmem:[%s5354_s6 + $0x90] sm:$0xff] }
  0x85   : > { %1396 = vmatprep.subr.bf16.mxu1 %v4597_v45  ;;  %v4645_v45 = vld [vmem:[#allocation5 + $0x8c] ss:$16 sps:$4 sm:$0xff]  }
  0x87   : > { %1204 = vmatpush2.bf16.msra.mxu0 %v4599_v50  ;;  %v248_v50 = vld [vmem:[%s5354_s6 + $0xd8] sm:$0xff] }
  0x88   : > { %1397 = vmatpush2.bf16.msra.mxu1 %v4600_v51  ;;  %1205 = vmatprep.subr.bf16.mxu0 %v4601_v52  ;;  %v252_v51 = vld [vmem:[%s5354_s6 + $0xf8] sm:$0xff] }
  0x89   : > { %1398 = vmatprep.subr.bf16.mxu1 %v4603_v55  ;;  %v4643_v52 = vld [vmem:[#allocation5 + $0x88] ss:$16 sps:$4 sm:$0xff]  }
  0x8a   : > { %v4646_v55 = vld [vmem:[#allocation5 + $0x288] ss:$16 sps:$4 sm:$0xff]  }
  0x8b   : > { %1206 = vmatpush2.bf16.msra.mxu0 %v4605_v56  ;;  %v4651_v56 = vld [vmem:[#allocation5 + $0x6c] ss:$16 sps:$4 sm:$0xff]  }
  0x8c   : > { %1399 = vmatpush2.bf16.msra.mxu1 %v4606_v57  ;;  %1207 = vmatprep.subr.bf16.mxu0 %v4607_v58  ;;  %v4654_v57 = vld [vmem:[#allocation5 + $0x26c] ss:$16 sps:$4 sm:$0xff]   ;;  %v5422_v58 = vpack.c.bf16 %v241_v43, %v237_v42  ;;  %v5462_v42 = vpack.c.bf16 %v257_v25, %v253_v24 }
  0x8d   : > { %1400 = vmatprep.subr.bf16.mxu1 %v4609_v59  ;;  %v5424_v59 = vpack.c.bf16 %v243_v47, %v239_v44  ;;  %v5466_v44 = vpack.c.bf16 %v266_v31, %v262_v30  ;;  %v4676_v47 = vld [vmem:[#allocation5 + $0x3e8] ss:$16 sps:$4 sm:$0xff]   ;;  %v4699_v30 = vld [vmem:[#allocation5 + $0x16c] ss:$16 sps:$4 sm:$0xff]  }
  0x8e   : > { %v278_v24 = vld [vmem:[%s5354_s6 + $0x1c8] sm:$0xff] }
  0x8f   : > { %1208 = vmatpush2.bf16.msra.mxu0 %v4611_v60  ;;  %v5426_v60 = vpack.c.bf16 %v250_v49, %v246_v48  ;;  %v261_v48 = vld [vmem:[%s5354_s6 + $0x140] sm:$0xff]  ;;  %v282_v25 = vld [vmem:[%s5354_s6 + $0x1e8] sm:$0xff] }
  0x90   : > { %1401 = vmatpush2.bf16.msra.mxu1 %v4612_v61  ;;  %1209 = vmatprep.subr.bf16.mxu0 %v4613_v62  ;;  %v5428_v61 = vpack.c.bf16 %v252_v51, %v248_v50  ;;  %v4649_v62 = vld [vmem:[#allocation5 + $0x68] ss:$16 sps:$4 sm:$0xff]   ;;  %v265_v49 = vld [vmem:[%s5354_s6 + $0x160] sm:$0xff]  ;;  %v263_v50 = vld [vmem:[%s5354_s6 + $0x150] sm:$0xff] }
  0x91   : > { %1402 = vmatprep.subr.bf16.mxu1 %v4615_v63  ;;  %v4652_v63 = vld [vmem:[#allocation5 + $0x268] ss:$16 sps:$4 sm:$0xff]   ;;  %v267_v51 = vld [vmem:[%s5354_s6 + $0x170] sm:$0xff] }
  0x93   : > { %1210 = vmatpush2.bf16.msra.mxu0 %v4617_v0  ;;  %v245_v0 = vld [vmem:[%s5354_s6 + $0xc0] sm:$0xff] }
  0x94   : > { %1403 = vmatpush2.bf16.msra.mxu1 %v4618_v1  ;;  %1211 = vmatprep.subr.bf16.mxu0 %v4619_v2  ;;  %v249_v1 = vld [vmem:[%s5354_s6 + $0xe0] sm:$0xff]  ;;  %v247_v2 = vld [vmem:[%s5354_s6 + $0xd0] sm:$0xff] }
  0x95   : > { %1404 = vmatprep.subr.bf16.mxu1 %v4621_v3  ;;  %v251_v3 = vld [vmem:[%s5354_s6 + $0xf0] sm:$0xff]  ;;  %v5442_v14 = vpack.c.bf16 %v249_v1, %v245_v0  ;;  %v4679_v0 = vld [vmem:[#allocation5 + $0x1c8] ss:$16 sps:$4 sm:$0xff]  }
  0x96   : > { %v5444_v15 = vpack.c.bf16 %v251_v3, %v247_v2  ;;  %v4682_v1 = vld [vmem:[#allocation5 + $0x3c8] ss:$16 sps:$4 sm:$0xff]   ;;  %v4687_v2 = vld [vmem:[#allocation5 + $0x1ac] ss:$16 sps:$4 sm:$0xff]  }
  0x97   : > { %1212 = vmatpush2.bf16.msra.mxu0 %v4623_v4  ;;  %v4657_v4 = vld [vmem:[#allocation5 + $0x4c] ss:$16 sps:$4 sm:$0xff]  }
  0x98   : > { %1405 = vmatpush2.bf16.msra.mxu1 %v4624_v5  ;;  %1567 = vmatprep.subr.bf16.mxu0 %v4627_v10  ;;  %v4660_v5 = vld [vmem:[#allocation5 + $0x24c] ss:$16 sps:$4 sm:$0xff]   ;;  %v4655_v10 = vld [vmem:[#allocation5 + $0x48] ss:$16 sps:$4 sm:$0xff]  }
  0x99   : > { %1760 = vmatprep.subr.bf16.mxu1 %v4630_v11  ;;  %v4658_v11 = vld [vmem:[#allocation5 + $0x248] ss:$16 sps:$4 sm:$0xff]   ;;  %v4690_v3 = vld [vmem:[#allocation5 + $0x3ac] ss:$16 sps:$4 sm:$0xff]  }
  0x9a   : > { %1214 = vmatmul.mubr.bf16.vlgmr.msra.gmra.mxu0 %v5382_v16 }
  0x9b   : > { %1407 = vmatmul.mubr.bf16.vlgmr.msra.gmra.mxu1 %v5384_v17  ;;  %1568 = vmatpush1.bf16.msra.mxu0 %v4625_v18  ;;  %v5446_v18 = vpack.c.bf16 %v258_v7, %v254_v6 }
  0x9c   : > { %1761 = vmatpush1.bf16.msra.mxu1 %v4628_v19  ;;  %1223 = vmatprep.mubr.bf16.mxu0 %v5386_v20  ;;  %v5448_v19 = vpack.c.bf16 %v260_v9, %v256_v8  ;;  %v4685_v8 = vld [vmem:[#allocation5 + $0x1a8] ss:$16 sps:$4 sm:$0xff]  }
  0x9d   : > { %1416 = vmatprep.mubr.bf16.mxu1 %v5388_v21  ;;  %1569 = vmatprep.subr.bf16.mxu0 %v4633_v22  ;;  %v4661_v22 = vld [vmem:[#allocation5 + $0x28] ss:$16 sps:$4 sm:$0xff]  }
  0x9e   : > { %1762 = vmatprep.subr.bf16.mxu1 %v4636_v29  ;;  %v259_v29 = vld [vmem:[%s5354_s6 + $0x130] sm:$0xff]  ;;  %v4688_v9 = vld [vmem:[#allocation5 + $0x3a8] ss:$16 sps:$4 sm:$0xff]  }
  0x9f   : > { %1570 = vmatpush1.bf16.msra.mxu0 %v4631_v27  ;;  %v4669_v27 = vld [vmem:[#allocation5 + $0xc] ss:$16 sps:$4 sm:$0xff]   ;;  %v5464_v43 = vpack.c.bf16 %v259_v29, %v255_v26  ;;  %v4694_v29 = vld [vmem:[#allocation5 + $0x388] ss:$16 sps:$4 sm:$0xff]  }
  0xa0   : > { %1763 = vmatpush1.bf16.msra.mxu1 %v4634_v28  ;;  %1571 = vmatprep.subr.bf16.mxu0 %v4639_v34  ;;  %v4672_v28 = vld [vmem:[#allocation5 + $0x20c] ss:$16 sps:$4 sm:$0xff]   ;;  %v4667_v34 = vld [vmem:[#allocation5 + $0x8] ss:$16 sps:$4 sm:$0xff]  }
  0xa1   : > { %1764 = vmatprep.subr.bf16.mxu1 %v4642_v35  ;;  %v4670_v35 = vld [vmem:[#allocation5 + $0x208] ss:$16 sps:$4 sm:$0xff]  }
  0xa2   : > { %1224 = vmatmul.mubr.bf16.gmra.mxu0 %v5402_v36  ;;  %v280_v26 = vld [vmem:[%s5354_s6 + $0x1d8] sm:$0xff] }
  0xa3   : > { %1417 = vmatmul.mubr.bf16.gmra.mxu1 %v5404_v37  ;;  %1233 = vmatprep.mubr.bf16.mxu0 %v5406_v38 }
  0xa4   : > { %1426 = vmatprep.mubr.bf16.mxu1 %v5408_v39  ;;  %1572 = vmatpush1.bf16.msra.mxu0 %v4637_v40  ;;  %v4675_v40 = vld [vmem:[#allocation5 + $0x1ec] ss:$16 sps:$4 sm:$0xff]  }
  0xa5   : > { %1765 = vmatpush1.bf16.msra.mxu1 %v4640_v41  ;;  %1573 = vmatprep.subr.bf16.mxu0 %v4645_v45  ;;  %v4678_v41 = vld [vmem:[#allocation5 + $0x3ec] ss:$16 sps:$4 sm:$0xff]   ;;  %v5468_v45 = vpack.c.bf16 %v268_v33, %v264_v32 }
  0xa6   : > { %1766 = vmatprep.subr.bf16.mxu1 %v4648_v46  ;;  %v4673_v46 = vld [vmem:[#allocation5 + $0x1e8] ss:$16 sps:$4 sm:$0xff]   ;;  %v4702_v33 = vld [vmem:[#allocation5 + $0x36c] ss:$16 sps:$4 sm:$0xff]  }
  0xa8   : > { %1574 = vmatpush1.bf16.msra.mxu0 %v4643_v52  ;;  %v4681_v52 = vld [vmem:[#allocation5 + $0x1cc] ss:$16 sps:$4 sm:$0xff]  }
  0xa9   : > { %1767 = vmatpush1.bf16.msra.mxu1 %v4646_v55  ;;  %1575 = vmatprep.subr.bf16.mxu0 %v4651_v56  ;;  %v4684_v55 = vld [vmem:[#allocation5 + $0x3cc] ss:$16 sps:$4 sm:$0xff]  }
  0xaa   : > { %1768 = vmatprep.subr.bf16.mxu1 %v4654_v57  ;;  %1234 = vmatmul.mubr.bf16.gmra.mxu0 %v5422_v58  ;;  %v270_v56 = vld [vmem:[%s5354_s6 + $0x188] sm:$0xff] }
  0xab   : > { %1427 = vmatmul.mubr.bf16.gmra.mxu1 %v5424_v59  ;;  %1243 = vmatprep.mubr.bf16.mxu0 %v5426_v60  ;;  %v274_v57 = vld [vmem:[%s5354_s6 + $0x1a8] sm:$0xff] }
  0xac   : > { %1436 = vmatprep.mubr.bf16.mxu1 %v5428_v61  ;;  %1576 = vmatpush1.bf16.msra.mxu0 %v4649_v62  ;;  %v272_v62 = vld [vmem:[%s5354_s6 + $0x198] sm:$0xff]  ;;  %v5486_v6 = vpack.c.bf16 %v274_v57, %v270_v56 }
  0xad   : > { %1769 = vmatpush1.bf16.msra.mxu1 %v4652_v63  ;;  %1577 = vmatprep.subr.bf16.mxu0 %v4657_v4  ;;  %v276_v63 = vld [vmem:[%s5354_s6 + $0x1b8] sm:$0xff]  ;;  %v5482_v4 = vpack.c.bf16 %v265_v49, %v261_v48  ;;  %v279_v48 = vld [vmem:[%s5354_s6 + $0x1d0] sm:$0xff] }
  0xae   : > { %1770 = vmatprep.subr.bf16.mxu1 %v4660_v5  ;;  %v5484_v5 = vpack.c.bf16 %v267_v51, %v263_v50  ;;  %v5488_v7 = vpack.c.bf16 %v276_v63, %v272_v62  ;;  %v283_v49 = vld [vmem:[%s5354_s6 + $0x1f0] sm:$0xff]  ;;  %v286_v50 = vld [vmem:[%s5354_s6 + $0x208] sm:$0xff]  ;;  %v292_v56 = vld [vmem:[%s5354_s6 + $0x238] sm:$0xff] }
  0xaf   : > { %v290_v51 = vld [vmem:[%s5354_s6 + $0x228] sm:$0xff] }
  0xb0   : > { %1578 = vmatpush1.bf16.msra.mxu0 %v4655_v10  ;;  %v269_v10 = vld [vmem:[%s5354_s6 + $0x180] sm:$0xff]  ;;  %v4703_v57 = vld [vmem:[#allocation5 + $0x148] ss:$16 sps:$4 sm:$0xff]   ;;  %v4708_v63 = vld [vmem:[#allocation5 + $0x34c] ss:$16 sps:$4 sm:$0xff]  }
  0xb1   : > { %1771 = vmatpush1.bf16.msra.mxu1 %v4658_v11  ;;  %1579 = vmatprep.subr.bf16.mxu0 %v4663_v12  ;;  %v273_v11 = vld [vmem:[%s5354_s6 + $0x1a0] sm:$0xff]  ;;  %v271_v12 = vld [vmem:[%s5354_s6 + $0x190] sm:$0xff]  ;;  %v4706_v62 = vld [vmem:[#allocation5 + $0x348] ss:$16 sps:$4 sm:$0xff]  }
  0xb2   : > { %1772 = vmatprep.subr.bf16.mxu1 %v4666_v13  ;;  %1244 = vmatmul.mubr.bf16.gmra.mxu0 %v5442_v14  ;;  %v4693_v13 = vld [vmem:[#allocation5 + $0x18c] ss:$16 sps:$4 sm:$0xff]   ;;  %v5502_v31 = vpack.c.bf16 %v273_v11, %v269_v10  ;;  %v4709_v10 = vld [vmem:[#allocation5 + $0x128] ss:$16 sps:$4 sm:$0xff]  }
  0xb3   : > { %1437 = vmatmul.mubr.bf16.gmra.mxu1 %v5444_v15  ;;  %1253 = vmatprep.mubr.bf16.mxu0 %v5446_v18  ;;  %v4712_v11 = vld [vmem:[#allocation5 + $0x328] ss:$16 sps:$4 sm:$0xff]  }
  0xb4   : > { %1446 = vmatprep.mubr.bf16.mxu1 %v5448_v19  ;;  %1580 = vmatpush1.bf16.msra.mxu0 %v4661_v22  ;;  %v4696_v22 = vld [vmem:[#allocation5 + $0x38c] ss:$16 sps:$4 sm:$0xff]  }
  0xb5   : > { %1773 = vmatpush1.bf16.msra.mxu1 %v4664_v23  ;;  %1581 = vmatprep.subr.bf16.mxu0 %v4669_v27  ;;  %v275_v23 = vld [vmem:[%s5354_s6 + $0x1b0] sm:$0xff]  ;;  %v284_v27 = vld [vmem:[%s5354_s6 + $0x1f8] sm:$0xff] }
  0xb6   : > { %1774 = vmatprep.subr.bf16.mxu1 %v4672_v28  ;;  %v4691_v28 = vld [vmem:[#allocation5 + $0x188] ss:$16 sps:$4 sm:$0xff]   ;;  %v5504_v32 = vpack.c.bf16 %v275_v23, %v271_v12  ;;  %v4714_v12 = vld [vmem:[#allocation5 + $0x32c] ss:$16 sps:$4 sm:$0xff]   ;;  %v291_v23 = vld [vmem:[%s5354_s6 + $0x230] sm:$0xff] }
  0xb8   : > { %1582 = vmatpush1.bf16.msra.mxu0 %v4667_v34  ;;  %v5506_v34 = vpack.c.bf16 %v282_v25, %v278_v24  ;;  %v294_v24 = vld [vmem:[%s5354_s6 + $0x248] sm:$0xff] }
  0xb9   : > { %1775 = vmatpush1.bf16.msra.mxu1 %v4670_v35  ;;  %1583 = vmatprep.subr.bf16.mxu0 %v4675_v40  ;;  %v5508_v35 = vpack.c.bf16 %v284_v27, %v280_v26  ;;  %v4697_v40 = vld [vmem:[#allocation5 + $0x168] ss:$16 sps:$4 sm:$0xff]  }
  0xba   : > { %1776 = vmatprep.subr.bf16.mxu1 %v4678_v41  ;;  %1254 = vmatmul.mubr.bf16.gmra.mxu0 %v5462_v42  ;;  %v4700_v41 = vld [vmem:[#allocation5 + $0x368] ss:$16 sps:$4 sm:$0xff]  }
  0xbb   : > { %1447 = vmatmul.mubr.bf16.gmra.mxu1 %v5464_v43  ;;  %1263 = vmatprep.mubr.bf16.mxu0 %v5466_v44  ;;  %v298_v25 = vld [vmem:[%s5354_s6 + $0x268] sm:$0xff]  ;;  %v296_v26 = vld [vmem:[%s5354_s6 + $0x258] sm:$0xff] }
  0xbc   : > { %1456 = vmatprep.mubr.bf16.mxu1 %v5468_v45  ;;  %1584 = vmatpush2.bf16.msra.mxu0 %v4673_v46  ;;  %v277_v46 = vld [vmem:[%s5354_s6 + $0x1c0] sm:$0xff]  ;;  %v300_v27 = vld [vmem:[%s5354_s6 + $0x278] sm:$0xff] }
  0xbd   : > { %1777 = vmatpush2.bf16.msra.mxu1 %v4676_v47  ;;  %1585 = vmatprep.subr.bf16.mxu0 %v4681_v52  ;;  %v281_v47 = vld [vmem:[%s5354_s6 + $0x1e0] sm:$0xff]  ;;  %v288_v52 = vld [vmem:[%s5354_s6 + $0x218] sm:$0xff] }
  0xbe   : > { %1778 = vmatprep.subr.bf16.mxu1 %v4684_v55  ;;  %v4705_v55 = vld [vmem:[#allocation5 + $0x14c] ss:$16 sps:$4 sm:$0xff]  }
  0xc0   : > { %1586 = vmatpush2.bf16.msra.mxu0 %v4679_v0  ;;  %v5522_v0 = vpack.c.bf16 %v281_v47, %v277_v46  ;;  %v5546_v46 = vpack.c.bf16 %v298_v25, %v294_v24  ;;  %v5548_v47 = vpack.c.bf16 %v300_v27, %v296_v26  ;;  %v314_v24 = vld [vmem:[%s5354_s6 + $0x2e8] sm:$0xff]  ;;  %v312_v25 = vld [vmem:[%s5354_s6 + $0x2d8] sm:$0xff] }
  0xc1   : > { %1779 = vmatpush2.bf16.msra.mxu1 %v4682_v1  ;;  %1587 = vmatprep.subr.bf16.mxu0 %v4687_v2  ;;  %v5524_v1 = vpack.c.bf16 %v283_v49, %v279_v48  ;;  %v5526_v2 = vpack.c.bf16 %v290_v51, %v286_v50  ;;  %v4723_v48 = vld [vmem:[#allocation7 + $0xe4] ss:$16 sps:$4 sm:$0xff]   ;;  %v316_v26 = vld [vmem:[%s5354_s6 + $0x2f8] sm:$0xff] }
  0xc2   : > { %1780 = vmatprep.subr.bf16.mxu1 %v4690_v3  ;;  %1264 = vmatmul.mubr.bf16.gmra.mxu0 %v5482_v4  ;;  %v5528_v3 = vpack.c.bf16 %v292_v56, %v288_v52  ;;  %v293_v49 = vld [vmem:[%s5354_s6 + $0x240] sm:$0xff]  ;;  %v295_v51 = vld [vmem:[%s5354_s6 + $0x250] sm:$0xff]  ;;  %v306_v56 = vld [vmem:[%s5354_s6 + $0x2a8] sm:$0xff] }
  0xc3   : > { %1457 = vmatmul.mubr.bf16.gmra.mxu1 %v5484_v5  ;;  %1273 = vmatprep.mubr.bf16.mxu0 %v5486_v6  ;;  %v297_v50 = vld [vmem:[%s5354_s6 + $0x260] sm:$0xff]  ;;  %v299_v52 = vld [vmem:[%s5354_s6 + $0x270] sm:$0xff] }
  0xc4   : > { %1466 = vmatprep.mubr.bf16.mxu1 %v5488_v7  ;;  %1588 = vmatpush2.bf16.msra.mxu0 %v4685_v8  ;;  %v4711_v8 = vld [vmem:[#allocation5 + $0x12c] ss:$16 sps:$4 sm:$0xff]  }
  0xc5   : > { %1781 = vmatpush2.bf16.msra.mxu1 %v4688_v9  ;;  %1589 = vmatprep.subr.bf16.mxu0 %v4693_v13  ;;  %v285_v9 = vld [vmem:[%s5354_s6 + $0x200] sm:$0xff] }
  0xc6   : > { %1782 = vmatprep.subr.bf16.mxu1 %v4696_v22  ;;  %v289_v13 = vld [vmem:[%s5354_s6 + $0x220] sm:$0xff]  ;;  %v287_v22 = vld [vmem:[%s5354_s6 + $0x210] sm:$0xff] }
  0xc8   : > { %1590 = vmatpush2.bf16.msra.mxu0 %v4691_v28  ;;  %v4715_v28 = vld [vmem:[#allocation5 + $0x108] ss:$16 sps:$4 sm:$0xff]  }
  0xc9   : > { %1783 = vmatpush2.bf16.msra.mxu1 %v4694_v29  ;;  %1591 = vmatprep.subr.bf16.mxu0 %v4699_v30  ;;  %v4717_v29 = vld [vmem:[#allocation5 + $0x10c] ss:$16 sps:$4 sm:$0xff]   ;;  %v5542_v30 = vpack.c.bf16 %v289_v13, %v285_v9  ;;  %v303_v13 = vld [vmem:[%s5354_s6 + $0x290] sm:$0xff] }
  0xca   : > { %1784 = vmatprep.subr.bf16.mxu1 %v4702_v33  ;;  %1274 = vmatmul.mubr.bf16.gmra.mxu0 %v5502_v31  ;;  %v5544_v33 = vpack.c.bf16 %v291_v23, %v287_v22  ;;  %v307_v22 = vld [vmem:[%s5354_s6 + $0x2b0] sm:$0xff]  ;;  %v310_v23 = vld [vmem:[%s5354_s6 + $0x2c8] sm:$0xff] }
  0xcb   : > { %1467 = vmatmul.mubr.bf16.gmra.mxu1 %v5504_v32  ;;  %1283 = vmatprep.mubr.bf16.mxu0 %v5506_v34 }
  0xcc   : > { %1476 = vmatprep.mubr.bf16.mxu1 %v5508_v35  ;;  %1592 = vmatpush2.bf16.msra.mxu0 %v4697_v40  ;;  %v4718_v40 = vld [vmem:[#allocation5 + $0x308] ss:$16 sps:$4 sm:$0xff]  }
  0xcd   : > { %1785 = vmatpush2.bf16.msra.mxu1 %v4700_v41  ;;  %1593 = vmatprep.subr.bf16.mxu0 %v4705_v55  ;;  %v4720_v41 = vld [vmem:[#allocation5 + $0x30c] ss:$16 sps:$4 sm:$0xff]  }
  0xce   : > { %1786 = vmatprep.subr.bf16.mxu1 %v4708_v63  ;;  %v302_v55 = vld [vmem:[%s5354_s6 + $0x288] sm:$0xff]  ;;  %v5562_v63 = vpack.c.bf16 %v297_v50, %v293_v49  ;;  %v311_v49 = vld [vmem:[%s5354_s6 + $0x2d0] sm:$0xff] }
  0xcf   : > { %v5566_v9 = vpack.c.bf16 %v306_v56, %v302_v55  ;;  %v315_v50 = vld [vmem:[%s5354_s6 + $0x2f0] sm:$0xff]  ;;  %v320_v55 = vld [vmem:[%s5354_s6 + $0x318] sm:$0xff] }
  0xd0   : > { %1594 = vmatpush2.bf16.msra.mxu0 %v4703_v57  ;;  %v304_v57 = vld [vmem:[%s5354_s6 + $0x298] sm:$0xff]  ;;  %v4735_v56 = vld [vmem:[#allocation7 + $0x2e4] ss:$16 sps:$4 sm:$0xff]  }
  0xd1   : > { %1787 = vmatpush2.bf16.msra.mxu1 %v4706_v62  ;;  %1595 = vmatprep.subr.bf16.mxu0 %v4711_v8  ;;  %v308_v62 = vld [vmem:[%s5354_s6 + $0x2b8] sm:$0xff]  ;;  %v5564_v8 = vpack.c.bf16 %v299_v52, %v295_v51  ;;  %v318_v51 = vld [vmem:[%s5354_s6 + $0x308] sm:$0xff] }
  0xd2   : > { %1284 = vmatmul.mubr.bf16.gmra.mxu0 %v5522_v0  ;;  %1788 = vmatprep.subr.bf16.mxu1 %v4714_v12  ;;  %v305_v12 = vld [vmem:[%s5354_s6 + $0x2a0] sm:$0xff]  ;;  %v322_v52 = vld [vmem:[%s5354_s6 + $0x328] sm:$0xff] }
  0xd3   : > { %1477 = vmatmul.mubr.bf16.gmra.mxu1 %v5524_v1  ;;  %1293 = vmatprep.mubr.bf16.mxu0 %v5526_v2 }
  0xd4   : > { %1486 = vmatprep.mubr.bf16.mxu1 %v5528_v3  ;;  %1596 = vmatpush2.bf16.msra.mxu0 %v4709_v10  ;;  %v5568_v10 = vpack.c.bf16 %v308_v62, %v304_v57  ;;  %v324_v57 = vld [vmem:[%s5354_s6 + $0x338] sm:$0xff] }
  0xd5   : > { %1789 = vmatpush2.bf16.msra.mxu1 %v4712_v11  ;;  %1597 = vmatprep.subr.bf16.mxu0 %v4717_v29  ;;  %v301_v11 = vld [vmem:[%s5354_s6 + $0x280] sm:$0xff]  ;;  %v5586_v29 = vpack.c.bf16 %v314_v24, %v310_v23  ;;  %v319_v24 = vld [vmem:[%s5354_s6 + $0x310] sm:$0xff] }
  0xd6   : > { %1790 = vmatprep.subr.bf16.mxu1 %v4720_v41  ;;  %v5582_v27 = vpack.c.bf16 %v305_v12, %v301_v11  ;;  %v309_v41 = vld [vmem:[%s5354_s6 + $0x2c0] sm:$0xff]  ;;  %v5604_v11 = vpack.c.bf16 %v315_v50, %v311_v49  ;;  %v5606_v12 = vpack.c.bf16 %v322_v52, %v318_v51  ;;  %v332_v49 = vld [vmem:[%s5354_s6 + $0x378] sm:$0xff] }
  0xd7   : > { %v321_v23 = vld [vmem:[%s5354_s6 + $0x320] sm:$0xff] }
  0xd8   : > { %1598 = vmatpush2.bf16.msra.mxu0 %v4715_v28  ;;  %v5584_v28 = vpack.c.bf16 %v307_v22, %v303_v13  ;;  %7103 = vst [vmem:[#allocation12_spill] sm:$0xff] %v5604_v11  ;;  %7104 = vst [vmem:[#allocation13_spill] sm:$0xff] %v5606_v12  ;;  %v5608_v13 = vpack.c.bf16 %v324_v57, %v320_v55  ;;  %v317_v22 = vld [vmem:[%s5354_s6 + $0x300] sm:$0xff] }
  0xd9   : > { %1791 = vmatpush2.bf16.msra.mxu1 %v4718_v40  ;;  %2913 = vmatprep.subr.bf16.mxu0 %v4723_v48  ;;  %v5588_v40 = vpack.c.bf16 %v316_v26, %v312_v25  ;;  %v313_v48 = vld [vmem:[%s5354_s6 + $0x2e0] sm:$0xff]  ;;  %v323_v25 = vld [vmem:[%s5354_s6 + $0x330] sm:$0xff]  ;;  %v326_v26 = vld [vmem:[%s5354_s6 + $0x348] sm:$0xff]  ;;  %v5622_v50 = vpack.c.bf16 %v321_v23, %v317_v22 }
  0xda   : > { %1294 = vmatmul.mubr.bf16.gmra.mxu0 %v5542_v30  ;;  %3106 = vmatprep.subr.bf16.mxu1 %v4735_v56  ;;  %v5602_v62 = vpack.c.bf16 %v313_v48, %v309_v41  ;;  %7105 = vst [vmem:[#allocation14_spill] sm:$0xff] %v5608_v13  ;;  %v330_v41 = vld [vmem:[%s5354_s6 + $0x368] sm:$0xff]  ;;  %v328_v48 = vld [vmem:[%s5354_s6 + $0x358] sm:$0xff]  ;;  %v5624_v51 = vpack.c.bf16 %v323_v25, %v319_v24  ;;  %v325_v56 = vld [vmem:[%s5354_s6 + $0x340] sm:$0xff] }
  0xdb   : > { %1487 = vmatmul.mubr.bf16.gmra.mxu1 %v5544_v33  ;;  %1303 = vmatprep.mubr.bf16.mxu0 %v5546_v46  ;;  %7106 = vst [vmem:[#allocation15_spill] sm:$0xff] %v5622_v50  ;;  %v5626_v52 = vpack.c.bf16 %v330_v41, %v326_v26  ;;  %v5628_v55 = vpack.c.bf16 %v332_v49, %v328_v48  ;;  %v329_v57 = vld [vmem:[%s5354_s6 + $0x360] sm:$0xff]  ;;  %v334_v22 = vld [vmem:[%s5354_s6 + $0x388] sm:$0xff]  ;;  %v336_v24 = vld [vmem:[%s5354_s6 + $0x398] sm:$0xff] }
  0xdc   : > { %1496 = vmatprep.mubr.bf16.mxu1 %v5548_v47  ;;  %7107 = vst [vmem:[#allocation16_spill] sm:$0xff] %v5624_v51  ;;  %v338_v23 = vld [vmem:[%s5354_s6 + $0x3a8] sm:$0xff]  ;;  %v340_v25 = vld [vmem:[%s5354_s6 + $0x3b8] sm:$0xff]  ;;  %v5642_v26 = vpack.c.bf16 %v329_v57, %v325_v56 }
  0xdd   : > { %7108 = vst [vmem:[#allocation17_spill] sm:$0xff] %v5626_v52  ;;  %7109 = vst [vmem:[#allocation18_spill] sm:$0xff] %v5628_v55  ;;  %v5646_v48 = vpack.c.bf16 %v338_v23, %v334_v22  ;;  %v5648_v49 = vpack.c.bf16 %v340_v25, %v336_v24  ;;  %v348_v56 = vld [vmem:[%s5354_s6 + $0x3f8] sm:$0xff]  ;;  %v341_v25 = vld [vmem:[%s5354_s6 + $0x3c0] sm:$0xff] }
  0xdf   : > { %7111 = vst [vmem:[#allocation20_spill] sm:$0xff] %v5646_v48  ;;  %7112 = vst [vmem:[#allocation21_spill] sm:$0xff] %v5648_v49 }
  0xe2   : > { %1304 = vmatmul.mubr.bf16.gmra.mxu0 %v5562_v63 }
  0xe3   : > { %1497 = vmatmul.mubr.bf16.gmra.mxu1 %v5564_v8  ;;  %1313 = vmatprep.mubr.bf16.mxu0 %v5566_v9 }
  0xe4   : > { %1506 = vmatprep.mubr.bf16.mxu1 %v5568_v10 }
  0xea   : > { %1314 = vmatmul.mubr.bf16.gmra.mxu0 %v5582_v27 }
  0xeb   : > { %1507 = vmatmul.mubr.bf16.gmra.mxu1 %v5584_v28  ;;  %1323 = vmatprep.mubr.bf16.mxu0 %v5586_v29 }
  0xec   : > { %1516 = vmatprep.mubr.bf16.mxu1 %v5588_v40 }
  0xf2   : > { %1324 = vmatmul.mubr.bf16.gmra.mxu0 %v5602_v62 }
  0xf3   : > { %1517 = vmatmul.mubr.bf16.gmra.mxu1 %v5604_v11  ;;  %1333 = vmatprep.mubr.bf16.mxu0 %v5606_v12  ;;  %v327_v12 = vld [vmem:[%s5354_s6 + $0x350] sm:$0xff]  ;;  %v342_v11 = vld [vmem:[%s5354_s6 + $0x3c8] sm:$0xff] }
  0xf4   : > { %1526 = vmatprep.mubr.bf16.mxu1 %v5608_v13  ;;  %v331_v13 = vld [vmem:[%s5354_s6 + $0x370] sm:$0xff] }
  0xf5   : > { %v5644_v41 = vpack.c.bf16 %v331_v13, %v327_v12  ;;  %v346_v12 = vld [vmem:[%s5354_s6 + $0x3e8] sm:$0xff]  ;;  %v344_v13 = vld [vmem:[%s5354_s6 + $0x3d8] sm:$0xff] }
  0xf6   : > { %v5666_v23 = vpack.c.bf16 %v346_v12, %v342_v11  ;;  %v5668_v24 = vpack.c.bf16 %v348_v56, %v344_v13  ;;  %v4721_v11 = vld [vmem:[#allocation7 + $0xe0] ss:$16 sps:$4 sm:$0xff]   ;;  %v4744_v12 = vld [vmem:[#allocation7 + $0x2c4] ss:$16 sps:$4 sm:$0xff]  }
  0xf7   : > { %7110 = vst [vmem:[#allocation19_spill] sm:$0xff] %v5644_v41  ;;  %v4751_v13 = vld [vmem:[#allocation7 + $0x2a0] ss:$16 sps:$4 sm:$0xff]   ;;  %v4738_v56 = vld [vmem:[#allocation7 + $0x64] ss:$16 sps:$4 sm:$0xff]  }
  0xfa   : > { %1334 = vmatmul.mubr.bf16.gmra.mxu0 %v5622_v50  ;;  %v337_v50 = vld [vmem:[%s5354_s6 + $0x3a0] sm:$0xff] }
  0xfb   : > { %1527 = vmatmul.mubr.bf16.gmra.mxu1 %v5624_v51  ;;  %1343 = vmatprep.mubr.bf16.mxu0 %v5626_v52  ;;  %v333_v51 = vld [vmem:[%s5354_s6 + $0x380] sm:$0xff]  ;;  %v335_v52 = vld [vmem:[%s5354_s6 + $0x390] sm:$0xff] }
  0xfc   : > { %1536 = vmatprep.mubr.bf16.mxu1 %v5628_v55  ;;  %v339_v55 = vld [vmem:[%s5354_s6 + $0x3b0] sm:$0xff]  ;;  %v5662_v57 = vpack.c.bf16 %v337_v50, %v333_v51 }
  0xfd   : > { %v5664_v22 = vpack.c.bf16 %v339_v55, %v335_v52  ;;  %v4733_v52 = vld [vmem:[#allocation7 + $0x2e0] ss:$16 sps:$4 sm:$0xff]   ;;  %v4726_v55 = vld [vmem:[#allocation7 + $0xc4] ss:$16 sps:$4 sm:$0xff]  }
 0x102   : > { %1344 = vmatmul.mubr.bf16.gmra.mxu0 %v5642_v26 }
 0x103   : > { %1537 = vmatmul.mubr.bf16.gmra.mxu1 %v5644_v41  ;;  %1353 = vmatprep.mubr.bf16.mxu0 %v5646_v48  ;;  %v345_v41 = vld [vmem:[%s5354_s6 + $0x3e0] sm:$0xff]  ;;  %v347_v48 = vld [vmem:[%s5354_s6 + $0x3f0] sm:$0xff] }
 0x104   : > { %1546 = vmatprep.mubr.bf16.mxu1 %v5648_v49  ;;  %v343_v49 = vld [vmem:[%s5354_s6 + $0x3d0] sm:$0xff]  ;;  %v5678_v50 = vpack.c.bf16 %v345_v41, %v341_v25 }
 0x105   : > { %v5680_v51 = vpack.c.bf16 %v347_v48, %v343_v49  ;;  %v4724_v41 = vld [vmem:[#allocation7 + $0xc0] ss:$16 sps:$4 sm:$0xff]   ;;  %v4771_v25 = vld [vmem:[#allocation7 + $0x264] ss:$16 sps:$4 sm:$0xff]  }
 0x106   : > { %v4742_v48 = vld [vmem:[#allocation7 + $0x2c0] ss:$16 sps:$4 sm:$0xff]  }
 0x107   : > { %v4727_v49 = vld [vmem:[#allocation7 + $0xa0] ss:$16 sps:$4 sm:$0xff]  }
 0x10a   : > { %1354 = vmatmul.mubr.bf16.gmra.mxu0 %v5662_v57 }
 0x10b   : > { %1547 = vmatmul.mubr.bf16.gmra.mxu1 %v5664_v22  ;;  %1363 = vmatprep.mubr.bf16.mxu0 %v5666_v23 }
 0x10c   : > { %1556 = vmatprep.mubr.bf16.mxu1 %v5668_v24 }
 0x112   : > { %1364 = vmatmul.mubr.bf16.gmra.mxu0 %v5678_v50 }
 0x113   : > { %1557 = vmatmul.mubr.bf16.gmra.mxu1 %v5680_v51  ;;  %1599 = vmatprep.mubr.bf16.mxu0 %v5368_v53  ;;  %v4729_v53 = vld [vmem:[#allocation7 + $0xa4] ss:$16 sps:$4 sm:$0xff]  }
 0x114   : > { %1792 = vmatprep.mubr.bf16.mxu1 %v5370_v54  ;;  %v4753_v54 = vld [vmem:[#allocation7 + $0x2a4] ss:$16 sps:$4 sm:$0xff]  }
 0x11a   : > { %1600 = vmatmul.mubr.bf16.vlgmr.msra.gmra.mxu0 %v5382_v16  ;;  %v4732_v16 = vld [vmem:[#allocation7 + $0x84] ss:$16 sps:$4 sm:$0xff]  }
 0x11b   : > { %1793 = vmatmul.mubr.bf16.vlgmr.msra.gmra.mxu1 %v5384_v17  ;;  %1609 = vmatprep.mubr.bf16.mxu0 %v5386_v20  ;;  %v4762_v17 = vld [vmem:[#allocation7 + $0x284] ss:$16 sps:$4 sm:$0xff]   ;;  %v4730_v20 = vld [vmem:[#allocation7 + $0x80] ss:$16 sps:$4 sm:$0xff]  }
 0x11c   : > { %1802 = vmatprep.mubr.bf16.mxu1 %v5388_v21  ;;  %2914 = vmatpush1.bf16.msra.mxu0 %v4721_v11  ;;  %v4760_v21 = vld [vmem:[#allocation7 + $0x280] ss:$16 sps:$4 sm:$0xff]  }
 0x11d   : > { %3107 = vmatpush1.bf16.msra.mxu1 %v4733_v52  ;;  %2915 = vmatprep.subr.bf16.mxu0 %v4726_v55  ;;  %v4736_v11 = vld [vmem:[#allocation7 + $0x60] ss:$16 sps:$4 sm:$0xff]   ;;  %v4747_v55 = vld [vmem:[#allocation7 + $0x24] ss:$16 sps:$4 sm:$0xff]  }
 0x11e   : > { %3108 = vmatprep.subr.bf16.mxu1 %v4744_v12  ;;  %v4769_v52 = vld [vmem:[#allocation7 + $0x260] ss:$16 sps:$4 sm:$0xff]   ;;  %v4789_v12 = vld [vmem:[#allocation7 + $0x224] ss:$16 sps:$4 sm:$0xff]  }
 0x120   : > { %2916 = vmatpush1.bf16.msra.mxu0 %v4724_v41  ;;  %v4745_v41 = vld [vmem:[#allocation7 + $0x20] ss:$16 sps:$4 sm:$0xff]  }
 0x121   : > { %3109 = vmatpush1.bf16.msra.mxu1 %v4742_v48  ;;  %2917 = vmatprep.subr.bf16.mxu0 %v4729_v53  ;;  %v4787_v48 = vld [vmem:[#allocation7 + $0x220] ss:$16 sps:$4 sm:$0xff]   ;;  %v4756_v53 = vld [vmem:[#allocation7 + $0x1e4] ss:$16 sps:$4 sm:$0xff]  }
 0x122   : > { %3110 = vmatprep.subr.bf16.mxu1 %v4753_v54  ;;  %1610 = vmatmul.mubr.bf16.gmra.mxu0 %v5402_v36  ;;  %v4741_v36 = vld [vmem:[#allocation7 + $0x44] ss:$16 sps:$4 sm:$0xff]  }
 0x123   : > { %1803 = vmatmul.mubr.bf16.gmra.mxu1 %v5404_v37  ;;  %1619 = vmatprep.mubr.bf16.mxu0 %v5406_v38  ;;  %v4780_v37 = vld [vmem:[#allocation7 + $0x244] ss:$16 sps:$4 sm:$0xff]   ;;  %v4739_v38 = vld [vmem:[#allocation7 + $0x40] ss:$16 sps:$4 sm:$0xff]  }
 0x124   : > { %1812 = vmatprep.mubr.bf16.mxu1 %v5408_v39  ;;  %2918 = vmatpush1.bf16.msra.mxu0 %v4727_v49  ;;  %v4778_v39 = vld [vmem:[#allocation7 + $0x240] ss:$16 sps:$4 sm:$0xff]   ;;  %v4795_v54 = vld [vmem:[#allocation7 + $0x3e4] ss:$16 sps:$4 sm:$0xff]  }
 0x125   : > { %3111 = vmatpush1.bf16.msra.mxu1 %v4751_v13  ;;  %2919 = vmatprep.subr.bf16.mxu0 %v4732_v16  ;;  %v4754_v49 = vld [vmem:[#allocation7 + $0x1e0] ss:$16 sps:$4 sm:$0xff]   ;;  %v4765_v16 = vld [vmem:[#allocation7 + $0x1a4] ss:$16 sps:$4 sm:$0xff]  }
 0x126   : > { %3112 = vmatprep.subr.bf16.mxu1 %v4762_v17  ;;  %v4793_v13 = vld [vmem:[#allocation7 + $0x3e0] ss:$16 sps:$4 sm:$0xff]   ;;  %v4801_v17 = vld [vmem:[#allocation7 + $0x3a4] ss:$16 sps:$4 sm:$0xff]  }
 0x128   : > { %2920 = vmatpush1.bf16.msra.mxu0 %v4730_v20  ;;  %v4763_v20 = vld [vmem:[#allocation7 + $0x1a0] ss:$16 sps:$4 sm:$0xff]  }
 0x129   : > { %3113 = vmatpush1.bf16.msra.mxu1 %v4760_v21  ;;  %2921 = vmatprep.subr.bf16.mxu0 %v4738_v56  ;;  %v4799_v21 = vld [vmem:[#allocation7 + $0x3a0] ss:$16 sps:$4 sm:$0xff]   ;;  %v4774_v56 = vld [vmem:[#allocation7 + $0x164] ss:$16 sps:$4 sm:$0xff]  }
 0x12a   : > { %3114 = vmatprep.subr.bf16.mxu1 %v4771_v25  ;;  %1620 = vmatmul.mubr.bf16.gmra.mxu0 %v5422_v58  ;;  %v4750_v58 = vld [vmem:[#allocation7 + $0x4] ss:$16 sps:$4 sm:$0xff]   ;;  %v4772_v25 = vld [vmem:[#allocation7 + $0x160] ss:$16 sps:$4 sm:$0xff]  }
 0x12b   : > { %1813 = vmatmul.mubr.bf16.gmra.mxu1 %v5424_v59  ;;  %1629 = vmatprep.mubr.bf16.mxu0 %v5426_v60  ;;  %v4792_v59 = vld [vmem:[#allocation7 + $0x204] ss:$16 sps:$4 sm:$0xff]   ;;  %v4748_v60 = vld [vmem:[#allocation7] ss:$16 sps:$4 sm:$0xff]  }
 0x12c   : > { %1822 = vmatprep.mubr.bf16.mxu1 %v5428_v61  ;;  %2922 = vmatpush1.bf16.msra.mxu0 %v4736_v11  ;;  %v4790_v61 = vld [vmem:[#allocation7 + $0x200] ss:$16 sps:$4 sm:$0xff]   ;;  %v4777_v11 = vld [vmem:[#allocation7 + $0x144] ss:$16 sps:$4 sm:$0xff]  }
 0x12d   : > { %3115 = vmatpush1.bf16.msra.mxu1 %v4769_v52  ;;  %2923 = vmatprep.subr.bf16.mxu0 %v4741_v36  ;;  %v4781_v52 = vld [vmem:[#allocation7 + $0x120] ss:$16 sps:$4 sm:$0xff]   ;;  %v4786_v36 = vld [vmem:[#allocation7 + $0x104] ss:$16 sps:$4 sm:$0xff]  }
 0x12e   : > { %3116 = vmatprep.subr.bf16.mxu1 %v4780_v37 }
 0x130   : > { %2924 = vmatpush1.bf16.msra.mxu0 %v4739_v38 }
 0x131   : > { %3117 = vmatpush1.bf16.msra.mxu1 %v4778_v39  ;;  %2925 = vmatprep.subr.bf16.mxu0 %v4747_v55 }
 0x132   : > { %3118 = vmatprep.subr.bf16.mxu1 %v4789_v12  ;;  %1630 = vmatmul.mubr.bf16.gmra.mxu0 %v5442_v14  ;;  %v4759_v14 = vld [vmem:[#allocation7 + $0x1c4] ss:$16 sps:$4 sm:$0xff]  }
 0x133   : > { %1823 = vmatmul.mubr.bf16.gmra.mxu1 %v5444_v15  ;;  %1639 = vmatprep.mubr.bf16.mxu0 %v5446_v18  ;;  %v4798_v15 = vld [vmem:[#allocation7 + $0x3c4] ss:$16 sps:$4 sm:$0xff]   ;;  %v4757_v18 = vld [vmem:[#allocation7 + $0x1c0] ss:$16 sps:$4 sm:$0xff]  }
 0x134   : > { %1832 = vmatprep.mubr.bf16.mxu1 %v5448_v19  ;;  %2926 = vmatpush1.bf16.msra.mxu0 %v4745_v41  ;;  %v4796_v19 = vld [vmem:[#allocation7 + $0x3c0] ss:$16 sps:$4 sm:$0xff]   ;;  %v4822_v12 = vld [vmem:[#allocation7 + $0x304] ss:$16 sps:$4 sm:$0xff]  }
 0x135   : > { %3119 = vmatpush1.bf16.msra.mxu1 %v4787_v48  ;;  %2927 = vmatprep.subr.bf16.mxu0 %v4750_v58  ;;  %v4820_v41 = vld [vmem:[#allocation7 + $0x300] ss:$16 sps:$4 sm:$0xff]  }
 0x136   : > { %3120 = vmatprep.subr.bf16.mxu1 %v4792_v59 }
 0x138   : > { %2928 = vmatpush1.bf16.msra.mxu0 %v4748_v60 }
 0x139   : > { %3121 = vmatpush1.bf16.msra.mxu1 %v4790_v61  ;;  %2929 = vmatprep.subr.bf16.mxu0 %v4756_v53 }
 0x13a   : > { %3122 = vmatprep.subr.bf16.mxu1 %v4795_v54  ;;  %1640 = vmatmul.mubr.bf16.gmra.mxu0 %v5462_v42  ;;  %v4768_v42 = vld [vmem:[#allocation7 + $0x184] ss:$16 sps:$4 sm:$0xff]  }
 0x13b   : > { %1833 = vmatmul.mubr.bf16.gmra.mxu1 %v5464_v43  ;;  %1649 = vmatprep.mubr.bf16.mxu0 %v5466_v44  ;;  %v4804_v43 = vld [vmem:[#allocation7 + $0x384] ss:$16 sps:$4 sm:$0xff]   ;;  %v4766_v44 = vld [vmem:[#allocation7 + $0x180] ss:$16 sps:$4 sm:$0xff]  }
 0x13c   : > { %1842 = vmatprep.mubr.bf16.mxu1 %v5468_v45  ;;  %2930 = vmatpush2.bf16.msra.mxu0 %v4754_v49  ;;  %v4802_v45 = vld [vmem:[#allocation7 + $0x380] ss:$16 sps:$4 sm:$0xff]  }
 0x13d   : > { %3123 = vmatpush2.bf16.msra.mxu1 %v4793_v13  ;;  %2931 = vmatprep.subr.bf16.mxu0 %v4759_v14 }
 0x13e   : > { %3124 = vmatprep.subr.bf16.mxu1 %v4798_v15 }
 0x140   : > { %2932 = vmatpush2.bf16.msra.mxu0 %v4757_v18  ;;  %v7115_v18 = vld [vmem:[#allocation14_spill] sm:$0xff] }
 0x141   : > { %3125 = vmatpush2.bf16.msra.mxu1 %v4796_v19  ;;  %2933 = vmatprep.subr.bf16.mxu0 %v4765_v16 }
 0x142   : > { %3126 = vmatprep.subr.bf16.mxu1 %v4801_v17  ;;  %1650 = vmatmul.mubr.bf16.gmra.mxu0 %v5482_v4  ;;  %v4805_v4 = vld [vmem:[#allocation7 + $0x360] ss:$16 sps:$4 sm:$0xff]  }
 0x143   : > { %1843 = vmatmul.mubr.bf16.gmra.mxu1 %v5484_v5  ;;  %1659 = vmatprep.mubr.bf16.mxu0 %v5486_v6  ;;  %v4807_v5 = vld [vmem:[#allocation7 + $0x364] ss:$16 sps:$4 sm:$0xff]   ;;  %v4775_v6 = vld [vmem:[#allocation7 + $0x140] ss:$16 sps:$4 sm:$0xff]  }
 0x144   : > { %1852 = vmatprep.mubr.bf16.mxu1 %v5488_v7  ;;  %2934 = vmatpush2.bf16.msra.mxu0 %v4763_v20  ;;  %v4783_v7 = vld [vmem:[#allocation7 + $0x124] ss:$16 sps:$4 sm:$0xff]  }
 0x145   : > { %3127 = vmatpush2.bf16.msra.mxu1 %v4799_v21  ;;  %2935 = vmatprep.subr.bf16.mxu0 %v4768_v42 }
 0x146   : > { %3128 = vmatprep.subr.bf16.mxu1 %v4804_v43 }
 0x148   : > { %2936 = vmatpush2.bf16.msra.mxu0 %v4766_v44  ;;  %v7116_v44 = vld [vmem:[#allocation15_spill] sm:$0xff] }
 0x149   : > { %3129 = vmatpush2.bf16.msra.mxu1 %v4802_v45  ;;  %2937 = vmatprep.subr.bf16.mxu0 %v4774_v56  ;;  %v7117_v45 = vld [vmem:[#allocation16_spill] sm:$0xff]  ;;  %v7118_v56 = vld [vmem:[#allocation17_spill] sm:$0xff] }
 0x14a   : > { %1660 = vmatmul.mubr.bf16.gmra.mxu0 %v5502_v31  ;;  %3130 = vmatprep.subr.bf16.mxu1 %v4807_v5  ;;  %v4808_v31 = vld [vmem:[#allocation7 + $0x340] ss:$16 sps:$4 sm:$0xff]  }
 0x14b   : > { %1853 = vmatmul.mubr.bf16.gmra.mxu1 %v5504_v32  ;;  %1669 = vmatprep.mubr.bf16.mxu0 %v5506_v34  ;;  %v4810_v32 = vld [vmem:[#allocation7 + $0x344] ss:$16 sps:$4 sm:$0xff]   ;;  %v4784_v34 = vld [vmem:[#allocation7 + $0x100] ss:$16 sps:$4 sm:$0xff]  }
 0x14c   : > { %1862 = vmatprep.mubr.bf16.mxu1 %v5508_v35  ;;  %2938 = vmatpush2.bf16.msra.mxu0 %v4772_v25  ;;  %v4816_v35 = vld [vmem:[#allocation7 + $0xec] ss:$16 sps:$4 sm:$0xff]   ;;  %v7119_v25 = vld [vmem:[#allocation18_spill] sm:$0xff] }
 0x14d   : > { %2939 = vmatprep.subr.bf16.mxu0 %v4777_v11  ;;  %3131 = vmatpush2.bf16.msra.mxu1 %v4805_v4 }
 0x14e   : > { %3132 = vmatprep.subr.bf16.mxu1 %v4810_v32  ;;  %v7120_v32 = vld [vmem:[#allocation19_spill] sm:$0xff] }
 0x150   : > { %2940 = vmatpush2.bf16.msra.mxu0 %v4775_v6 }
 0x151   : > { %2941 = vmatprep.subr.bf16.mxu0 %v4783_v7  ;;  %3133 = vmatpush2.bf16.msra.mxu1 %v4808_v31 }
 0x152   : > { %1670 = vmatmul.mubr.bf16.gmra.mxu0 %v5522_v0  ;;  %v4811_v0 = vld [vmem:[#allocation7 + $0x320] ss:$16 sps:$4 sm:$0xff]  }
 0x153   : > { %1863 = vmatmul.mubr.bf16.gmra.mxu1 %v5524_v1  ;;  %1679 = vmatprep.mubr.bf16.mxu0 %v5526_v2  ;;  %v4813_v1 = vld [vmem:[#allocation7 + $0x324] ss:$16 sps:$4 sm:$0xff]  }
 0x154   : > { %1872 = vmatprep.mubr.bf16.mxu1 %v5528_v3  ;;  %2942 = vmatpush2.bf16.msra.mxu0 %v4781_v52 }
 0x155   : > { %2943 = vmatprep.subr.bf16.mxu0 %v4786_v36  ;;  %3134 = vmatprep.subr.bf16.mxu1 %v4813_v1 }
 0x156   : > { %3135 = vmatpush2.bf16.msra.mxu1 %v4811_v0 }
 0x157   : > { %3136 = vmatprep.subr.bf16.mxu1 %v4822_v12 }
 0x158   : > { %2944 = vmatpush2.bf16.msra.mxu0 %v4784_v34  ;;  %v7121_v34 = vld [vmem:[#allocation20_spill] sm:$0xff] }
 0x159   : > { %3299 = vmatprep.subr.bf16.mxu0 %v4816_v35  ;;  %v7122_v35 = vld [vmem:[#allocation21_spill] sm:$0xff] }
 0x15a   : > { %v5718_v37 = vpop.f32.mrf.mxu0  ;;  %1680 = vmatmul.mubr.bf16.gmra.mxu0 %v5542_v30  ;;  %3137 = vmatpush2.bf16.msra.mxu1 %v4820_v41 }
 0x15b   : > { %v5720_v38 = vpop.f32.mrf.mxu1  ;;  %1873 = vmatmul.mubr.bf16.gmra.mxu1 %v5544_v33  ;;  %1689 = vmatprep.mubr.bf16.mxu0 %v5546_v46 }
 0x15c   : > { %1882 = vmatprep.mubr.bf16.mxu1 %v5548_v47  ;;  %v5726_v2 = vpop.f32.mrf.mxu0 }
 0x15d   : > { %v5728_v3 = vpop.f32.mrf.mxu1 }
 0x15e   : > { %v5730_v39 = vpop.f32.mrf.mxu0 }
 0x15f   : > { %v5732_v55 = vpop.f32.mrf.mxu1 }
 0x160   : > { %v5734_v30 = vpop.f32.mrf.mxu0 }
 0x161   : > { %v5736_v33 = vpop.f32.mrf.mxu1 }
 0x162   : > { %v5738_v46 = vpop.f32.mrf.mxu0  ;;  %1690 = vmatmul.mubr.bf16.gmra.mxu0 %v5562_v63 }
 0x163   : > { %v5740_v47 = vpop.f32.mrf.mxu1  ;;  %1883 = vmatmul.mubr.bf16.gmra.mxu1 %v5564_v8  ;;  %1699 = vmatprep.mubr.bf16.mxu0 %v5566_v9 }
 0x164   : > { %1892 = vmatprep.mubr.bf16.mxu1 %v5568_v10  ;;  %v5746_v48 = vpop.f32.mrf.mxu0  ;;  %v4831_v10 = vld [vmem:[#allocation7 + $0x2ec] ss:$16 sps:$4 sm:$0xff]  }
 0x165   : > { %v5748_v58 = vpop.f32.mrf.mxu1  ;;  %3492 = vmatprep.subr.bf16.mxu1 %v4831_v10 }
 0x166   : > { %v5750_v59 = vpop.f32.mrf.mxu0 }
 0x167   : > { %v5752_v60 = vpop.f32.mrf.mxu1 }
 0x168   : > { %v5754_v61 = vpop.f32.mrf.mxu0 }
 0x169   : > { %v5756_v63 = vpop.f32.mrf.mxu1 }
 0x16a   : > { %v5758_v8 = vpop.f32.mrf.mxu0  ;;  %1700 = vmatmul.mubr.bf16.gmra.mxu0 %v5582_v27 }
 0x16b   : > { %v5760_v9 = vpop.f32.mrf.mxu1  ;;  %1893 = vmatmul.mubr.bf16.gmra.mxu1 %v5584_v28  ;;  %1709 = vmatprep.mubr.bf16.mxu0 %v5586_v29  ;;  %v7113_v29 = vld [vmem:[#allocation12_spill] sm:$0xff] }
 0x16c   : > { %1902 = vmatprep.mubr.bf16.mxu1 %v5588_v40  ;;  %v5766_v53 = vpop.f32.mrf.mxu0  ;;  %v7114_v40 = vld [vmem:[#allocation13_spill] sm:$0xff] }
 0x16d   : > { %v5768_v54 = vpop.f32.mrf.mxu1 }
 0x16e   : > { %v5770_v49 = vpop.f32.mrf.mxu0 }
 0x16f   : > { %v5772_v13 = vpop.f32.mrf.mxu1 }
 0x170   : > { %v5774_v14 = vpop.f32.mrf.mxu0 }
 0x171   : > { %v5776_v15 = vpop.f32.mrf.mxu1 }
 0x172   : > { %v5778_v27 = vpop.f32.mrf.mxu0  ;;  %1710 = vmatmul.mubr.bf16.gmra.mxu0 %v5602_v62 }
 0x173   : > { %v5780_v28 = vpop.f32.mrf.mxu1  ;;  %1903 = vmatmul.mubr.bf16.gmra.mxu1 %v7113_v29  ;;  %1719 = vmatprep.mubr.bf16.mxu0 %v7114_v40 }
 0x174   : > { %1912 = vmatprep.mubr.bf16.mxu1 %v7115_v18  ;;  %v5786_v19 = vpop.f32.mrf.mxu0 }
 0x175   : > { %v5788_v16 = vpop.f32.mrf.mxu1 }
 0x176   : > { %v5790_v17 = vpop.f32.mrf.mxu0 }
 0x177   : > { %v5792_v20 = vpop.f32.mrf.mxu1 }
 0x178   : > { %v5794_v21 = vpop.f32.mrf.mxu0 }
 0x179   : > { %v5796_v42 = vpop.f32.mrf.mxu1 }
 0x17a   : > { %v5798_v43 = vpop.f32.mrf.mxu0  ;;  %1720 = vmatmul.mubr.bf16.gmra.mxu0 %v7116_v44  ;;  %v1411_v44 = vadd.f32 %v5728_v3, %v5726_v2  ;;  %v1409_v3 = vadd.f32 %v5720_v38, %v5718_v37 }
 0x17b   : > { %v5800_v62 = vpop.f32.mrf.mxu1  ;;  %1913 = vmatmul.mubr.bf16.gmra.mxu1 %v7117_v45  ;;  %1729 = vmatprep.mubr.bf16.mxu0 %v7118_v56 }
 0x17c   : > { %1922 = vmatprep.mubr.bf16.mxu1 %v7119_v25  ;;  %v5806_v11 = vpop.f32.mrf.mxu0  ;;  %v1953_v37 = vmax.f32 %v1409_v3, 0.0 }
 0x17d   : > { %v5808_v4 = vpop.f32.mrf.mxu1 }
 0x17e   : > { %v5810_v5 = vpop.f32.mrf.mxu0 }
 0x17f   : > { %v5812_v6 = vpop.f32.mrf.mxu1 }
 0x180   : > { %v5814_v7 = vpop.f32.mrf.mxu0 }
 0x181   : > { %v5816_v52 = vpop.f32.mrf.mxu1 }
 0x182   : > { %v5818_v36 = vpop.f32.mrf.mxu0  ;;  %1730 = vmatmul.mubr.bf16.gmra.mxu0 %v5642_v26  ;;  %v1415_v26 = vadd.f32 %v5736_v33, %v5734_v30 }
 0x183   : > { %v5820_v31 = vpop.f32.mrf.mxu1  ;;  %1923 = vmatmul.mubr.bf16.gmra.mxu1 %v7120_v32  ;;  %1739 = vmatprep.mubr.bf16.mxu0 %v7121_v34  ;;  %v1954_v32 = vmax.f32 %v1411_v44, 0.0 }
 0x184   : > { %1932 = vmatprep.mubr.bf16.mxu1 %v7122_v35  ;;  %v5826_v0 = vpop.f32.mrf.mxu0  ;;  %v1958_v30 = vmax.f32 %v1415_v26, 0.0 }
 0x185   : > { %v5828_v1 = vpop.f32.mrf.mxu1 }
 0x186   : > { %v5830_v12 = vpop.f32.mrf.mxu0 }
 0x187   : > { %v5832_v41 = vpop.f32.mrf.mxu1 }
 0x188   : > { %v5834_v10 = vpop.f32.mrf.mxu0 }
 0x189   : > { %v5836_v29 = vpop.f32.mrf.mxu1 }
 0x18a   : > { %v5840_v40 = vpop.f32.mrf.mxu0  ;;  %1740 = vmatmul.mubr.bf16.gmra.mxu0 %v5662_v57  ;;  %v1413_v57 = vadd.f32 %v5732_v55, %v5730_v39  ;;  %v1421_v39 = vadd.f32 %v5748_v58, %v5746_v48 }
 0x18b   : > { %v5842_v18 = vpop.f32.mrf.mxu1  ;;  %1933 = vmatmul.mubr.bf16.gmra.mxu1 %v5664_v22  ;;  %1749 = vmatprep.mubr.bf16.mxu0 %v5666_v23  ;;  %v1425_v23 = vadd.f32 %v5756_v63, %v5754_v61 }
 0x18c   : > { %1942 = vmatprep.mubr.bf16.mxu1 %v5668_v24  ;;  %v5850_v45 = vpop.f32.mrf.mxu0  ;;  %v5866_v24 = vpack.c.bf16 %v1958_v30, %v1954_v32  ;;  %v1957_v55 = vmax.f32 %v1413_v57, 0.0  ;;  %v1962_v30 = vmax.f32 %v1421_v39, 0.0  ;;  %v4819_v57 = vld [vmem:[#allocation7 + $0xcc] ss:$16 sps:$4 sm:$0xff]  }
 0x18d   : > { %v5852_v56 = vpop.f32.mrf.mxu1  ;;  %v1966_v26 = vmax.f32 %v1425_v23, 0.0  ;;  %v1435_v23 = vadd.f32 %v5776_v15, %v5774_v14 }
 0x18e   : > { %v5854_v33 = vpop.f32.mrf.mxu0  ;;  %7123 = vst [vmem:[#allocation12_spill] sm:$0xff] %v5866_v24  ;;  %v5887_v32 = vpack.c.bf16 %v1957_v55, %v1953_v37 }
 0x18f   : > { %v5856_v25 = vpop.f32.mrf.mxu1  ;;  %v5897_v3 = vpack.c.bf16 %v1966_v26, %v1962_v30 }
 0x190   : > { %v5860_v22 = vpop.f32.mrf.mxu0  ;;  %7124 = vst [vmem:[#allocation13_spill] sm:$0xff] %v5887_v32 }
 0x191   : > { %v5862_v2 = vpop.f32.mrf.mxu1  ;;  %7125 = vst [vmem:[#allocation14_spill] sm:$0xff] %v5897_v3 }
 0x192   : > { %v5870_v34 = vpop.f32.mrf.mxu0  ;;  %1750 = vmatmul.mubr.bf16.gmra.mxu0 %v5678_v50  ;;  %v4814_v50 = vld [vmem:[#allocation7 + $0xe8] ss:$16 sps:$4 sm:$0xff]  }
 0x193   : > { %v5872_v35 = vpop.f32.mrf.mxu1  ;;  %1943 = vmatmul.mubr.bf16.gmra.mxu1 %v5680_v51  ;;  %2945 = vmatprep.mubr.bf16.mxu0 %v5866_v24  ;;  %v1423_v51 = vadd.f32 %v5752_v60, %v5750_v59  ;;  %v1419_v24 = vadd.f32 %v5740_v47, %v5738_v46  ;;  %v1431_v59 = vadd.f32 %v5768_v54, %v5766_v53  ;;  %v4817_v60 = vld [vmem:[#allocation7 + $0xc8] ss:$16 sps:$4 sm:$0xff]   ;;  %v4825_v46 = vld [vmem:[#allocation7 + $0xac] ss:$16 sps:$4 sm:$0xff]   ;;  %v1974_v47 = vmax.f32 %v1435_v23, 0.0 }
 0x194   : > { %v5879_v61 = vpop.f32.mrf.mxu0  ;;  %v4823_v53 = vld [vmem:[#allocation7 + $0xa8] ss:$16 sps:$4 sm:$0xff]  }
 0x195   : > { %v5881_v63 = vpop.f32.mrf.mxu1  ;;  %v1965_v37 = vmax.f32 %v1423_v51, 0.0  ;;  %v1961_v26 = vmax.f32 %v1419_v24, 0.0  ;;  %v1445_v24 = vadd.f32 %v5796_v42, %v5794_v21 }
 0x196   : > { %v5883_v38 = vpop.f32.mrf.mxu0 }
 0x197   : > { %v5885_v44 = vpop.f32.mrf.mxu1  ;;  %v5917_v54 = vpack.c.bf16 %v1965_v37, %v1961_v26 }
 0x198   : > { %v5891_v48 = vpop.f32.mrf.mxu0 }
 0x199   : > { %v5893_v58 = vpop.f32.mrf.mxu1  ;;  %7127 = vst [vmem:[#allocation16_spill] sm:$0xff] %v5917_v54 }
 0x19a   : > { %v5901_v39 = vpop.f32.mrf.mxu0  ;;  %2946 = vmatmul.mubr.bf16.vlgmr.msra.gmra.mxu0 %v5887_v32  ;;  %v1970_v32 = vmax.f32 %v1431_v59, 0.0  ;;  %v1429_v59 = vadd.f32 %v5760_v9, %v5758_v8  ;;  %v4834_v8 = vld [vmem:[#allocation7 + $0x6c] ss:$16 sps:$4 sm:$0xff]   ;;  %v1982_v9 = vmax.f32 %v1445_v24, 0.0  ;;  %v1455_v24 = vadd.f32 %v5816_v52, %v5814_v7 }
 0x19b   : > { %v5903_v55 = vpop.f32.mrf.mxu1  ;;  %2955 = vmatprep.mubr.bf16.mxu0 %v5897_v3  ;;  %3300 = vmatpush1.bf16.msra.mxu0 %v4814_v50  ;;  %v1433_v50 = vadd.f32 %v5772_v13, %v5770_v49  ;;  %v1441_v49 = vadd.f32 %v5788_v16, %v5786_v19  ;;  %v4826_v13 = vld [vmem:[#allocation7 + $0x88] ss:$16 sps:$4 sm:$0xff]  }
 0x19c   : > { %7126 = vst [vmem:[#allocation15_spill] sm:$0xff] %v5903_v55  ;;  %v5909_v14 = vpop.f32.mrf.mxu0  ;;  %3301 = vmatprep.subr.bf16.mxu0 %v4819_v57  ;;  %v4828_v57 = vld [vmem:[#allocation7 + $0x8c] ss:$16 sps:$4 sm:$0xff]   ;;  %v5927_v23 = vpack.c.bf16 %v1974_v47, %v1970_v32  ;;  %v1969_v32 = vmax.f32 %v1429_v59, 0.0  ;;  %v4832_v19 = vld [vmem:[#allocation7 + $0x68] ss:$16 sps:$4 sm:$0xff]  }
 0x19d   : > { %v5911_v15 = vpop.f32.mrf.mxu1 }
 0x19e   : > { %v5913_v30 = vpop.f32.mrf.mxu0  ;;  %7128 = vst [vmem:[#allocation17_spill] sm:$0xff] %v5927_v23 }
 0x19f   : > { %v5915_v55 = vpop.f32.mrf.mxu1  ;;  %3302 = vmatpush1.bf16.msra.mxu0 %v4817_v60 }
 0x1a0   : > { %v5921_v51 = vpop.f32.mrf.mxu0  ;;  %3303 = vmatprep.subr.bf16.mxu0 %v4825_v46  ;;  %v1973_v46 = vmax.f32 %v1433_v50, 0.0 }
 0x1a1   : > { %v5923_v3 = vpop.f32.mrf.mxu1 }
 0x1a2   : > { %v5931_v60 = vpop.f32.mrf.mxu0  ;;  %2956 = vmatmul.mubr.bf16.gmra.mxu0 %v5917_v54  ;;  %v1978_v54 = vmax.f32 %v1441_v49, 0.0  ;;  %v5947_v16 = vpack.c.bf16 %v1973_v46, %v1969_v32  ;;  %v1439_v49 = vadd.f32 %v5780_v28, %v5778_v27  ;;  %v4843_v27 = vld [vmem:[#allocation7 + $0x2c] ss:$16 sps:$4 sm:$0xff]   ;;  %v1990_v28 = vmax.f32 %v1455_v24, 0.0 }
 0x1a3   : > { %v5933_v37 = vpop.f32.mrf.mxu1  ;;  %2965 = vmatprep.mubr.bf16.mxu0 %v5927_v23  ;;  %3304 = vmatpush1.bf16.msra.mxu0 %v4823_v53  ;;  %v1443_v53 = vadd.f32 %v5792_v20, %v5790_v17  ;;  %v1451_v17 = vadd.f32 %v5808_v4, %v5806_v11  ;;  %v4835_v20 = vld [vmem:[#allocation7 + $0x48] ss:$16 sps:$4 sm:$0xff]   ;;  %v1465_v24 = vadd.f32 %v5836_v29, %v5834_v10 }
 0x1a4   : > { %v5939_v21 = vpop.f32.mrf.mxu0  ;;  %3305 = vmatprep.subr.bf16.mxu0 %v4828_v57  ;;  %7129 = vst [vmem:[#allocation18_spill] sm:$0xff] %v5947_v16  ;;  %v4837_v57 = vld [vmem:[#allocation7 + $0x4c] ss:$16 sps:$4 sm:$0xff]   ;;  %v5957_v59 = vpack.c.bf16 %v1982_v9, %v1978_v54  ;;  %v1977_v54 = vmax.f32 %v1439_v49, 0.0  ;;  %v4841_v11 = vld [vmem:[#allocation7 + $0x28] ss:$16 sps:$4 sm:$0xff]  }
 0x1a5   : > { %v5941_v42 = vpop.f32.mrf.mxu1 }
 0x1a6   : > { %v5943_v47 = vpop.f32.mrf.mxu0  ;;  %7130 = vst [vmem:[#allocation19_spill] sm:$0xff] %v5957_v59 }
 0x1a7   : > { %v5945_v26 = vpop.f32.mrf.mxu1  ;;  %3306 = vmatpush1.bf16.msra.mxu0 %v4826_v13 }
 0x1a8   : > { %v5951_v50 = vpop.f32.mrf.mxu0  ;;  %3307 = vmatprep.subr.bf16.mxu0 %v4834_v8  ;;  %v1981_v8 = vmax.f32 %v1443_v53, 0.0 }
 0x1a9   : > { %v5953_v23 = vpop.f32.mrf.mxu1 }
 0x1aa   : > { %v5961_v13 = vpop.f32.mrf.mxu0  ;;  %2966 = vmatmul.mubr.bf16.gmra.mxu0 %v5947_v16  ;;  %v1986_v16 = vmax.f32 %v1451_v17, 0.0  ;;  %v5977_v4 = vpack.c.bf16 %v1981_v8, %v1977_v54  ;;  %v1449_v17 = vadd.f32 %v5800_v62, %v5798_v43  ;;  %v4852_v43 = vld [vmem:[#allocation7 + $0x1ec] ss:$16 sps:$4 sm:$0xff]   ;;  %v1998_v62 = vmax.f32 %v1465_v24, 0.0 }
 0x1ab   : > { %v5963_v46 = vpop.f32.mrf.mxu1  ;;  %2975 = vmatprep.mubr.bf16.mxu0 %v5957_v59  ;;  %3308 = vmatpush1.bf16.msra.mxu0 %v4832_v19  ;;  %v1453_v19 = vadd.f32 %v5812_v6, %v5810_v5  ;;  %v1461_v5 = vadd.f32 %v5828_v1, %v5826_v0  ;;  %v4844_v6 = vld [vmem:[#allocation7 + $0x8] ss:$16 sps:$4 sm:$0xff]   ;;  %v1475_v24 = vadd.f32 %v5862_v2, %v5860_v22 }
 0x1ac   : > { %v5969_v7 = vpop.f32.mrf.mxu0  ;;  %3309 = vmatprep.subr.bf16.mxu0 %v4837_v57  ;;  %7131 = vst [vmem:[#allocation20_spill] sm:$0xff] %v5977_v4  ;;  %v4846_v57 = vld [vmem:[#allocation7 + $0xc] ss:$16 sps:$4 sm:$0xff]   ;;  %v5987_v49 = vpack.c.bf16 %v1990_v28, %v1986_v16  ;;  %v1985_v16 = vmax.f32 %v1449_v17, 0.0  ;;  %v4850_v0 = vld [vmem:[#allocation7 + $0x1e8] ss:$16 sps:$4 sm:$0xff]  }
 0x1ad   : > { %v5971_v52 = vpop.f32.mrf.mxu1 }
 0x1ae   : > { %v5973_v9 = vpop.f32.mrf.mxu0  ;;  %7132 = vst [vmem:[#allocation21_spill] sm:$0xff] %v5987_v49 }
 0x1af   : > { %v5975_v32 = vpop.f32.mrf.mxu1  ;;  %3310 = vmatpush1.bf16.msra.mxu0 %v4835_v20 }
 0x1b0   : > { %v5981_v53 = vpop.f32.mrf.mxu0  ;;  %3311 = vmatprep.subr.bf16.mxu0 %v4843_v27  ;;  %v1989_v27 = vmax.f32 %v1453_v19, 0.0 }
 0x1b1   : > { %v5983_v59 = vpop.f32.mrf.mxu1 }
 0x1b2   : > { %v5991_v20 = vpop.f32.mrf.mxu0  ;;  %2976 = vmatmul.mubr.bf16.gmra.mxu0 %v5977_v4  ;;  %v1994_v4 = vmax.f32 %v1461_v5, 0.0  ;;  %v6007_v1 = vpack.c.bf16 %v1989_v27, %v1985_v16  ;;  %v1459_v5 = vadd.f32 %v5820_v31, %v5818_v36  ;;  %v4861_v36 = vld [vmem:[#allocation7 + $0x1ac] ss:$16 sps:$4 sm:$0xff]   ;;  %v2006_v31 = vmax.f32 %v1475_v24, 0.0 }
 0x1b3   : > { %v5993_v8 = vpop.f32.mrf.mxu1  ;;  %2985 = vmatprep.mubr.bf16.mxu0 %v5987_v49  ;;  %3312 = vmatpush1.bf16.msra.mxu0 %v4841_v11  ;;  %v1463_v11 = vadd.f32 %v5832_v41, %v5830_v12  ;;  %v1471_v12 = vadd.f32 %v5852_v56, %v5850_v45  ;;  %v4853_v41 = vld [vmem:[#allocation7 + $0x1c8] ss:$16 sps:$4 sm:$0xff]   ;;  %v1485_v24 = vadd.f32 %v5893_v58, %v5891_v48 }
 0x1b4   : > { %v5999_v10 = vpop.f32.mrf.mxu0  ;;  %3313 = vmatprep.subr.bf16.mxu0 %v4846_v57  ;;  %7133 = vst [vmem:[#allocation22_spill] sm:$0xff] %v6007_v1  ;;  %v4855_v57 = vld [vmem:[#allocation7 + $0x1cc] ss:$16 sps:$4 sm:$0xff]   ;;  %v6017_v17 = vpack.c.bf16 %v1998_v62, %v1994_v4  ;;  %v1993_v4 = vmax.f32 %v1459_v5, 0.0  ;;  %v4859_v45 = vld [vmem:[#allocation7 + $0x1a8] ss:$16 sps:$4 sm:$0xff]  }
 0x1b5   : > { %v6001_v29 = vpop.f32.mrf.mxu1 }
 0x1b6   : > { %v6003_v28 = vpop.f32.mrf.mxu0  ;;  %7134 = vst [vmem:[#allocation23_spill] sm:$0xff] %v6017_v17 }
 0x1b7   : > { %v6005_v54 = vpop.f32.mrf.mxu1  ;;  %3314 = vmatpush1.bf16.msra.mxu0 %v4844_v6 }
 0x1b8   : > { %v6011_v19 = vpop.f32.mrf.mxu0  ;;  %3315 = vmatprep.subr.bf16.mxu0 %v4852_v43  ;;  %v1997_v43 = vmax.f32 %v1463_v11, 0.0 }
 0x1b9   : > { %v6013_v49 = vpop.f32.mrf.mxu1 }
 0x1ba   : > { %v6021_v6 = vpop.f32.mrf.mxu0  ;;  %2986 = vmatmul.mubr.bf16.gmra.mxu0 %v6007_v1  ;;  %v2002_v1 = vmax.f32 %v1471_v12, 0.0  ;;  %v6037_v56 = vpack.c.bf16 %v1997_v43, %v1993_v4  ;;  %v1469_v12 = vadd.f32 %v5842_v18, %v5840_v40  ;;  %v4870_v40 = vld [vmem:[#allocation7 + $0x16c] ss:$16 sps:$4 sm:$0xff]   ;;  %v2014_v18 = vmax.f32 %v1485_v24, 0.0 }
 0x1bb   : > { %v6023_v27 = vpop.f32.mrf.mxu1  ;;  %2995 = vmatprep.mubr.bf16.mxu0 %v6017_v17  ;;  %3316 = vmatpush2.bf16.msra.mxu0 %v4850_v0  ;;  %v1473_v0 = vadd.f32 %v5856_v25, %v5854_v33  ;;  %v1481_v33 = vadd.f32 %v5881_v63, %v5879_v61  ;;  %v4862_v25 = vld [vmem:[#allocation7 + $0x188] ss:$16 sps:$4 sm:$0xff]   ;;  %v1495_v24 = vadd.f32 %v5923_v3, %v5921_v51 }
 0x1bc   : > { %v6029_v22 = vpop.f32.mrf.mxu0  ;;  %3317 = vmatprep.subr.bf16.mxu0 %v4855_v57  ;;  %7135 = vst [vmem:[#allocation24_spill] sm:$0xff] %v6037_v56  ;;  %v4864_v57 = vld [vmem:[#allocation7 + $0x18c] ss:$16 sps:$4 sm:$0xff]   ;;  %v6047_v5 = vpack.c.bf16 %v2006_v31, %v2002_v1  ;;  %v2001_v1 = vmax.f32 %v1469_v12, 0.0  ;;  %v4868_v61 = vld [vmem:[#allocation7 + $0x168] ss:$16 sps:$4 sm:$0xff]  }
 0x1bd   : > { %v6031_v2 = vpop.f32.mrf.mxu1 }
 0x1be   : > { %v6033_v62 = vpop.f32.mrf.mxu0  ;;  %7136 = vst [vmem:[#allocation25_spill] sm:$0xff] %v6047_v5 }
 0x1bf   : > { %v6035_v16 = vpop.f32.mrf.mxu1  ;;  %3318 = vmatpush2.bf16.msra.mxu0 %v4853_v41 }
 0x1c0   : > { %v6041_v11 = vpop.f32.mrf.mxu0  ;;  %3319 = vmatprep.subr.bf16.mxu0 %v4861_v36  ;;  %v2005_v36 = vmax.f32 %v1473_v0, 0.0 }
 0x1c1   : > { %v6043_v17 = vpop.f32.mrf.mxu1 }
 0x1c2   : > { %v6051_v41 = vpop.f32.mrf.mxu0  ;;  %2996 = vmatmul.mubr.bf16.gmra.mxu0 %v6037_v56  ;;  %v2010_v56 = vmax.f32 %v1481_v33, 0.0  ;;  %v6067_v63 = vpack.c.bf16 %v2005_v36, %v2001_v1  ;;  %v1479_v33 = vadd.f32 %v5872_v35, %v5870_v34  ;;  %v4879_v34 = vld [vmem:[#allocation7 + $0x12c] ss:$16 sps:$4 sm:$0xff]   ;;  %v2022_v35 = vmax.f32 %v1495_v24, 0.0 }
 0x1c3   : > { %v6053_v43 = vpop.f32.mrf.mxu1  ;;  %3005 = vmatprep.mubr.bf16.mxu0 %v6047_v5  ;;  %3320 = vmatpush2.bf16.msra.mxu0 %v4859_v45  ;;  %v1483_v45 = vadd.f32 %v5885_v44, %v5883_v38  ;;  %v1491_v38 = vadd.f32 %v5911_v15, %v5909_v14  ;;  %v4871_v44 = vld [vmem:[#allocation7 + $0x148] ss:$16 sps:$4 sm:$0xff]   ;;  %v1505_v24 = vadd.f32 %v5953_v23, %v5951_v50 }
 0x1c4   : > { %v6059_v48 = vpop.f32.mrf.mxu0  ;;  %3321 = vmatprep.subr.bf16.mxu0 %v4864_v57  ;;  %7137 = vst [vmem:[#allocation26_spill] sm:$0xff] %v6067_v63  ;;  %v4873_v57 = vld [vmem:[#allocation7 + $0x14c] ss:$16 sps:$4 sm:$0xff]   ;;  %v6077_v12 = vpack.c.bf16 %v2014_v18, %v2010_v56  ;;  %v2009_v56 = vmax.f32 %v1479_v33, 0.0  ;;  %v4877_v14 = vld [vmem:[#allocation7 + $0x128] ss:$16 sps:$4 sm:$0xff]  }
 0x1c5   : > { %v6061_v58 = vpop.f32.mrf.mxu1 }
 0x1c6   : > { %v6063_v31 = vpop.f32.mrf.mxu0  ;;  %7138 = vst [vmem:[#allocation27_spill] sm:$0xff] %v6077_v12 }
 0x1c7   : > { %v6065_v4 = vpop.f32.mrf.mxu1  ;;  %3322 = vmatpush2.bf16.msra.mxu0 %v4862_v25 }
 0x1c8   : > { %v6071_v0 = vpop.f32.mrf.mxu0  ;;  %3323 = vmatprep.subr.bf16.mxu0 %v4870_v40  ;;  %v2013_v40 = vmax.f32 %v1483_v45, 0.0 }
 0x1c9   : > { %v6073_v5 = vpop.f32.mrf.mxu1 }
 0x1ca   : > { %v6081_v25 = vpop.f32.mrf.mxu0  ;;  %3006 = vmatmul.mubr.bf16.gmra.mxu0 %v6067_v63  ;;  %v2018_v63 = vmax.f32 %v1491_v38, 0.0  ;;  %v6097_v15 = vpack.c.bf16 %v2013_v40, %v2009_v56  ;;  %v7142_v38 = vld [vmem:[#allocation15_spill] sm:$0xff] }
 0x1cb   : > { %v6083_v36 = vpop.f32.mrf.mxu1  ;;  %3015 = vmatprep.mubr.bf16.mxu0 %v6077_v12  ;;  %3324 = vmatpush2.bf16.msra.mxu0 %v4868_v61  ;;  %v1493_v61 = vadd.f32 %v5915_v55, %v5913_v30  ;;  %v1501_v55 = vadd.f32 %v5941_v42, %v5939_v21  ;;  %v4880_v30 = vld [vmem:[#allocation7 + $0x108] ss:$16 sps:$4 sm:$0xff]   ;;  %v1503_v21 = vadd.f32 %v5945_v26, %v5943_v47 }
 0x1cc   : > { %7139 = vst [vmem:[#allocation28_spill] sm:$0xff] %v6083_v36  ;;  %v6089_v3 = vpop.f32.mrf.mxu0  ;;  %3325 = vmatprep.subr.bf16.mxu0 %v4873_v57  ;;  %7140 = vst [vmem:[#allocation29_spill] sm:$0xff] %v6097_v15  ;;  %v4882_v57 = vld [vmem:[#allocation7 + $0x10c] ss:$16 sps:$4 sm:$0xff]   ;;  %v6107_v33 = vpack.c.bf16 %v2022_v35, %v2018_v63 }
 0x1cd   : > { %v6091_v51 = vpop.f32.mrf.mxu1  ;;  %v2029_v47 = vmax.f32 %v1503_v21, 0.0 }
 0x1ce   : > { %v6093_v18 = vpop.f32.mrf.mxu0  ;;  %7141 = vst [vmem:[#allocation30_spill] sm:$0xff] %v6107_v33 }
 0x1cf   : > { %v6095_v1 = vpop.f32.mrf.mxu1  ;;  %3326 = vmatpush2.bf16.msra.mxu0 %v4871_v44  ;;  %v1489_v44 = vadd.f32 %v7142_v38, %v5901_v39  ;;  %v2030_v39 = vmax.f32 %v1505_v24, 0.0  ;;  %v2026_v38 = vmax.f32 %v1501_v55, 0.0  ;;  %v1499_v24 = vadd.f32 %v5933_v37, %v5931_v60 }
 0x1d0   : > { %v6101_v45 = vpop.f32.mrf.mxu0  ;;  %3327 = vmatprep.subr.bf16.mxu0 %v4879_v34  ;;  %v2021_v34 = vmax.f32 %v1493_v61, 0.0  ;;  %v1515_v61 = vadd.f32 %v5983_v59, %v5981_v53  ;;  %v1513_v37 = vadd.f32 %v5975_v32, %v5973_v9  ;;  %v1521_v9 = vadd.f32 %v6001_v29, %v5999_v10 }
 0x1d1   : > { %v6103_v12 = vpop.f32.mrf.mxu1  ;;  %v2017_v63 = vmax.f32 %v1489_v44, 0.0 }
 0x1d2   : > { %v6111_v36 = vpop.f32.mrf.mxu0  ;;  %3016 = vmatmul.mubr.bf16.gmra.mxu0 %v6097_v15 }
 0x1d3   : > { %7143 = vst [vmem:[#allocation15_spill] sm:$0xff] %v6111_v36  ;;  %v6113_v40 = vpop.f32.mrf.mxu1  ;;  %3025 = vmatprep.mubr.bf16.mxu0 %v6107_v33  ;;  %3328 = vmatpush2.bf16.msra.mxu0 %v4877_v14  ;;  %v6127_v15 = vpack.c.bf16 %v2021_v34, %v2017_v63  ;;  %v2038_v63 = vmax.f32 %v1515_v61, 0.0  ;;  %v2025_v33 = vmax.f32 %v1499_v24, 0.0  ;;  %v1509_v61 = vadd.f32 %v5963_v46, %v5961_v13  ;;  %v4829_v13 = vld [vmem:[#allocation7 + $0x2e8] ss:$16 sps:$4 sm:$0xff]  }
 0x1d4   : > { %7144 = vst [vmem:[#allocation31_spill] sm:$0xff] %v6113_v40  ;;  %v6119_v23 = vpop.f32.mrf.mxu0  ;;  %3329 = vmatprep.subr.bf16.mxu0 %v4882_v57  ;;  %v6137_v57 = vpack.c.bf16 %v2030_v39, %v2026_v38 }
 0x1d5   : > { %v6121_v50 = vpop.f32.mrf.mxu1  ;;  %7145 = vst [vmem:[#allocation32_spill] sm:$0xff] %v6127_v15  ;;  %v6145_v60 = vpack.c.bf16 %v2029_v47, %v2025_v33  ;;  %v2033_v46 = vmax.f32 %v1509_v61, 0.0 }
 0x1d6   : > { %v6123_v35 = vpop.f32.mrf.mxu0  ;;  %7146 = vst [vmem:[#allocation33_spill] sm:$0xff] %v6137_v57 }
 0x1d7   : > { %v6125_v56 = vpop.f32.mrf.mxu1  ;;  %3330 = vmatpush2.bf16.msra.mxu0 %v4880_v30  ;;  %v1511_v30 = vadd.f32 %v5971_v52, %v5969_v7  ;;  %v1525_v52 = vadd.f32 %v6013_v49, %v6011_v19 }
 0x1d8   : > { %v6131_v42 = vpop.f32.mrf.mxu0 }
 0x1d9   : > { %v6133_v14 = vpop.f32.mrf.mxu1  ;;  %v2034_v39 = vmax.f32 %v1511_v30, 0.0 }
 0x1da   : > { %v1601_v44 = vpop.f32.mrf.mxu0  ;;  %3026 = vmatmul.mubr.bf16.gmra.mxu0 %v6127_v15 }
 0x1db   : > { %v1794_v55 = vpop.f32.mrf.mxu1  ;;  %3035 = vmatprep.mubr.bf16.mxu0 %v6137_v57  ;;  %v6151_v57 = vpack.c.bf16 %v2038_v63, %v2034_v39 }
 0x1dc   : > { %v1603_v26 = vpop.f32.mrf.mxu0  ;;  %v1795_v15 = vadd.f32 %v1794_v55, %v1601_v44  ;;  %v2037_v44 = vmax.f32 %v1513_v37, 0.0  ;;  %v2046_v55 = vmax.f32 %v1525_v52, 0.0  ;;  %v1535_v52 = vadd.f32 %v6043_v17, %v6041_v11 }
 0x1dd   : > { %v1796_v34 = vpop.f32.mrf.mxu1 }
 0x1de   : > { %v1605_v59 = vpop.f32.mrf.mxu0  ;;  %v1797_v38 = vadd.f32 %v1796_v34, %v1603_v26  ;;  %v1955_v49 = vmax.f32 %v1795_v15, 0.0  ;;  %v6164_v39 = vpack.c.bf16 %v2037_v44, %v2033_v46  ;;  %v1523_v15 = vadd.f32 %v6005_v54, %v6003_v28  ;;  %v4849_v28 = vld [vmem:[#allocation7 + $0x2ac] ss:$16 sps:$4 sm:$0xff]  }
 0x1df   : > { %v1798_v53 = vpop.f32.mrf.mxu1  ;;  %v1531_v54 = vadd.f32 %v6031_v2, %v6029_v22  ;;  %v4858_v22 = vld [vmem:[#allocation7 + $0x28c] ss:$16 sps:$4 sm:$0xff]  }
 0x1e0   : > { %v1799_v40 = vadd.f32 %v1798_v53, %v1605_v59  ;;  %v1607_v36 = vpop.f32.mrf.mxu0  ;;  %v1956_v32 = vmax.f32 %v1797_v38, 0.0  ;;  %v4840_v59 = vld [vmem:[#allocation7 + $0x2cc] ss:$16 sps:$4 sm:$0xff]   ;;  %v2042_v53 = vmax.f32 %v1521_v9, 0.0  ;;  %v1519_v9 = vadd.f32 %v5993_v8, %v5991_v20  ;;  %v4847_v8 = vld [vmem:[#allocation7 + $0x2a8] ss:$16 sps:$4 sm:$0xff]  }
 0x1e1   : > { %v1800_v7 = vpop.f32.mrf.mxu1  ;;  %v2045_v11 = vmax.f32 %v1523_v15, 0.0  ;;  %v2050_v2 = vmax.f32 %v1531_v54, 0.0 }
 0x1e2   : > { %v1801_v21 = vadd.f32 %v1800_v7, %v1607_v36  ;;  %v1959_v24 = vmax.f32 %v1799_v40, 0.0  ;;  %v1611_v30 = vpop.f32.mrf.mxu0  ;;  %3036 = vmatmul.mubr.bf16.gmra.mxu0 %v6145_v60  ;;  %v6171_v61 = vpack.c.bf16 %v2046_v55, %v2042_v53  ;;  %v2041_v55 = vmax.f32 %v1519_v9, 0.0 }
 0x1e3   : > { %v1804_v26 = vpop.f32.mrf.mxu1  ;;  %3045 = vmatprep.mubr.bf16.mxu0 %v6151_v57 }
 0x1e4   : > { %v1960_v33 = vmax.f32 %v1801_v21, 0.0  ;;  %v1613_v19 = vpop.f32.mrf.mxu0  ;;  %v6161_v40 = vpack.c.bf16 %v1959_v24, %v1955_v49  ;;  %v1805_v38 = vadd.f32 %v1804_v26, %v1611_v30  ;;  %v4838_v24 = vld [vmem:[#allocation7 + $0x2c8] ss:$16 sps:$4 sm:$0xff]   ;;  %v6184_v53 = vpack.c.bf16 %v2045_v11, %v2041_v55 }
 0x1e5   : > { %v1806_v36 = vpop.f32.mrf.mxu1 }
 0x1e6   : > { %v6159_v47 = vpack.c.bf16 %v1960_v33, %v1956_v32  ;;  %v1615_v34 = vpop.f32.mrf.mxu0  ;;  %v1807_v10 = vadd.f32 %v1806_v36, %v1613_v19  ;;  %v1963_v26 = vmax.f32 %v1805_v38, 0.0  ;;  %v2054_v36 = vmax.f32 %v1535_v52, 0.0 }
 0x1e7   : > { %v1808_v63 = vpop.f32.mrf.mxu1 }
 0x1e8   : > { %v1809_v29 = vadd.f32 %v1808_v63, %v1615_v34  ;;  %3138 = vmatprep.mubr.bf16.mxu1 %v6159_v47  ;;  %v1617_v37 = vpop.f32.mrf.mxu0  ;;  %v1964_v30 = vmax.f32 %v1807_v10, 0.0  ;;  %v1533_v10 = vadd.f32 %v6035_v16, %v6033_v62  ;;  %v6191_v52 = vpack.c.bf16 %v2054_v36, %v2050_v2  ;;  %v4867_v62 = vld [vmem:[#allocation7 + $0x26c] ss:$16 sps:$4 sm:$0xff]  }
 0x1e9   : > { %v1810_v7 = vpop.f32.mrf.mxu1  ;;  %3139 = vmatmul.mubr.bf16.vlgmr.msra.gmra.mxu1 %v6161_v40  ;;  %v1541_v16 = vadd.f32 %v6061_v58, %v6059_v48  ;;  %v4876_v48 = vld [vmem:[#allocation7 + $0x24c] ss:$16 sps:$4 sm:$0xff]  }
 0x1ea   : > { %v1811_v21 = vadd.f32 %v1810_v7, %v1617_v37  ;;  %3493 = vmatpush1.bf16.msra.mxu1 %v4829_v13  ;;  %v1967_v32 = vmax.f32 %v1809_v29, 0.0  ;;  %v1621_v33 = vpop.f32.mrf.mxu0  ;;  %3046 = vmatmul.mubr.bf16.gmra.mxu0 %v6164_v39  ;;  %v1545_v37 = vadd.f32 %v6073_v5, %v6071_v0  ;;  %v2053_v0 = vmax.f32 %v1533_v10, 0.0 }
 0x1eb   : > { %v1814_v44 = vpop.f32.mrf.mxu1  ;;  %3494 = vmatprep.subr.bf16.mxu1 %v4840_v59  ;;  %3055 = vmatprep.mubr.bf16.mxu0 %v6171_v61  ;;  %v2058_v58 = vmax.f32 %v1541_v16, 0.0 }
 0x1ec   : > { %v1968_v17 = vmax.f32 %v1811_v21, 0.0  ;;  %v1623_v49 = vpop.f32.mrf.mxu0  ;;  %v6181_v13 = vpack.c.bf16 %v1967_v32, %v1963_v26  ;;  %v1815_v29 = vadd.f32 %v1814_v44, %v1621_v33  ;;  %v4856_v21 = vld [vmem:[#allocation7 + $0x288] ss:$16 sps:$4 sm:$0xff]  }
 0x1ed   : > { %v1816_v19 = vpop.f32.mrf.mxu1 }
 0x1ee   : > { %v6179_v20 = vpack.c.bf16 %v1968_v17, %v1964_v30  ;;  %3495 = vmatpush1.bf16.msra.mxu1 %v4838_v24  ;;  %v1625_v46 = vpop.f32.mrf.mxu0  ;;  %v1817_v63 = vadd.f32 %v1816_v19, %v1623_v49  ;;  %v1529_v24 = vadd.f32 %v6023_v27, %v6021_v6  ;;  %v1971_v44 = vmax.f32 %v1815_v29, 0.0  ;;  %v4865_v27 = vld [vmem:[#allocation7 + $0x268] ss:$16 sps:$4 sm:$0xff]  }
 0x1ef   : > { %v1818_v34 = vpop.f32.mrf.mxu1  ;;  %3496 = vmatprep.subr.bf16.mxu1 %v4849_v28  ;;  %v2062_v17 = vmax.f32 %v1545_v37, 0.0  ;;  %v4874_v29 = vld [vmem:[#allocation7 + $0x248] ss:$16 sps:$4 sm:$0xff]  }
 0x1f0   : > { %v1819_v59 = vadd.f32 %v1818_v34, %v1625_v46  ;;  %3148 = vmatprep.mubr.bf16.mxu1 %v6179_v20  ;;  %v1627_v15 = vpop.f32.mrf.mxu0  ;;  %v1972_v33 = vmax.f32 %v1817_v63, 0.0  ;;  %v2049_v11 = vmax.f32 %v1529_v24, 0.0  ;;  %v1543_v46 = vadd.f32 %v6065_v4, %v6063_v31  ;;  %v4885_v31 = vld [vmem:[#allocation7 + $0x22c] ss:$16 sps:$4 sm:$0xff]  }
 0x1f1   : > { %v1820_v38 = vpop.f32.mrf.mxu1  ;;  %3149 = vmatmul.mubr.bf16.gmra.mxu1 %v6181_v13  ;;  %v1555_v63 = vadd.f32 %v6103_v12, %v6101_v45  ;;  %v6211_v10 = vpack.c.bf16 %v2062_v17, %v2058_v58  ;;  %v1551_v4 = vadd.f32 %v6091_v51, %v6089_v3  ;;  %v4888_v3 = vld [vmem:[#allocation7 + $0x20c] ss:$16 sps:$4 sm:$0xff]   ;;  %v4886_v58 = vld [vmem:[#allocation7 + $0x208] ss:$16 sps:$4 sm:$0xff]  }
 0x1f2   : > { %v1821_v7 = vadd.f32 %v1820_v38, %v1627_v15  ;;  %3497 = vmatpush1.bf16.msra.mxu1 %v4847_v8  ;;  %v1975_v9 = vmax.f32 %v1819_v59, 0.0  ;;  %v1631_v32 = vpop.f32.mrf.mxu0  ;;  %3056 = vmatmul.mubr.bf16.gmra.mxu0 %v6184_v53  ;;  %v6204_v55 = vpack.c.bf16 %v2053_v0, %v2049_v11  ;;  %v1539_v15 = vadd.f32 %v6053_v43, %v6051_v41  ;;  %v4883_v43 = vld [vmem:[#allocation7 + $0x228] ss:$16 sps:$4 sm:$0xff]  }
 0x1f3   : > { %v1824_v28 = vpop.f32.mrf.mxu1  ;;  %3498 = vmatprep.subr.bf16.mxu1 %v4858_v22  ;;  %3065 = vmatprep.mubr.bf16.mxu0 %v6191_v52  ;;  %v2061_v45 = vmax.f32 %v1543_v46, 0.0  ;;  %v2066_v51 = vmax.f32 %v1551_v4, 0.0 }
 0x1f4   : > { %v1976_v5 = vmax.f32 %v1821_v7, 0.0  ;;  %v1633_v54 = vpop.f32.mrf.mxu0  ;;  %v6201_v26 = vpack.c.bf16 %v1975_v9, %v1971_v44  ;;  %v1825_v34 = vadd.f32 %v1824_v28, %v1631_v32  ;;  %v2070_v28 = vmax.f32 %v1555_v63, 0.0 }
 0x1f5   : > { %v1826_v30 = vpop.f32.mrf.mxu1 }
 0x1f6   : > { %v6199_v6 = vpack.c.bf16 %v1976_v5, %v1972_v33  ;;  %3499 = vmatpush1.bf16.msra.mxu1 %v4856_v21  ;;  %v1635_v49 = vpop.f32.mrf.mxu0  ;;  %v1827_v36 = vadd.f32 %v1826_v30, %v1633_v54  ;;  %v1979_v24 = vmax.f32 %v1825_v34, 0.0  ;;  %v1553_v30 = vadd.f32 %v6095_v1, %v6093_v18  ;;  %v4891_v18 = vld [vmem:[#allocation7 + $0x3ec] ss:$16 sps:$4 sm:$0xff]  }
 0x1f7   : > { %v1828_v19 = vpop.f32.mrf.mxu1  ;;  %3500 = vmatprep.subr.bf16.mxu1 %v4867_v62  ;;  %v2057_v62 = vmax.f32 %v1539_v15, 0.0  ;;  %v1561_v1 = vadd.f32 %v6121_v50, %v6119_v23  ;;  %v4894_v23 = vld [vmem:[#allocation7 + $0x3cc] ss:$16 sps:$4 sm:$0xff]  }
 0x1f8   : > { %v1829_v8 = vadd.f32 %v1828_v19, %v1635_v49  ;;  %3158 = vmatprep.mubr.bf16.mxu1 %v6199_v6  ;;  %v1637_v22 = vpop.f32.mrf.mxu0  ;;  %v1980_v21 = vmax.f32 %v1827_v36, 0.0  ;;  %v1565_v49 = vadd.f32 %v6133_v14, %v6131_v42  ;;  %v7147_v36 = vld [vmem:[#allocation28_spill] sm:$0xff]  ;;  %v2069_v14 = vmax.f32 %v1553_v30, 0.0 }
 0x1f9   : > { %v1830_v2 = vpop.f32.mrf.mxu1  ;;  %3159 = vmatmul.mubr.bf16.gmra.mxu1 %v6201_v26  ;;  %v6224_v54 = vpack.c.bf16 %v2061_v45, %v2057_v62  ;;  %v2074_v50 = vmax.f32 %v1561_v1, 0.0 }
 0x1fa   : > { %v1831_v59 = vadd.f32 %v1830_v2, %v1637_v22  ;;  %3501 = vmatpush1.bf16.msra.mxu1 %v4865_v27  ;;  %v1983_v38 = vmax.f32 %v1829_v8, 0.0  ;;  %v1641_v37 = vpop.f32.mrf.mxu0  ;;  %3066 = vmatmul.mubr.bf16.gmra.mxu0 %v6204_v55  ;;  %v1549_v8 = vadd.f32 %v7147_v36, %v6081_v25  ;;  %v2078_v15 = vmax.f32 %v1565_v49, 0.0  ;;  %v4895_v36 = vld [vmem:[#allocation7 + $0x3a8] ss:$16 sps:$4 sm:$0xff]  }
 0x1fb   : > { %v1834_v7 = vpop.f32.mrf.mxu1  ;;  %3502 = vmatprep.subr.bf16.mxu1 %v4876_v48  ;;  %3075 = vmatprep.mubr.bf16.mxu0 %v6211_v10  ;;  %v6231_v48 = vpack.c.bf16 %v2070_v28, %v2066_v51 }
 0x1fc   : > { %v1984_v12 = vmax.f32 %v1831_v59, 0.0  ;;  %v1643_v9 = vpop.f32.mrf.mxu0  ;;  %v6221_v16 = vpack.c.bf16 %v1983_v38, %v1979_v24  ;;  %v1835_v17 = vadd.f32 %v1834_v7, %v1641_v37  ;;  %v4889_v38 = vld [vmem:[#allocation7 + $0x3e8] ss:$16 sps:$4 sm:$0xff]   ;;  %v2065_v37 = vmax.f32 %v1549_v8, 0.0 }
 0x1fd   : > { %v1836_v32 = vpop.f32.mrf.mxu1  ;;  %v1563_v24 = vadd.f32 %v6125_v56, %v6123_v35  ;;  %v6249_v62 = vpack.c.bf16 %v2078_v15, %v2074_v50  ;;  %v4897_v35 = vld [vmem:[#allocation7 + $0x3ac] ss:$16 sps:$4 sm:$0xff]   ;;  %v4898_v15 = vld [vmem:[#allocation7 + $0x388] ss:$16 sps:$4 sm:$0xff]  }
 0x1fe   : > { %v6219_v41 = vpack.c.bf16 %v1984_v12, %v1980_v21  ;;  %3503 = vmatpush1.bf16.msra.mxu1 %v4874_v29  ;;  %v1645_v33 = vpop.f32.mrf.mxu0  ;;  %v1837_v0 = vadd.f32 %v1836_v32, %v1643_v9  ;;  %v1987_v63 = vmax.f32 %v1835_v17, 0.0  ;;  %v6244_v45 = vpack.c.bf16 %v2069_v14, %v2065_v37 }
 0x1ff   : > { %v1838_v5 = vpop.f32.mrf.mxu1  ;;  %3504 = vmatprep.subr.bf16.mxu1 %v4885_v31 }
 0x200   : > { %v1839_v44 = vadd.f32 %v1838_v5, %v1645_v33  ;;  %3168 = vmatprep.mubr.bf16.mxu1 %v6219_v41  ;;  %v1647_v27 = vpop.f32.mrf.mxu0  ;;  %v1988_v2 = vmax.f32 %v1837_v0, 0.0  ;;  %v4892_v33 = vld [vmem:[#allocation7 + $0x3c8] ss:$16 sps:$4 sm:$0xff]  }
 0x201   : > { %v1840_v11 = vpop.f32.mrf.mxu1  ;;  %3169 = vmatmul.mubr.bf16.gmra.mxu1 %v6221_v16  ;;  %v7148_v5 = vld [vmem:[#allocation15_spill] sm:$0xff] }
 0x202   : > { %v1841_v19 = vadd.f32 %v1840_v11, %v1647_v27  ;;  %3505 = vmatpush1.bf16.msra.mxu1 %v4883_v43  ;;  %v1991_v46 = vmax.f32 %v1839_v44, 0.0  ;;  %v1651_v34 = vpop.f32.mrf.mxu0  ;;  %3076 = vmatmul.mubr.bf16.gmra.mxu0 %v6224_v54  ;;  %v2077_v27 = vmax.f32 %v1563_v24, 0.0 }
 0x203   : > { %v1844_v22 = vpop.f32.mrf.mxu1  ;;  %3506 = vmatprep.subr.bf16.mxu1 %v4888_v3  ;;  %3085 = vmatprep.mubr.bf16.mxu0 %v6231_v48  ;;  %v7149_v3 = vld [vmem:[#allocation31_spill] sm:$0xff] }
 0x204   : > { %v1992_v42 = vmax.f32 %v1841_v19, 0.0  ;;  %v1653_v59 = vpop.f32.mrf.mxu0  ;;  %v6241_v7 = vpack.c.bf16 %v1991_v46, %v1987_v63  ;;  %v1845_v9 = vadd.f32 %v1844_v22, %v1651_v34  ;;  %v1559_v51 = vadd.f32 %v7149_v3, %v7148_v5  ;;  %v4906_v3 = vld [vmem:[#allocation7 + $0x34c] ss:$16 sps:$4 sm:$0xff]  }
 0x205   : > { %v1846_v29 = vpop.f32.mrf.mxu1 }
 0x206   : > { %v6239_v25 = vpack.c.bf16 %v1992_v42, %v1988_v2  ;;  %3507 = vmatpush1.bf16.msra.mxu1 %v4886_v58  ;;  %v1655_v31 = vpop.f32.mrf.mxu0  ;;  %v1847_v21 = vadd.f32 %v1846_v29, %v1653_v59  ;;  %v1995_v11 = vmax.f32 %v1845_v9, 0.0  ;;  %v2073_v8 = vmax.f32 %v1559_v51, 0.0 }
 0x207   : > { %v1848_v4 = vpop.f32.mrf.mxu1  ;;  %3508 = vmatprep.subr.bf16.mxu1 %v4891_v18  ;;  %v4900_v18 = vld [vmem:[#allocation7 + $0x38c] ss:$16 sps:$4 sm:$0xff]  }
 0x208   : > { %v1849_v12 = vadd.f32 %v1848_v4, %v1655_v31  ;;  %3178 = vmatprep.mubr.bf16.mxu1 %v6239_v25  ;;  %v1657_v32 = vpop.f32.mrf.mxu0  ;;  %v1996_v56 = vmax.f32 %v1847_v21, 0.0  ;;  %v6260_v42 = vpack.c.bf16 %v2077_v27, %v2073_v8  ;;  %v4903_v4 = vld [vmem:[#allocation7 + $0x36c] ss:$16 sps:$4 sm:$0xff]   ;;  %v7150_v21 = vld [vmem:[#allocation12_spill] sm:$0xff] }
 0x209   : > { %v1850_v28 = vpop.f32.mrf.mxu1  ;;  %3179 = vmatmul.mubr.bf16.gmra.mxu1 %v6241_v7 }
 0x20a   : > { %v1851_v43 = vadd.f32 %v1850_v28, %v1657_v32  ;;  %3509 = vmatpush2.bf16.msra.mxu1 %v4889_v38  ;;  %v1999_v0 = vmax.f32 %v1849_v12, 0.0  ;;  %v1661_v44 = vpop.f32.mrf.mxu0  ;;  %3086 = vmatmul.mubr.bf16.gmra.mxu0 %v6244_v45  ;;  %v4901_v28 = vld [vmem:[#allocation7 + $0x368] ss:$16 sps:$4 sm:$0xff]  }
 0x20b   : > { %v1854_v30 = vpop.f32.mrf.mxu1  ;;  %3510 = vmatprep.subr.bf16.mxu1 %v4894_v23  ;;  %3095 = vmatprep.mubr.bf16.mxu0 %v6249_v62 }
 0x20c   : > { %v2000_v17 = vmax.f32 %v1851_v43, 0.0  ;;  %v1663_v49 = vpop.f32.mrf.mxu0  ;;  %v6257_v46 = vpack.c.bf16 %v1999_v0, %v1995_v11  ;;  %v1855_v14 = vadd.f32 %v1854_v30, %v1661_v44 }
 0x20d   : > { %v1856_v19 = vpop.f32.mrf.mxu1 }
 0x20e   : > { %v6255_v58 = vpack.c.bf16 %v2000_v17, %v1996_v56  ;;  %3511 = vmatpush2.bf16.msra.mxu1 %v4892_v33  ;;  %v1665_v34 = vpop.f32.mrf.mxu0  ;;  %v1857_v1 = vadd.f32 %v1856_v19, %v1663_v49  ;;  %v2003_v12 = vmax.f32 %v1855_v14, 0.0  ;;  %v4904_v17 = vld [vmem:[#allocation7 + $0x348] ss:$16 sps:$4 sm:$0xff]  }
 0x20f   : > { %v1858_v22 = vpop.f32.mrf.mxu1  ;;  %3512 = vmatprep.subr.bf16.mxu1 %v4897_v35  ;;  %v7151_v19 = vld [vmem:[#allocation13_spill] sm:$0xff] }
 0x210   : > { %v1859_v2 = vadd.f32 %v1858_v22, %v1665_v34  ;;  %3188 = vmatprep.mubr.bf16.mxu1 %v6255_v58  ;;  %v1667_v63 = vpop.f32.mrf.mxu0  ;;  %v2004_v23 = vmax.f32 %v1857_v1, 0.0  ;;  %v7152_v22 = vld [vmem:[#allocation14_spill] sm:$0xff] }
 0x211   : > { %v1860_v59 = vpop.f32.mrf.mxu1  ;;  %3189 = vmatmul.mubr.bf16.gmra.mxu1 %v6257_v46 }
 0x212   : > { %v1861_v29 = vadd.f32 %v1860_v59, %v1667_v63  ;;  %3513 = vmatpush2.bf16.msra.mxu1 %v4895_v36  ;;  %v2007_v38 = vmax.f32 %v1859_v2, 0.0  ;;  %v1671_v37 = vpop.f32.mrf.mxu0  ;;  %3096 = vmatmul.mubr.bf16.gmra.mxu0 %v6260_v42  ;;  %v4909_v36 = vld [vmem:[#allocation7 + $0x32c] ss:$16 sps:$4 sm:$0xff]   ;;  %v4907_v63 = vld [vmem:[#allocation7 + $0x328] ss:$16 sps:$4 sm:$0xff]  }
 0x213   : > { %v1864_v31 = vpop.f32.mrf.mxu1  ;;  %3514 = vmatprep.subr.bf16.mxu1 %v4900_v18  ;;  %3331 = vmatprep.mubr.bf16.mxu0 %v7150_v21 }
 0x214   : > { %v2008_v50 = vmax.f32 %v1861_v29, 0.0  ;;  %v1673_v24 = vpop.f32.mrf.mxu0  ;;  %v6267_v43 = vpack.c.bf16 %v2007_v38, %v2003_v12  ;;  %v1865_v44 = vadd.f32 %v1864_v31, %v1671_v37  ;;  %v4912_v38 = vld [vmem:[#allocation7 + $0x30c] ss:$16 sps:$4 sm:$0xff]   ;;  %v4910_v12 = vld [vmem:[#allocation7 + $0x308] ss:$16 sps:$4 sm:$0xff]  }
 0x215   : > { %v1866_v9 = vpop.f32.mrf.mxu1 }
 0x216   : > { %v6265_v32 = vpack.c.bf16 %v2008_v50, %v2004_v23  ;;  %3515 = vmatpush2.bf16.msra.mxu1 %v4898_v15  ;;  %v1675_v33 = vpop.f32.mrf.mxu0  ;;  %v1867_v51 = vadd.f32 %v1866_v9, %v1673_v24  ;;  %v2011_v18 = vmax.f32 %v1865_v44, 0.0 }
 0x217   : > { %v1868_v5 = vpop.f32.mrf.mxu1  ;;  %3516 = vmatprep.subr.bf16.mxu1 %v4903_v4 }
 0x218   : > { %v1869_v0 = vadd.f32 %v1868_v5, %v1675_v33  ;;  %3198 = vmatprep.mubr.bf16.mxu1 %v6265_v32  ;;  %v1677_v30 = vpop.f32.mrf.mxu0  ;;  %v2012_v8 = vmax.f32 %v1867_v51, 0.0  ;;  %v7153_v33 = vld [vmem:[#allocation16_spill] sm:$0xff]  ;;  %v7154_v51 = vld [vmem:[#allocation17_spill] sm:$0xff] }
 0x219   : > { %v1870_v35 = vpop.f32.mrf.mxu1  ;;  %3199 = vmatmul.mubr.bf16.gmra.mxu1 %v6267_v43 }
 0x21a   : > { %v1871_v56 = vadd.f32 %v1870_v35, %v1677_v30  ;;  %3517 = vmatpush2.bf16.msra.mxu1 %v4901_v28  ;;  %v2015_v27 = vmax.f32 %v1869_v0, 0.0  ;;  %v1681_v11 = vpop.f32.mrf.mxu0  ;;  %3332 = vmatmul.mubr.bf16.vlgmr.msra.gmra.mxu0 %v7151_v19 }
 0x21b   : > { %v1874_v49 = vpop.f32.mrf.mxu1  ;;  %3518 = vmatprep.subr.bf16.mxu1 %v4906_v3  ;;  %3341 = vmatprep.mubr.bf16.mxu0 %v7152_v22 }
 0x21c   : > { %v2016_v34 = vmax.f32 %v1871_v56, 0.0  ;;  %v1683_v1 = vpop.f32.mrf.mxu0  ;;  %v6275_v59 = vpack.c.bf16 %v2015_v27, %v2011_v18  ;;  %v1875_v4 = vadd.f32 %v1874_v49, %v1681_v11 }
 0x21d   : > { %v1876_v2 = vpop.f32.mrf.mxu1 }
 0x21e   : > { %v6273_v14 = vpack.c.bf16 %v2016_v34, %v2012_v8  ;;  %3519 = vmatpush2.bf16.msra.mxu1 %v4904_v17  ;;  %v1685_v29 = vpop.f32.mrf.mxu0  ;;  %v1877_v37 = vadd.f32 %v1876_v2, %v1683_v1  ;;  %v2019_v0 = vmax.f32 %v1875_v4, 0.0  ;;  %v7155_v2 = vld [vmem:[#allocation18_spill] sm:$0xff] }
 0x21f   : > { %v1878_v15 = vpop.f32.mrf.mxu1  ;;  %3520 = vmatprep.subr.bf16.mxu1 %v4909_v36 }
 0x220   : > { %v1879_v31 = vadd.f32 %v1878_v15, %v1685_v29  ;;  %3208 = vmatprep.mubr.bf16.mxu1 %v6273_v14  ;;  %v1687_v23 = vpop.f32.mrf.mxu0  ;;  %v2020_v5 = vmax.f32 %v1877_v37, 0.0  ;;  %v7156_v15 = vld [vmem:[#allocation19_spill] sm:$0xff] }
 0x221   : > { %v1880_v50 = vpop.f32.mrf.mxu1  ;;  %3209 = vmatmul.mubr.bf16.gmra.mxu1 %v6275_v59 }
 0x222   : > { %v1881_v21 = vadd.f32 %v1880_v50, %v1687_v23  ;;  %3521 = vmatpush2.bf16.msra.mxu1 %v4907_v63  ;;  %v2023_v24 = vmax.f32 %v1879_v31, 0.0  ;;  %v1691_v9 = vpop.f32.mrf.mxu0  ;;  %3342 = vmatmul.mubr.bf16.gmra.mxu0 %v7153_v33 }
 0x223   : > { %v1884_v28 = vpop.f32.mrf.mxu1  ;;  %3522 = vmatprep.subr.bf16.mxu1 %v4912_v38  ;;  %3351 = vmatprep.mubr.bf16.mxu0 %v7154_v51 }
 0x224   : > { %v2024_v3 = vmax.f32 %v1881_v21, 0.0  ;;  %v1693_v44 = vpop.f32.mrf.mxu0  ;;  %v6283_v56 = vpack.c.bf16 %v2023_v24, %v2019_v0  ;;  %v1885_v19 = vadd.f32 %v1884_v28, %v1691_v9 }
 0x225   : > { %v1886_v30 = vpop.f32.mrf.mxu1 }
 0x226   : > { %v6281_v35 = vpack.c.bf16 %v2024_v3, %v2020_v5  ;;  %3523 = vmatpush2.bf16.msra.mxu1 %v4910_v12  ;;  %v1695_v17 = vpop.f32.mrf.mxu0  ;;  %v1887_v11 = vadd.f32 %v1886_v30, %v1693_v44  ;;  %v2027_v38 = vmax.f32 %v1885_v19, 0.0  ;;  %v7157_v44 = vld [vmem:[#allocation20_spill] sm:$0xff] }
 0x227   : > { %v1888_v27 = vpop.f32.mrf.mxu1 }
 0x228   : > { %v1889_v49 = vadd.f32 %v1888_v27, %v1695_v17  ;;  %3218 = vmatprep.mubr.bf16.mxu1 %v6281_v35  ;;  %v1697_v36 = vpop.f32.mrf.mxu0  ;;  %v2028_v63 = vmax.f32 %v1887_v11, 0.0  ;;  %v7158_v27 = vld [vmem:[#allocation21_spill] sm:$0xff] }
 0x229   : > { %v1890_v8 = vpop.f32.mrf.mxu1  ;;  %3219 = vmatmul.mubr.bf16.gmra.mxu1 %v6283_v56 }
 0x22a   : > { %v1891_v34 = vadd.f32 %v1890_v8, %v1697_v36  ;;  %v2031_v22 = vmax.f32 %v1889_v49, 0.0  ;;  %v1701_v18 = vpop.f32.mrf.mxu0  ;;  %3352 = vmatmul.mubr.bf16.gmra.mxu0 %v7155_v2 }
 0x22b   : > { %v1894_v1 = vpop.f32.mrf.mxu1  ;;  %3361 = vmatprep.mubr.bf16.mxu0 %v7156_v15 }
 0x22c   : > { %v2032_v29 = vmax.f32 %v1891_v34, 0.0  ;;  %v1703_v37 = vpop.f32.mrf.mxu0  ;;  %v6291_v23 = vpack.c.bf16 %v2031_v22, %v2027_v38  ;;  %v1895_v9 = vadd.f32 %v1894_v1, %v1701_v18 }
 0x22d   : > { %v1896_v31 = vpop.f32.mrf.mxu1 }
 0x22e   : > { %v6289_v4 = vpack.c.bf16 %v2032_v29, %v2028_v63  ;;  %v1705_v50 = vpop.f32.mrf.mxu0  ;;  %v1897_v12 = vadd.f32 %v1896_v31, %v1703_v37  ;;  %v2035_v11 = vmax.f32 %v1895_v9, 0.0 }
 0x22f   : > { %v1898_v21 = vpop.f32.mrf.mxu1 }
 0x230   : > { %v1899_v24 = vadd.f32 %v1898_v21, %v1705_v50  ;;  %3228 = vmatprep.mubr.bf16.mxu1 %v6289_v4  ;;  %v1707_v28 = vpop.f32.mrf.mxu0  ;;  %v2036_v30 = vmax.f32 %v1897_v12, 0.0  ;;  %v7159_v50 = vld [vmem:[#allocation22_spill] sm:$0xff] }
 0x231   : > { %v1900_v33 = vpop.f32.mrf.mxu1  ;;  %3229 = vmatmul.mubr.bf16.gmra.mxu1 %v6291_v23 }
 0x232   : > { %v1901_v5 = vadd.f32 %v1900_v33, %v1707_v28  ;;  %v2039_v3 = vmax.f32 %v1899_v24, 0.0  ;;  %v1711_v51 = vpop.f32.mrf.mxu0  ;;  %3362 = vmatmul.mubr.bf16.gmra.mxu0 %v7157_v44  ;;  %v7160_v24 = vld [vmem:[#allocation23_spill] sm:$0xff] }
 0x233   : > { %v1904_v0 = vpop.f32.mrf.mxu1  ;;  %3371 = vmatprep.mubr.bf16.mxu0 %v7158_v27 }
 0x234   : > { %v2040_v17 = vmax.f32 %v1901_v5, 0.0  ;;  %v1713_v49 = vpop.f32.mrf.mxu0  ;;  %v6299_v8 = vpack.c.bf16 %v2039_v3, %v2035_v11  ;;  %v1905_v2 = vadd.f32 %v1904_v0, %v1711_v51 }
 0x235   : > { %v1906_v19 = vpop.f32.mrf.mxu1 }
 0x236   : > { %v6297_v36 = vpack.c.bf16 %v2040_v17, %v2036_v30  ;;  %v1715_v34 = vpop.f32.mrf.mxu0  ;;  %v1907_v18 = vadd.f32 %v1906_v19, %v1713_v49  ;;  %v2043_v9 = vmax.f32 %v1905_v2, 0.0 }
 0x237   : > { %v1908_v22 = vpop.f32.mrf.mxu1 }
 0x238   : > { %v1909_v1 = vadd.f32 %v1908_v22, %v1715_v34  ;;  %3238 = vmatprep.mubr.bf16.mxu1 %v6297_v36  ;;  %v1717_v63 = vpop.f32.mrf.mxu0  ;;  %v2044_v21 = vmax.f32 %v1907_v18, 0.0  ;;  %v7161_v18 = vld [vmem:[#allocation24_spill] sm:$0xff] }
 0x239   : > { %v1910_v29 = vpop.f32.mrf.mxu1  ;;  %3239 = vmatmul.mubr.bf16.gmra.mxu1 %v6299_v8 }
 0x23a   : > { %v1911_v15 = vadd.f32 %v1910_v29, %v1717_v63  ;;  %v2047_v38 = vmax.f32 %v1909_v1, 0.0  ;;  %v1721_v37 = vpop.f32.mrf.mxu0  ;;  %3372 = vmatmul.mubr.bf16.gmra.mxu0 %v7159_v50  ;;  %v7162_v63 = vld [vmem:[#allocation25_spill] sm:$0xff] }
 0x23b   : > { %v1914_v31 = vpop.f32.mrf.mxu1  ;;  %3381 = vmatprep.mubr.bf16.mxu0 %v7160_v24 }
 0x23c   : > { %v2048_v12 = vmax.f32 %v1911_v15, 0.0  ;;  %v1723_v28 = vpop.f32.mrf.mxu0  ;;  %v6307_v3 = vpack.c.bf16 %v2047_v38, %v2043_v9  ;;  %v1915_v17 = vadd.f32 %v1914_v31, %v1721_v37 }
 0x23d   : > { %v1916_v33 = vpop.f32.mrf.mxu1 }
 0x23e   : > { %v6305_v5 = vpack.c.bf16 %v2048_v12, %v2044_v21  ;;  %v1725_v51 = vpop.f32.mrf.mxu0  ;;  %v1917_v44 = vadd.f32 %v1916_v33, %v1723_v28  ;;  %v2051_v29 = vmax.f32 %v1915_v17, 0.0  ;;  %v7163_v17 = vld [vmem:[#allocation26_spill] sm:$0xff] }
 0x23f   : > { %v1918_v0 = vpop.f32.mrf.mxu1 }
 0x240   : > { %v1919_v30 = vadd.f32 %v1918_v0, %v1725_v51  ;;  %3248 = vmatprep.mubr.bf16.mxu1 %v6305_v5  ;;  %v1727_v27 = vpop.f32.mrf.mxu0  ;;  %v2052_v1 = vmax.f32 %v1917_v44, 0.0 }
 0x241   : > { %v1920_v11 = vpop.f32.mrf.mxu1  ;;  %3249 = vmatmul.mubr.bf16.gmra.mxu1 %v6307_v3 }
 0x242   : > { %v1921_v49 = vadd.f32 %v1920_v11, %v1727_v27  ;;  %v2055_v19 = vmax.f32 %v1919_v30, 0.0  ;;  %v1731_v34 = vpop.f32.mrf.mxu0  ;;  %3382 = vmatmul.mubr.bf16.gmra.mxu0 %v7161_v18 }
 0x243   : > { %v1924_v22 = vpop.f32.mrf.mxu1  ;;  %3391 = vmatprep.mubr.bf16.mxu0 %v7162_v63 }
 0x244   : > { %v2056_v2 = vmax.f32 %v1921_v49, 0.0  ;;  %v1733_v15 = vpop.f32.mrf.mxu0  ;;  %v6315_v37 = vpack.c.bf16 %v2055_v19, %v2051_v29  ;;  %v1925_v9 = vadd.f32 %v1924_v22, %v1731_v34  ;;  %v7164_v49 = vld [vmem:[#allocation27_spill] sm:$0xff] }
 0x245   : > { %v1926_v38 = vpop.f32.mrf.mxu1 }
 0x246   : > { %v6313_v50 = vpack.c.bf16 %v2056_v2, %v2052_v1  ;;  %v1735_v31 = vpop.f32.mrf.mxu0  ;;  %v1927_v12 = vadd.f32 %v1926_v38, %v1733_v15  ;;  %v2059_v19 = vmax.f32 %v1925_v9, 0.0 }
 0x247   : > { %v1928_v21 = vpop.f32.mrf.mxu1 }
 0x248   : > { %v1929_v24 = vadd.f32 %v1928_v21, %v1735_v31  ;;  %3258 = vmatprep.mubr.bf16.mxu1 %v6313_v50  ;;  %v1737_v28 = vpop.f32.mrf.mxu0  ;;  %v2060_v27 = vmax.f32 %v1927_v12, 0.0 }
 0x249   : > { %v1930_v33 = vpop.f32.mrf.mxu1  ;;  %3259 = vmatmul.mubr.bf16.gmra.mxu1 %v6315_v37 }
 0x24a   : > { %v1931_v51 = vadd.f32 %v1930_v33, %v1737_v28  ;;  %v2063_v0 = vmax.f32 %v1929_v24, 0.0  ;;  %v1741_v44 = vpop.f32.mrf.mxu0  ;;  %3392 = vmatmul.mubr.bf16.gmra.mxu0 %v7163_v17  ;;  %v7165_v33 = vld [vmem:[#allocation29_spill] sm:$0xff]  ;;  %v7166_v17 = vld [vmem:[#allocation30_spill] sm:$0xff] }
 0x24b   : > { %v1934_v30 = vpop.f32.mrf.mxu1  ;;  %3401 = vmatprep.mubr.bf16.mxu0 %v7164_v49 }
 0x24c   : > { %v2064_v11 = vmax.f32 %v1931_v51, 0.0  ;;  %v1743_v18 = vpop.f32.mrf.mxu0  ;;  %v6323_v34 = vpack.c.bf16 %v2063_v0, %v2059_v19  ;;  %v1935_v38 = vadd.f32 %v1934_v30, %v1741_v44 }
 0x24d   : > { %v1936_v1 = vpop.f32.mrf.mxu1 }
 0x24e   : > { %v6321_v2 = vpack.c.bf16 %v2064_v11, %v2060_v27  ;;  %v1745_v22 = vpop.f32.mrf.mxu0  ;;  %v1937_v29 = vadd.f32 %v1936_v1, %v1743_v18  ;;  %v2067_v27 = vmax.f32 %v1935_v38, 0.0 }
 0x24f   : > { %v1938_v63 = vpop.f32.mrf.mxu1 }
 0x250   : > { %v1939_v15 = vadd.f32 %v1938_v63, %v1745_v22  ;;  %3268 = vmatprep.mubr.bf16.mxu1 %v6321_v2  ;;  %v1747_v31 = vpop.f32.mrf.mxu0  ;;  %v2068_v51 = vmax.f32 %v1937_v29, 0.0 }
 0x251   : > { %v1940_v21 = vpop.f32.mrf.mxu1  ;;  %3269 = vmatmul.mubr.bf16.gmra.mxu1 %v6323_v34 }
 0x252   : > { %v1941_v12 = vadd.f32 %v1940_v21, %v1747_v31  ;;  %v2071_v24 = vmax.f32 %v1939_v15, 0.0  ;;  %v1751_v9 = vpop.f32.mrf.mxu0  ;;  %3402 = vmatmul.mubr.bf16.gmra.mxu0 %v7165_v33 }
 0x253   : > { %v1944_v28 = vpop.f32.mrf.mxu1  ;;  %3411 = vmatprep.mubr.bf16.mxu0 %v7166_v17 }
 0x254   : > { %v2072_v0 = vmax.f32 %v1941_v12, 0.0  ;;  %v1753_v11 = vpop.f32.mrf.mxu0  ;;  %v6331_v44 = vpack.c.bf16 %v2071_v24, %v2067_v27  ;;  %v1945_v63 = vadd.f32 %v1944_v28, %v1751_v9  ;;  %v7167_v12 = vld [vmem:[#allocation32_spill] sm:$0xff] }
 0x255   : > { %v1946_v49 = vpop.f32.mrf.mxu1 }
 0x256   : > { %v6329_v19 = vpack.c.bf16 %v2072_v0, %v2068_v51  ;;  %v1755_v30 = vpop.f32.mrf.mxu0  ;;  %v1947_v1 = vadd.f32 %v1946_v49, %v1753_v11  ;;  %v7168_v51 = vld [vmem:[#allocation33_spill] sm:$0xff]  ;;  %v2075_v0 = vmax.f32 %v1945_v63, 0.0 }
 0x257   : > { %v1948_v18 = vpop.f32.mrf.mxu1 }
 0x258   : > { %v1949_v22 = vadd.f32 %v1948_v18, %v1755_v30  ;;  %3278 = vmatprep.mubr.bf16.mxu1 %v6329_v19  ;;  %v1757_v15 = vpop.f32.mrf.mxu0  ;;  %v2076_v33 = vmax.f32 %v1947_v1, 0.0 }
 0x259   : > { %v1950_v31 = vpop.f32.mrf.mxu1  ;;  %3279 = vmatmul.mubr.bf16.gmra.mxu1 %v6331_v44 }
 0x25a   : > { %v1951_v29 = vadd.f32 %v1950_v31, %v1757_v15  ;;  %v2079_v21 = vmax.f32 %v1949_v22, 0.0  ;;  %v6335_v38 = vpop.f32.mrf.mxu0  ;;  %3412 = vmatmul.mubr.bf16.gmra.mxu0 %v7167_v12 }
 0x25b   : > { %3421 = vmatprep.mubr.bf16.mxu0 %v7168_v51 }
 0x25c   : > { %v2080_v24 = vmax.f32 %v1951_v29, 0.0  ;;  %v6339_v17 = vpop.f32.mrf.mxu0  ;;  %v6343_v9 = vpack.c.bf16 %v2079_v21, %v2075_v0  ;;  %v4913_v0 = vld [vmem:[%s5354_s6] sm:$0xff] }
 0x25e   : > { %v6341_v27 = vpack.c.bf16 %v2080_v24, %v2076_v33  ;;  %v6345_v28 = vpop.f32.mrf.mxu0 }
 0x260   : > { %3288 = vmatprep.mubr.bf16.mxu1 %v6341_v27  ;;  %v6348_v11 = vpop.f32.mrf.mxu0 }
 0x261   : > { %3289 = vmatmul.mubr.bf16.gmra.mxu1 %v6343_v9 }
 0x262   : > { %3524 = vmatprep.mubr.bf16.mxu1 %v6159_v47  ;;  %v6352_v49 = vpop.f32.mrf.mxu0  ;;  %3422 = vmatmul.mubr.bf16.gmra.mxu0 %v6145_v60 }
 0x263   : > { %3431 = vmatprep.mubr.bf16.mxu0 %v6151_v57 }
 0x264   : > { %v6356_v30 = vpop.f32.mrf.mxu0 }
 0x266   : > { %v6358_v18 = vpop.f32.mrf.mxu0 }
 0x268   : > { %v6360_v1 = vpop.f32.mrf.mxu0 }
 0x269   : > { %3525 = vmatmul.mubr.bf16.vlgmr.msra.gmra.mxu1 %v6161_v40 }
 0x26a   : > { %3534 = vmatprep.mubr.bf16.mxu1 %v6179_v20  ;;  %v6364_v22 = vpop.f32.mrf.mxu0  ;;  %3432 = vmatmul.mubr.bf16.gmra.mxu0 %v6164_v39 }
 0x26b   : > { %3441 = vmatprep.mubr.bf16.mxu0 %v6171_v61 }
 0x26c   : > { %v6368_v47 = vpop.f32.mrf.mxu0 }
 0x26e   : > { %v6370_v60 = vpop.f32.mrf.mxu0 }
 0x270   : > { %v6372_v57 = vpop.f32.mrf.mxu0 }
 0x271   : > { %3535 = vmatmul.mubr.bf16.gmra.mxu1 %v6181_v13 }
 0x272   : > { %3544 = vmatprep.mubr.bf16.mxu1 %v6199_v6  ;;  %v6376_v63 = vpop.f32.mrf.mxu0  ;;  %3442 = vmatmul.mubr.bf16.gmra.mxu0 %v6184_v53 }
 0x273   : > { %3451 = vmatprep.mubr.bf16.mxu0 %v6191_v52 }
 0x274   : > { %v6380_v40 = vpop.f32.mrf.mxu0 }
 0x276   : > { %v6382_v39 = vpop.f32.mrf.mxu0 }
 0x278   : > { %v6384_v61 = vpop.f32.mrf.mxu0 }
 0x279   : > { %3545 = vmatmul.mubr.bf16.gmra.mxu1 %v6201_v26 }
 0x27a   : > { %3554 = vmatprep.mubr.bf16.mxu1 %v6219_v41  ;;  %v6388_v20 = vpop.f32.mrf.mxu0  ;;  %3452 = vmatmul.mubr.bf16.gmra.mxu0 %v6204_v55 }
 0x27b   : > { %3461 = vmatprep.mubr.bf16.mxu0 %v6211_v10 }
 0x27c   : > { %v6392_v13 = vpop.f32.mrf.mxu0 }
 0x27e   : > { %v6394_v53 = vpop.f32.mrf.mxu0 }
 0x280   : > { %v6396_v52 = vpop.f32.mrf.mxu0 }
 0x281   : > { %3555 = vmatmul.mubr.bf16.gmra.mxu1 %v6221_v16 }
 0x282   : > { %3564 = vmatprep.mubr.bf16.mxu1 %v6239_v25  ;;  %v6400_v6 = vpop.f32.mrf.mxu0  ;;  %3462 = vmatmul.mubr.bf16.gmra.mxu0 %v6224_v54 }
 0x283   : > { %3471 = vmatprep.mubr.bf16.mxu0 %v6231_v48 }
 0x284   : > { %v6404_v26 = vpop.f32.mrf.mxu0 }
 0x286   : > { %v6406_v55 = vpop.f32.mrf.mxu0 }
 0x288   : > { %v6408_v10 = vpop.f32.mrf.mxu0 }
 0x289   : > { %3565 = vmatmul.mubr.bf16.gmra.mxu1 %v6241_v7 }
 0x28a   : > { %3574 = vmatprep.mubr.bf16.mxu1 %v6255_v58  ;;  %v6412_v41 = vpop.f32.mrf.mxu0  ;;  %3472 = vmatmul.mubr.bf16.gmra.mxu0 %v6244_v45 }
 0x28b   : > { %3481 = vmatprep.mubr.bf16.mxu0 %v6249_v62 }
 0x28c   : > { %v6416_v16 = vpop.f32.mrf.mxu0 }
 0x28e   : > { %v6418_v54 = vpop.f32.mrf.mxu0 }
 0x290   : > { %v6420_v48 = vpop.f32.mrf.mxu0 }
 0x291   : > { %3575 = vmatmul.mubr.bf16.gmra.mxu1 %v6257_v46 }
 0x292   : > { %3584 = vmatprep.mubr.bf16.mxu1 %v6265_v32  ;;  %v6424_v25 = vpop.f32.mrf.mxu0  ;;  %3482 = vmatmul.mubr.bf16.gmra.mxu0 %v6260_v42 }
 0x294   : > { %v6427_v7 = vpop.f32.mrf.mxu0 }
 0x296   : > { %v6429_v58 = vpop.f32.mrf.mxu0 }
 0x298   : > { %v6431_v45 = vpop.f32.mrf.mxu0 }
 0x299   : > { %3585 = vmatmul.mubr.bf16.gmra.mxu1 %v6267_v43 }
 0x29a   : > { %3594 = vmatprep.mubr.bf16.mxu1 %v6273_v14  ;;  %v6435_v62 = vpop.f32.mrf.mxu0 }
 0x29c   : > { %v6437_v15 = vpop.f32.mrf.mxu0 }
 0x29e   : > { %v6439_v46 = vpop.f32.mrf.mxu0 }
 0x2a0   : > { %v6441_v32 = vpop.f32.mrf.mxu0 }
 0x2a1   : > { %3595 = vmatmul.mubr.bf16.gmra.mxu1 %v6275_v59 }
 0x2a2   : > { %3604 = vmatprep.mubr.bf16.mxu1 %v6281_v35  ;;  %v6445_v42 = vpop.f32.mrf.mxu0 }
 0x2a4   : > { %v6447_v31 = vpop.f32.mrf.mxu0 }
 0x2a5   : > { %7169 = vst [vmem:[#allocation28_spill] sm:$0xff] %v6447_v31 }
 0x2a6   : > { %v6449_v43 = vpop.f32.mrf.mxu0 }
 0x2a7   : > { %7170 = vst [vmem:[#allocation15_spill] sm:$0xff] %v6449_v43 }
 0x2a8   : > { %v6451_v14 = vpop.f32.mrf.mxu0 }
 0x2a9   : > { %7171 = vst [vmem:[#allocation31_spill] sm:$0xff] %v6451_v14  ;;  %v3140_v29 = vpop.f32.mrf.mxu1  ;;  %3605 = vmatmul.mubr.bf16.gmra.mxu1 %v6283_v56 }
 0x2aa   : > { %v3141_v21 = vadd.f32 %v3140_v29, %v6335_v38  ;;  %3614 = vmatprep.mubr.bf16.mxu1 %v6289_v4  ;;  %v6456_v59 = vpop.f32.mrf.mxu0  ;;  %v4914_v4 = vld [vmem:[%s5354_s6 + $0x8] sm:$0xff] }
 0x2ab   : > { %v3142_v35 = vpop.f32.mrf.mxu1 }
 0x2ac   : > { %v3685_v12 = vmax.f32 %v3141_v21, 0.0  ;;  %v3143_v33 = vadd.f32 %v3142_v35, %v6339_v17  ;;  %v6459_v24 = vpop.f32.mrf.mxu0 }
 0x2ad   : > { %v3144_v51 = vpop.f32.mrf.mxu1 }
 0x2ae   : > { %v3813_v14 = vadd.f32 %v4913_v0, %v3685_v12  ;;  %v3686_v43 = vmax.f32 %v3143_v33, 0.0  ;;  %v3145_v56 = vadd.f32 %v3144_v51, %v6345_v28  ;;  %v6463_v31 = vpop.f32.mrf.mxu0  ;;  %v4915_v28 = vld [vmem:[%s5354_s6 + $0x20] sm:$0xff] }
 0x2af   : > { %v3146_v38 = vpop.f32.mrf.mxu1 }
 0x2b0   : > { %3941 = vst [vmem:[%s6467_s18] sm:$0xff] %v3813_v14  ;;  %v3814_v17 = vadd.f32 %v4914_v4, %v3686_v43  ;;  %v3689_v29 = vmax.f32 %v3145_v56, 0.0  ;;  %v3147_v21 = vadd.f32 %v3146_v38, %v6348_v11  ;;  %v6472_v35 = vpop.f32.mrf.mxu0  ;;  %v4916_v11 = vld [vmem:[%s5354_s6 + $0x28] sm:$0xff] }
 0x2b1   : > { %v3150_v12 = vpop.f32.mrf.mxu1  ;;  %3615 = vmatmul.mubr.bf16.gmra.mxu1 %v6291_v23 }
 0x2b2   : > { %3942 = vst [vmem:[%s6467_s18 + $0x8] sm:$0xff] %v3814_v17  ;;  %v3817_v33 = vadd.f32 %v4915_v28, %v3689_v29  ;;  %v3690_v51 = vmax.f32 %v3147_v21, 0.0  ;;  %v3151_v14 = vadd.f32 %v3150_v12, %v6352_v49  ;;  %3624 = vmatprep.mubr.bf16.mxu1 %v6297_v36  ;;  %v6479_v0 = vpop.f32.mrf.mxu0  ;;  %v4917_v49 = vld [vmem:[%s5354_s6 + $0x40] sm:$0xff] }
 0x2b3   : > { %v3152_v43 = vpop.f32.mrf.mxu1 }
 0x2b4   : > { %3945 = vst [vmem:[%s6467_s18 + $0x20] sm:$0xff] %v3817_v33  ;;  %v3818_v56 = vadd.f32 %v4916_v11, %v3690_v51  ;;  %v3693_v38 = vmax.f32 %v3151_v14, 0.0  ;;  %v3153_v23 = vadd.f32 %v3152_v43, %v6356_v30  ;;  %v6484_v4 = vpop.f32.mrf.mxu0  ;;  %v4918_v33 = vld [vmem:[%s5354_s6 + $0x48] sm:$0xff] }
 0x2b5   : > { %v3154_v17 = vpop.f32.mrf.mxu1 }
 0x2b6   : > { %3946 = vst [vmem:[%s6467_s18 + $0x28] sm:$0xff] %v3818_v56  ;;  %v3821_v29 = vadd.f32 %v4917_v49, %v3693_v38  ;;  %v3694_v36 = vmax.f32 %v3153_v23, 0.0  ;;  %v3155_v21 = vadd.f32 %v3154_v17, %v6358_v18  ;;  %v6489_v12 = vpop.f32.mrf.mxu0  ;;  %v4919_v18 = vld [vmem:[%s5354_s6 + $0x60] sm:$0xff] }
 0x2b7   : > { %v3156_v28 = vpop.f32.mrf.mxu1 }
 0x2b8   : > { %3949 = vst [vmem:[%s6467_s18 + $0x40] sm:$0xff] %v3821_v29  ;;  %v3822_v51 = vadd.f32 %v4918_v33, %v3694_v36  ;;  %v3697_v30 = vmax.f32 %v3155_v21, 0.0  ;;  %v3157_v14 = vadd.f32 %v3156_v28, %v6360_v1  ;;  %v6494_v43 = vpop.f32.mrf.mxu0  ;;  %v4920_v1 = vld [vmem:[%s5354_s6 + $0x68] sm:$0xff] }
 0x2b9   : > { %v3160_v11 = vpop.f32.mrf.mxu1  ;;  %3625 = vmatmul.mubr.bf16.gmra.mxu1 %v6299_v8 }
 0x2ba   : > { %3950 = vst [vmem:[%s6467_s18 + $0x48] sm:$0xff] %v3822_v51  ;;  %v3825_v56 = vadd.f32 %v4919_v18, %v3697_v30  ;;  %v3698_v38 = vmax.f32 %v3157_v14, 0.0  ;;  %v3161_v23 = vadd.f32 %v3160_v11, %v6364_v22  ;;  %3634 = vmatprep.mubr.bf16.mxu1 %v6305_v5  ;;  %v6501_v17 = vpop.f32.mrf.mxu0  ;;  %v4921_v22 = vld [vmem:[%s5354_s6 + $0x80] sm:$0xff]  ;;  %v4922_v11 = vld [vmem:[%s5354_s6 + $0x88] sm:$0xff] }
 0x2bb   : > { %v3162_v49 = vpop.f32.mrf.mxu1 }
 0x2bc   : > { %3953 = vst [vmem:[%s6467_s18 + $0x60] sm:$0xff] %v3825_v56  ;;  %v3826_v29 = vadd.f32 %v4920_v1, %v3698_v38  ;;  %v3701_v36 = vmax.f32 %v3161_v23, 0.0  ;;  %v3163_v8 = vadd.f32 %v3162_v49, %v6368_v47  ;;  %v6506_v21 = vpop.f32.mrf.mxu0 }
 0x2bd   : > { %v3164_v28 = vpop.f32.mrf.mxu1 }
 0x2be   : > { %3954 = vst [vmem:[%s6467_s18 + $0x68] sm:$0xff] %v3826_v29  ;;  %v3829_v33 = vadd.f32 %v4921_v22, %v3701_v36  ;;  %v3702_v5 = vmax.f32 %v3163_v8, 0.0  ;;  %v3165_v51 = vadd.f32 %v3164_v28, %v6370_v60  ;;  %v6511_v30 = vpop.f32.mrf.mxu0  ;;  %v4923_v60 = vld [vmem:[%s5354_s6 + $0xa0] sm:$0xff] }
 0x2bf   : > { %v3166_v14 = vpop.f32.mrf.mxu1 }
 0x2c0   : > { %3957 = vst [vmem:[%s6467_s18 + $0x80] sm:$0xff] %v3829_v33  ;;  %v3830_v18 = vadd.f32 %v4922_v11, %v3702_v5  ;;  %v3705_v47 = vmax.f32 %v3165_v51, 0.0  ;;  %v3167_v56 = vadd.f32 %v3166_v14, %v6372_v57  ;;  %v6516_v38 = vpop.f32.mrf.mxu0  ;;  %v4924_v57 = vld [vmem:[%s5354_s6 + $0xa8] sm:$0xff] }
 0x2c1   : > { %v3170_v23 = vpop.f32.mrf.mxu1  ;;  %3635 = vmatmul.mubr.bf16.gmra.mxu1 %v6307_v3 }
 0x2c2   : > { %3958 = vst [vmem:[%s6467_s18 + $0x88] sm:$0xff] %v3830_v18  ;;  %v3833_v49 = vadd.f32 %v4923_v60, %v3705_v47  ;;  %v3706_v1 = vmax.f32 %v3167_v56, 0.0  ;;  %v3171_v29 = vadd.f32 %v3170_v23, %v6376_v63  ;;  %3644 = vmatprep.mubr.bf16.mxu1 %v6313_v50  ;;  %v6523_v36 = vpop.f32.mrf.mxu0  ;;  %v4925_v63 = vld [vmem:[%s5354_s6 + $0xc0] sm:$0xff]  ;;  %v4926_v47 = vld [vmem:[%s5354_s6 + $0xc8] sm:$0xff] }
 0x2c3   : > { %v3172_v8 = vpop.f32.mrf.mxu1 }
 0x2c4   : > { %3961 = vst [vmem:[%s6467_s18 + $0xa0] sm:$0xff] %v3833_v49  ;;  %v3834_v28 = vadd.f32 %v4924_v57, %v3706_v1  ;;  %v3709_v22 = vmax.f32 %v3171_v29, 0.0  ;;  %v3173_v3 = vadd.f32 %v3172_v8, %v6380_v40  ;;  %v6528_v33 = vpop.f32.mrf.mxu0 }
 0x2c5   : > { %v3174_v5 = vpop.f32.mrf.mxu1 }
 0x2c6   : > { %3962 = vst [vmem:[%s6467_s18 + $0xa8] sm:$0xff] %v3834_v28  ;;  %v3837_v51 = vadd.f32 %v4925_v63, %v3709_v22  ;;  %v3710_v50 = vmax.f32 %v3173_v3, 0.0  ;;  %v3175_v14 = vadd.f32 %v3174_v5, %v6382_v39  ;;  %v6533_v11 = vpop.f32.mrf.mxu0  ;;  %v4927_v39 = vld [vmem:[%s5354_s6 + $0xe0] sm:$0xff] }
 0x2c7   : > { %v3176_v18 = vpop.f32.mrf.mxu1 }
 0x2c8   : > { %3965 = vst [vmem:[%s6467_s18 + $0xc0] sm:$0xff] %v3837_v51  ;;  %v3838_v56 = vadd.f32 %v4926_v47, %v3710_v50  ;;  %v3713_v40 = vmax.f32 %v3175_v14, 0.0  ;;  %v3177_v23 = vadd.f32 %v3176_v18, %v6384_v61  ;;  %v6538_v60 = vpop.f32.mrf.mxu0  ;;  %v4928_v61 = vld [vmem:[%s5354_s6 + $0xe8] sm:$0xff] }
 0x2c9   : > { %v3180_v49 = vpop.f32.mrf.mxu1  ;;  %3645 = vmatmul.mubr.bf16.gmra.mxu1 %v6315_v37  ;;  %v4930_v47 = vld [vmem:[%s5354_s6 + $0x108] sm:$0xff] }
 0x2ca   : > { %3966 = vst [vmem:[%s6467_s18 + $0xc8] sm:$0xff] %v3838_v56  ;;  %v3841_v1 = vadd.f32 %v4927_v39, %v3713_v40  ;;  %v3714_v29 = vmax.f32 %v3177_v23, 0.0  ;;  %v3181_v8 = vadd.f32 %v3180_v49, %v6388_v20  ;;  %3654 = vmatprep.mubr.bf16.mxu1 %v6321_v2  ;;  %v6545_v57 = vpop.f32.mrf.mxu0  ;;  %v4929_v20 = vld [vmem:[%s5354_s6 + $0x100] sm:$0xff] }
 0x2cb   : > { %v3182_v28 = vpop.f32.mrf.mxu1 }
 0x2cc   : > { %3969 = vst [vmem:[%s6467_s18 + $0xe0] sm:$0xff] %v3841_v1  ;;  %v3842_v22 = vadd.f32 %v4928_v61, %v3714_v29  ;;  %v3717_v3 = vmax.f32 %v3181_v8, 0.0  ;;  %v3183_v37 = vadd.f32 %v3182_v28, %v6392_v13  ;;  %v6550_v5 = vpop.f32.mrf.mxu0 }
 0x2cd   : > { %v3184_v63 = vpop.f32.mrf.mxu1 }
 0x2ce   : > { %3970 = vst [vmem:[%s6467_s18 + $0xe8] sm:$0xff] %v3842_v22  ;;  %v3845_v51 = vadd.f32 %v4929_v20, %v3717_v3  ;;  %v3718_v2 = vmax.f32 %v3183_v37, 0.0  ;;  %v3185_v50 = vadd.f32 %v3184_v63, %v6394_v53  ;;  %v6555_v14 = vpop.f32.mrf.mxu0  ;;  %v4931_v53 = vld [vmem:[%s5354_s6 + $0x120] sm:$0xff] }
 0x2cf   : > { %v3186_v18 = vpop.f32.mrf.mxu1 }
 0x2d0   : > { %3973 = vst [vmem:[%s6467_s18 + $0x100] sm:$0xff] %v3845_v51  ;;  %v3846_v56 = vadd.f32 %v4930_v47, %v3718_v2  ;;  %v3721_v13 = vmax.f32 %v3185_v50, 0.0  ;;  %v3187_v40 = vadd.f32 %v3186_v18, %v6396_v52  ;;  %v6560_v23 = vpop.f32.mrf.mxu0  ;;  %v4932_v52 = vld [vmem:[%s5354_s6 + $0x128] sm:$0xff] }
 0x2d1   : > { %v3190_v49 = vpop.f32.mrf.mxu1  ;;  %3655 = vmatmul.mubr.bf16.gmra.mxu1 %v6323_v34  ;;  %v4934_v50 = vld [vmem:[%s5354_s6 + $0x148] sm:$0xff] }
 0x2d2   : > { %3974 = vst [vmem:[%s6467_s18 + $0x108] sm:$0xff] %v3846_v56  ;;  %v3849_v39 = vadd.f32 %v4931_v53, %v3721_v13  ;;  %v3722_v1 = vmax.f32 %v3187_v40, 0.0  ;;  %v3191_v29 = vadd.f32 %v3190_v49, %v6400_v6  ;;  %3664 = vmatprep.mubr.bf16.mxu1 %v6329_v19  ;;  %v6567_v8 = vpop.f32.mrf.mxu0  ;;  %v4933_v6 = vld [vmem:[%s5354_s6 + $0x140] sm:$0xff] }
 0x2d3   : > { %v3192_v28 = vpop.f32.mrf.mxu1 }
 0x2d4   : > { %3977 = vst [vmem:[%s6467_s18 + $0x120] sm:$0xff] %v3849_v39  ;;  %v3850_v61 = vadd.f32 %v4932_v52, %v3722_v1  ;;  %v3725_v22 = vmax.f32 %v3191_v29, 0.0  ;;  %v3193_v34 = vadd.f32 %v3192_v28, %v6404_v26  ;;  %v6572_v3 = vpop.f32.mrf.mxu0 }
 0x2d5   : > { %v3194_v37 = vpop.f32.mrf.mxu1 }
 0x2d6   : > { %3978 = vst [vmem:[%s6467_s18 + $0x128] sm:$0xff] %v3850_v61  ;;  %v3853_v63 = vadd.f32 %v4933_v6, %v3725_v22  ;;  %v3726_v19 = vmax.f32 %v3193_v34, 0.0  ;;  %v3195_v20 = vadd.f32 %v3194_v37, %v6406_v55  ;;  %v6577_v51 = vpop.f32.mrf.mxu0  ;;  %v4935_v55 = vld [vmem:[%s5354_s6 + $0x160] sm:$0xff] }
 0x2d7   : > { %v3196_v2 = vpop.f32.mrf.mxu1 }
 0x2d8   : > { %3981 = vst [vmem:[%s6467_s18 + $0x140] sm:$0xff] %v3853_v63  ;;  %v3854_v18 = vadd.f32 %v4934_v50, %v3726_v19  ;;  %v3729_v26 = vmax.f32 %v3195_v20, 0.0  ;;  %v3197_v47 = vadd.f32 %v3196_v2, %v6408_v10  ;;  %v6582_v56 = vpop.f32.mrf.mxu0  ;;  %v4936_v10 = vld [vmem:[%s5354_s6 + $0x168] sm:$0xff] }
 0x2d9   : > { %v3200_v13 = vpop.f32.mrf.mxu1  ;;  %3665 = vmatmul.mubr.bf16.gmra.mxu1 %v6331_v44  ;;  %v4938_v63 = vld [vmem:[%s5354_s6 + $0x188] sm:$0xff] }
 0x2da   : > { %3982 = vst [vmem:[%s6467_s18 + $0x148] sm:$0xff] %v3854_v18  ;;  %v3857_v40 = vadd.f32 %v4935_v55, %v3729_v26  ;;  %v3730_v49 = vmax.f32 %v3197_v47, 0.0  ;;  %v3201_v53 = vadd.f32 %v3200_v13, %v6412_v41  ;;  %3674 = vmatprep.mubr.bf16.mxu1 %v6341_v27  ;;  %v6589_v1 = vpop.f32.mrf.mxu0  ;;  %v4937_v41 = vld [vmem:[%s5354_s6 + $0x180] sm:$0xff] }
 0x2db   : > { %v3202_v39 = vpop.f32.mrf.mxu1 }
 0x2dc   : > { %3985 = vst [vmem:[%s6467_s18 + $0x160] sm:$0xff] %v3857_v40  ;;  %v3858_v29 = vadd.f32 %v4936_v10, %v3730_v49  ;;  %v3733_v28 = vmax.f32 %v3201_v53, 0.0  ;;  %v3203_v44 = vadd.f32 %v3202_v39, %v6416_v16  ;;  %v6594_v61 = vpop.f32.mrf.mxu0  ;;  %v4941_v10 = vld [vmem:[%s5354_s6 + $0x1c0] sm:$0xff] }
 0x2dd   : > { %v3204_v52 = vpop.f32.mrf.mxu1 }
 0x2de   : > { %3986 = vst [vmem:[%s6467_s18 + $0x168] sm:$0xff] %v3858_v29  ;;  %v3861_v22 = vadd.f32 %v4937_v41, %v3733_v28  ;;  %v3734_v27 = vmax.f32 %v3203_v44, 0.0  ;;  %v3205_v34 = vadd.f32 %v3204_v52, %v6418_v54  ;;  %v6599_v6 = vpop.f32.mrf.mxu0  ;;  %v4939_v54 = vld [vmem:[%s5354_s6 + $0x1a0] sm:$0xff]  ;;  %v4942_v41 = vld [vmem:[%s5354_s6 + $0x1c8] sm:$0xff] }
 0x2df   : > { %v3206_v37 = vpop.f32.mrf.mxu1 }
 0x2e0   : > { %3989 = vst [vmem:[%s6467_s18 + $0x180] sm:$0xff] %v3861_v22  ;;  %v3862_v19 = vadd.f32 %v4938_v63, %v3734_v27  ;;  %v3737_v16 = vmax.f32 %v3205_v34, 0.0  ;;  %v3207_v20 = vadd.f32 %v3206_v37, %v6420_v48  ;;  %v6604_v50 = vpop.f32.mrf.mxu0  ;;  %v4940_v48 = vld [vmem:[%s5354_s6 + $0x1a8] sm:$0xff]  ;;  %v4943_v63 = vld [vmem:[%s5354_s6 + $0x1e0] sm:$0xff] }
 0x2e1   : > { %v3210_v2 = vpop.f32.mrf.mxu1  ;;  %3675 = vmatmul.mubr.bf16.gmra.mxu1 %v6343_v9 }
 0x2e2   : > { %3990 = vst [vmem:[%s6467_s18 + $0x188] sm:$0xff] %v3862_v19  ;;  %v3865_v18 = vadd.f32 %v4939_v54, %v3737_v16  ;;  %v3738_v26 = vmax.f32 %v3207_v20, 0.0  ;;  %v3211_v47 = vadd.f32 %v3210_v2, %v6424_v25  ;;  %v6610_v55 = vpop.f32.mrf.mxu0  ;;  %v4944_v54 = vld [vmem:[%s5354_s6 + $0x1e8] sm:$0xff] }
 0x2e3   : > { %v3212_v13 = vpop.f32.mrf.mxu1 }
 0x2e4   : > { %3993 = vst [vmem:[%s6467_s18 + $0x1a0] sm:$0xff] %v3865_v18  ;;  %v3866_v40 = vadd.f32 %v4940_v48, %v3738_v26  ;;  %v3741_v49 = vmax.f32 %v3211_v47, 0.0  ;;  %v3213_v53 = vadd.f32 %v3212_v13, %v6427_v7  ;;  %v6615_v9 = vpop.f32.mrf.mxu0  ;;  %v4945_v48 = vld [vmem:[%s5354_s6 + $0x200] sm:$0xff] }
 0x2e5   : > { %v3214_v39 = vpop.f32.mrf.mxu1 }
 0x2e6   : > { %3994 = vst [vmem:[%s6467_s18 + $0x1a8] sm:$0xff] %v3866_v40  ;;  %v3869_v29 = vadd.f32 %v4941_v10, %v3741_v49  ;;  %v3742_v25 = vmax.f32 %v3213_v53, 0.0  ;;  %v3215_v28 = vadd.f32 %v3214_v39, %v6429_v58  ;;  %v6620_v52 = vpop.f32.mrf.mxu0  ;;  %v4946_v10 = vld [vmem:[%s5354_s6 + $0x208] sm:$0xff] }
 0x2e7   : > { %v3216_v44 = vpop.f32.mrf.mxu1 }
 0x2e8   : > { %3997 = vst [vmem:[%s6467_s18 + $0x1c0] sm:$0xff] %v3869_v29  ;;  %v3870_v22 = vadd.f32 %v4942_v41, %v3742_v25  ;;  %v3745_v7 = vmax.f32 %v3215_v28, 0.0  ;;  %v3217_v27 = vadd.f32 %v3216_v44, %v6431_v45  ;;  %v6625_v37 = vpop.f32.mrf.mxu0  ;;  %v4947_v41 = vld [vmem:[%s5354_s6 + $0x220] sm:$0xff] }
 0x2e9   : > { %v3220_v34 = vpop.f32.mrf.mxu1 }
 0x2ea   : > { %3998 = vst [vmem:[%s6467_s18 + $0x1c8] sm:$0xff] %v3870_v22  ;;  %v3873_v19 = vadd.f32 %v4943_v63, %v3745_v7  ;;  %v3746_v58 = vmax.f32 %v3217_v27, 0.0  ;;  %v3221_v16 = vadd.f32 %v3220_v34, %v6435_v62  ;;  %v6630_v2 = vpop.f32.mrf.mxu0  ;;  %v4948_v63 = vld [vmem:[%s5354_s6 + $0x228] sm:$0xff] }
 0x2eb   : > { %v3222_v20 = vpop.f32.mrf.mxu1 }
 0x2ec   : > { %4001 = vst [vmem:[%s6467_s18 + $0x1e0] sm:$0xff] %v3873_v19  ;;  %v3874_v18 = vadd.f32 %v4944_v54, %v3746_v58  ;;  %v3749_v45 = vmax.f32 %v3221_v16, 0.0  ;;  %v3223_v26 = vadd.f32 %v3222_v20, %v6437_v15  ;;  %v6635_v13 = vpop.f32.mrf.mxu0  ;;  %v7172_v58 = vld [vmem:[#allocation28_spill] sm:$0xff] }
 0x2ed   : > { %v3224_v47 = vpop.f32.mrf.mxu1 }
 0x2ee   : > { %4002 = vst [vmem:[%s6467_s18 + $0x1e8] sm:$0xff] %v3874_v18  ;;  %v3877_v40 = vadd.f32 %v4945_v48, %v3749_v45  ;;  %v3750_v62 = vmax.f32 %v3223_v26, 0.0  ;;  %v3225_v49 = vadd.f32 %v3224_v47, %v6439_v46  ;;  %v6640_v39 = vpop.f32.mrf.mxu0  ;;  %v4949_v18 = vld [vmem:[%s5354_s6 + $0x240] sm:$0xff]  ;;  %v7173_v26 = vld [vmem:[#allocation15_spill] sm:$0xff] }
 0x2ef   : > { %v3226_v53 = vpop.f32.mrf.mxu1 }
 0x2f0   : > { %4005 = vst [vmem:[%s6467_s18 + $0x200] sm:$0xff] %v3877_v40  ;;  %v3878_v29 = vadd.f32 %v4946_v10, %v3750_v62  ;;  %v3753_v15 = vmax.f32 %v3225_v49, 0.0  ;;  %v3227_v25 = vadd.f32 %v3226_v53, %v6441_v32  ;;  %v6645_v44 = vpop.f32.mrf.mxu0  ;;  %v4950_v62 = vld [vmem:[%s5354_s6 + $0x248] sm:$0xff]  ;;  %v7174_v10 = vld [vmem:[#allocation31_spill] sm:$0xff] }
 0x2f1   : > { %v3230_v28 = vpop.f32.mrf.mxu1 }
 0x2f2   : > { %4006 = vst [vmem:[%s6467_s18 + $0x208] sm:$0xff] %v3878_v29  ;;  %v3881_v22 = vadd.f32 %v4947_v41, %v3753_v15  ;;  %v3754_v46 = vmax.f32 %v3227_v25, 0.0  ;;  %v3231_v7 = vadd.f32 %v3230_v28, %v6445_v42  ;;  %v6650_v34 = vpop.f32.mrf.mxu0  ;;  %v4951_v28 = vld [vmem:[%s5354_s6 + $0x260] sm:$0xff] }
 0x2f3   : > { %v3232_v27 = vpop.f32.mrf.mxu1 }
 0x2f4   : > { %4009 = vst [vmem:[%s6467_s18 + $0x220] sm:$0xff] %v3881_v22  ;;  %v3882_v19 = vadd.f32 %v4948_v63, %v3754_v46  ;;  %v3757_v32 = vmax.f32 %v3231_v7, 0.0  ;;  %v3233_v16 = vadd.f32 %v3232_v27, %v7172_v58  ;;  %v6655_v54 = vpop.f32.mrf.mxu0  ;;  %v4952_v63 = vld [vmem:[%s5354_s6 + $0x268] sm:$0xff] }
 0x2f5   : > { %v3234_v20 = vpop.f32.mrf.mxu1 }
 0x2f6   : > { %4010 = vst [vmem:[%s6467_s18 + $0x228] sm:$0xff] %v3882_v19  ;;  %v3885_v45 = vadd.f32 %v4949_v18, %v3757_v32  ;;  %v3758_v42 = vmax.f32 %v3233_v16, 0.0  ;;  %v3235_v47 = vadd.f32 %v3234_v20, %v7173_v26  ;;  %v6660_v40 = vpop.f32.mrf.mxu0  ;;  %v4953_v18 = vld [vmem:[%s5354_s6 + $0x280] sm:$0xff] }
 0x2f7   : > { %v3236_v48 = vpop.f32.mrf.mxu1 }
 0x2f8   : > { %4013 = vst [vmem:[%s6467_s18 + $0x240] sm:$0xff] %v3885_v45  ;;  %v3886_v49 = vadd.f32 %v4950_v62, %v3758_v42  ;;  %v3761_v53 = vmax.f32 %v3235_v47, 0.0  ;;  %v3237_v29 = vadd.f32 %v3236_v48, %v7174_v10  ;;  %v6665_v25 = vpop.f32.mrf.mxu0  ;;  %v4954_v48 = vld [vmem:[%s5354_s6 + $0x288] sm:$0xff] }
 0x2f9   : > { %v3240_v15 = vpop.f32.mrf.mxu1 }
 0x2fa   : > { %4014 = vst [vmem:[%s6467_s18 + $0x248] sm:$0xff] %v3886_v49  ;;  %v3889_v41 = vadd.f32 %v4951_v28, %v3761_v53  ;;  %v3762_v22 = vmax.f32 %v3237_v29, 0.0  ;;  %v3241_v46 = vadd.f32 %v3240_v15, %v6456_v59  ;;  %v6670_v27 = vpop.f32.mrf.mxu0  ;;  %v4955_v29 = vld [vmem:[%s5354_s6 + $0x2a0] sm:$0xff] }
 0x2fb   : > { %v3242_v7 = vpop.f32.mrf.mxu1 }
 0x2fc   : > { %4017 = vst [vmem:[%s6467_s18 + $0x260] sm:$0xff] %v3889_v41  ;;  %v3890_v19 = vadd.f32 %v4952_v63, %v3762_v22  ;;  %v3765_v32 = vmax.f32 %v3241_v46, 0.0  ;;  %v3243_v58 = vadd.f32 %v3242_v7, %v6459_v24  ;;  %v6675_v20 = vpop.f32.mrf.mxu0  ;;  %v4956_v46 = vld [vmem:[%s5354_s6 + $0x2a8] sm:$0xff] }
 0x2fd   : > { %v3244_v16 = vpop.f32.mrf.mxu1 }
 0x2fe   : > { %4018 = vst [vmem:[%s6467_s18 + $0x268] sm:$0xff] %v3890_v19  ;;  %v3893_v45 = vadd.f32 %v4953_v18, %v3765_v32  ;;  %v3766_v59 = vmax.f32 %v3243_v58, 0.0  ;;  %v3245_v42 = vadd.f32 %v3244_v16, %v6463_v31  ;;  %v6680_v47 = vpop.f32.mrf.mxu0  ;;  %v4957_v58 = vld [vmem:[%s5354_s6 + $0x2c0] sm:$0xff] }
 0x2ff   : > { %v3246_v26 = vpop.f32.mrf.mxu1 }
 0x300   : > { %4021 = vst [vmem:[%s6467_s18 + $0x280] sm:$0xff] %v3893_v45  ;;  %v3894_v62 = vadd.f32 %v4954_v48, %v3766_v59  ;;  %v3769_v24 = vmax.f32 %v3245_v42, 0.0  ;;  %v3247_v49 = vadd.f32 %v3246_v26, %v6472_v35  ;;  %v6685_v10 = vpop.f32.mrf.mxu0  ;;  %v4958_v42 = vld [vmem:[%s5354_s6 + $0x2c8] sm:$0xff] }
 0x301   : > { %v3250_v53 = vpop.f32.mrf.mxu1 }
 0x302   : > { %4022 = vst [vmem:[%s6467_s18 + $0x288] sm:$0xff] %v3894_v62  ;;  %v3897_v15 = vadd.f32 %v4955_v29, %v3769_v24  ;;  %v3770_v31 = vmax.f32 %v3247_v49, 0.0  ;;  %v3251_v28 = vadd.f32 %v3250_v53, %v6479_v0  ;;  %v6690_v22 = vpop.f32.mrf.mxu0  ;;  %v4959_v49 = vld [vmem:[%s5354_s6 + $0x2e0] sm:$0xff] }
 0x303   : > { %v3252_v41 = vpop.f32.mrf.mxu1 }
 0x304   : > { %4025 = vst [vmem:[%s6467_s18 + $0x2a0] sm:$0xff] %v3897_v15  ;;  %v3898_v7 = vadd.f32 %v4956_v46, %v3770_v31  ;;  %v3773_v35 = vmax.f32 %v3251_v28, 0.0  ;;  %v3253_v63 = vadd.f32 %v3252_v41, %v6484_v4  ;;  %v6695_v32 = vpop.f32.mrf.mxu0  ;;  %v4960_v28 = vld [vmem:[%s5354_s6 + $0x2e8] sm:$0xff] }
 0x305   : > { %v3254_v19 = vpop.f32.mrf.mxu1 }
 0x306   : > { %4026 = vst [vmem:[%s6467_s18 + $0x2a8] sm:$0xff] %v3898_v7  ;;  %v3901_v16 = vadd.f32 %v4957_v58, %v3773_v35  ;;  %v3774_v0 = vmax.f32 %v3253_v63, 0.0  ;;  %v3255_v18 = vadd.f32 %v3254_v19, %v6489_v12  ;;  %v6700_v59 = vpop.f32.mrf.mxu0  ;;  %v4961_v35 = vld [vmem:[%s5354_s6 + $0x300] sm:$0xff] }
 0x307   : > { %v3256_v45 = vpop.f32.mrf.mxu1 }
 0x308   : > { %4029 = vst [vmem:[%s6467_s18 + $0x2c0] sm:$0xff] %v3901_v16  ;;  %v3902_v26 = vadd.f32 %v4958_v42, %v3774_v0  ;;  %v3777_v4 = vmax.f32 %v3255_v18, 0.0  ;;  %v3257_v48 = vadd.f32 %v3256_v45, %v6494_v43  ;;  %v6705_v24 = vpop.f32.mrf.mxu0  ;;  %v4962_v0 = vld [vmem:[%s5354_s6 + $0x308] sm:$0xff] }
 0x309   : > { %v3260_v62 = vpop.f32.mrf.mxu1 }
 0x30a   : > { %4030 = vst [vmem:[%s6467_s18 + $0x2c8] sm:$0xff] %v3902_v26  ;;  %v3905_v53 = vadd.f32 %v4959_v49, %v3777_v4  ;;  %v3778_v12 = vmax.f32 %v3257_v48, 0.0  ;;  %v3261_v29 = vadd.f32 %v3260_v62, %v6501_v17  ;;  %v6710_v31 = vpop.f32.mrf.mxu0  ;;  %v4963_v26 = vld [vmem:[%s5354_s6 + $0x320] sm:$0xff] }
 0x30b   : > { %v3262_v15 = vpop.f32.mrf.mxu1 }
 0x30c   : > { %4033 = vst [vmem:[%s6467_s18 + $0x2e0] sm:$0xff] %v3905_v53  ;;  %v3906_v41 = vadd.f32 %v4960_v28, %v3778_v12  ;;  %v3781_v43 = vmax.f32 %v3261_v29, 0.0  ;;  %v3263_v46 = vadd.f32 %v3262_v15, %v6506_v21  ;;  %v6718_v58 = vpop.f32.mrf.mxu0  ;;  %v4964_v53 = vld [vmem:[%s5354_s6 + $0x328] sm:$0xff]  ;;  %v4965_v28 = vld [vmem:[%s5354_s6 + $0x340] sm:$0xff] }
 0x30d   : > { %v3264_v7 = vpop.f32.mrf.mxu1 }
 0x30e   : > { %4034 = vst [vmem:[%s6467_s18 + $0x2e8] sm:$0xff] %v3906_v41  ;;  %v3909_v63 = vadd.f32 %v4961_v35, %v3781_v43  ;;  %v3782_v19 = vmax.f32 %v3263_v46, 0.0  ;;  %v3265_v17 = vadd.f32 %v3264_v7, %v6511_v30  ;;  %v6726_v62 = vpop.f32.mrf.mxu0  ;;  %v4966_v35 = vld [vmem:[%s5354_s6 + $0x348] sm:$0xff] }
 0x30f   : > { %v3266_v16 = vpop.f32.mrf.mxu1 }
 0x310   : > { %4037 = vst [vmem:[%s6467_s18 + $0x300] sm:$0xff] %v3909_v63  ;;  %v3910_v18 = vadd.f32 %v4962_v0, %v3782_v19  ;;  %v3785_v45 = vmax.f32 %v3265_v17, 0.0  ;;  %v3267_v21 = vadd.f32 %v3266_v16, %v6516_v38  ;;  %v6734_v46 = vpop.f32.mrf.mxu0  ;;  %v4967_v16 = vld [vmem:[%s5354_s6 + $0x360] sm:$0xff] }
 0x311   : > { %v3270_v42 = vpop.f32.mrf.mxu1 }
 0x312   : > { %4038 = vst [vmem:[%s6467_s18 + $0x308] sm:$0xff] %v3910_v18  ;;  %v3913_v4 = vadd.f32 %v4963_v26, %v3785_v45  ;;  %v3786_v48 = vmax.f32 %v3267_v21, 0.0  ;;  %v3271_v30 = vadd.f32 %v3270_v42, %v6523_v36  ;;  %v6742_v45 = vpop.f32.mrf.mxu0  ;;  %v4968_v42 = vld [vmem:[%s5354_s6 + $0x368] sm:$0xff] }
 0x313   : > { %v3272_v49 = vpop.f32.mrf.mxu1 }
 0x314   : > { %4041 = vst [vmem:[%s6467_s18 + $0x320] sm:$0xff] %v3913_v4  ;;  %v3914_v12 = vadd.f32 %v4964_v53, %v3786_v48  ;;  %v3789_v29 = vmax.f32 %v3271_v30, 0.0  ;;  %v3273_v38 = vadd.f32 %v3272_v49, %v6528_v33  ;;  %v4969_v30 = vld [vmem:[%s5354_s6 + $0x380] sm:$0xff] }
 0x315   : > { %v3274_v15 = vpop.f32.mrf.mxu1 }
 0x316   : > { %4042 = vst [vmem:[%s6467_s18 + $0x328] sm:$0xff] %v3914_v12  ;;  %v3917_v41 = vadd.f32 %v4965_v28, %v3789_v29  ;;  %v3790_v43 = vmax.f32 %v3273_v38, 0.0  ;;  %v3275_v36 = vadd.f32 %v3274_v15, %v6533_v11  ;;  %v6750_v12 = vpop.f32.mrf.mxu0  ;;  %v4970_v38 = vld [vmem:[%s5354_s6 + $0x388] sm:$0xff] }
 0x317   : > { %v3276_v7 = vpop.f32.mrf.mxu1 }
 0x318   : > { %4045 = vst [vmem:[%s6467_s18 + $0x340] sm:$0xff] %v3917_v41  ;;  %v3918_v63 = vadd.f32 %v4966_v35, %v3790_v43  ;;  %v3793_v19 = vmax.f32 %v3275_v36, 0.0  ;;  %v3277_v33 = vadd.f32 %v3276_v7, %v6538_v60  ;;  %v4971_v43 = vld [vmem:[%s5354_s6 + $0x3a0] sm:$0xff]  ;;  %v6758_v35 = vpop.f32.mrf.mxu0 }
 0x319   : > { %v3280_v17 = vpop.f32.mrf.mxu1 }
 0x31a   : > { %4046 = vst [vmem:[%s6467_s18 + $0x348] sm:$0xff] %v3918_v63  ;;  %v3921_v0 = vadd.f32 %v4967_v16, %v3793_v19  ;;  %v3794_v18 = vmax.f32 %v3277_v33, 0.0  ;;  %v3281_v11 = vadd.f32 %v3280_v17, %v6545_v57  ;;  %v4972_v19 = vld [vmem:[%s5354_s6 + $0x3a8] sm:$0xff] }
 0x31b   : > { %v3282_v21 = vpop.f32.mrf.mxu1 }
 0x31c   : > { %4049 = vst [vmem:[%s6467_s18 + $0x360] sm:$0xff] %v3921_v0  ;;  %v3922_v26 = vadd.f32 %v4968_v42, %v3794_v18  ;;  %v3797_v4 = vmax.f32 %v3281_v11, 0.0  ;;  %v3283_v60 = vadd.f32 %v3282_v21, %v6550_v5  ;;  %v4973_v0 = vld [vmem:[%s5354_s6 + $0x3c0] sm:$0xff]  ;;  %v6766_v21 = vpop.f32.mrf.mxu0 }
 0x31d   : > { %v3284_v48 = vpop.f32.mrf.mxu1 }
 0x31e   : > { %4050 = vst [vmem:[%s6467_s18 + $0x368] sm:$0xff] %v3922_v26  ;;  %v3925_v49 = vadd.f32 %v4969_v30, %v3797_v4  ;;  %v3798_v53 = vmax.f32 %v3283_v60, 0.0  ;;  %v3285_v57 = vadd.f32 %v3284_v48, %v6555_v14  ;;  %v4974_v26 = vld [vmem:[%s5354_s6 + $0x3c8] sm:$0xff]  ;;  %v4975_v30 = vld [vmem:[%s5354_s6 + $0x3e0] sm:$0xff] }
 0x31f   : > { %v3286_v29 = vpop.f32.mrf.mxu1 }
 0x320   : > { %4053 = vst [vmem:[%s6467_s18 + $0x380] sm:$0xff] %v3925_v49  ;;  %v3926_v15 = vadd.f32 %v4970_v38, %v3798_v53  ;;  %v3801_v28 = vmax.f32 %v3285_v57, 0.0  ;;  %v3287_v5 = vadd.f32 %v3286_v29, %v6560_v23  ;;  %v6774_v57 = vpop.f32.mrf.mxu0  ;;  %v4976_v38 = vld [vmem:[%s5354_s6 + $0x3e8] sm:$0xff] }
 0x321   : > { %v3290_v41 = vpop.f32.mrf.mxu1 }
 0x322   : > { %4054 = vst [vmem:[%s6467_s18 + $0x388] sm:$0xff] %v3926_v15  ;;  %v3929_v36 = vadd.f32 %v4971_v43, %v3801_v28  ;;  %v3802_v7 = vmax.f32 %v3287_v5, 0.0  ;;  %v3291_v14 = vadd.f32 %v3290_v41, %v6567_v8  ;;  %v4977_v41 = vld [vmem:[%s5354_s6 + $0x10] sm:$0xff] }
 0x323   : > { %v3292_v63 = vpop.f32.mrf.mxu1 }
 0x324   : > { %4057 = vst [vmem:[%s6467_s18 + $0x3a0] sm:$0xff] %v3929_v36  ;;  %v3930_v33 = vadd.f32 %v4972_v19, %v3802_v7  ;;  %v3805_v17 = vmax.f32 %v3291_v14, 0.0  ;;  %v3293_v23 = vadd.f32 %v3292_v63, %v6572_v3  ;;  %v6782_v7 = vpop.f32.mrf.mxu0  ;;  %v4978_v63 = vld [vmem:[%s5354_s6 + $0x18] sm:$0xff] }
 0x325   : > { %v3294_v16 = vpop.f32.mrf.mxu1 }
 0x326   : > { %4058 = vst [vmem:[%s6467_s18 + $0x3a8] sm:$0xff] %v3930_v33  ;;  %v3933_v18 = vadd.f32 %v4973_v0, %v3805_v17  ;;  %v3806_v11 = vmax.f32 %v3293_v23, 0.0  ;;  %v3295_v8 = vadd.f32 %v3294_v16, %v6577_v51  ;;  %v4979_v23 = vld [vmem:[%s5354_s6 + $0x30] sm:$0xff] }
 0x327   : > { %v3296_v42 = vpop.f32.mrf.mxu1 }
 0x328   : > { %4061 = vst [vmem:[%s6467_s18 + $0x3c0] sm:$0xff] %v3933_v18  ;;  %v3934_v4 = vadd.f32 %v4974_v26, %v3806_v11  ;;  %v3809_v60 = vmax.f32 %v3295_v8, 0.0  ;;  %v3297_v3 = vadd.f32 %v3296_v42, %v6582_v56  ;;  %v6790_v18 = vpop.f32.mrf.mxu0  ;;  %v4980_v8 = vld [vmem:[%s5354_s6 + $0x38] sm:$0xff] }
 0x329   : > { %v3526_v48 = vpop.f32.mrf.mxu1 }
 0x32a   : > { %4062 = vst [vmem:[%s6467_s18 + $0x3c8] sm:$0xff] %v3934_v4  ;;  %v3937_v49 = vadd.f32 %v4975_v30, %v3809_v60  ;;  %v3810_v53 = vmax.f32 %v3297_v3, 0.0  ;;  %v3527_v51 = vadd.f32 %v3526_v48, %v6589_v1  ;;  %v4981_v60 = vld [vmem:[%s5354_s6 + $0x50] sm:$0xff]  ;;  %v6798_v30 = vpop.f32.mrf.mxu0 }
 0x32b   : > { %v3528_v29 = vpop.f32.mrf.mxu1 }
 0x32c   : > { %4065 = vst [vmem:[%s6467_s18 + $0x3e0] sm:$0xff] %v3937_v49  ;;  %v3938_v15 = vadd.f32 %v4976_v38, %v3810_v53  ;;  %v3687_v28 = vmax.f32 %v3527_v51, 0.0  ;;  %v3529_v56 = vadd.f32 %v3528_v29, %v6594_v61  ;;  %v4982_v53 = vld [vmem:[%s5354_s6 + $0x58] sm:$0xff] }
 0x32d   : > { %v3530_v5 = vpop.f32.mrf.mxu1 }
 0x32e   : > { %4066 = vst [vmem:[%s6467_s18 + $0x3e8] sm:$0xff] %v3938_v15  ;;  %v3815_v43 = vadd.f32 %v4977_v41, %v3687_v28  ;;  %v3688_v36 = vmax.f32 %v3529_v56, 0.0  ;;  %v3531_v1 = vadd.f32 %v3530_v5, %v6599_v6  ;;  %v4983_v15 = vld [vmem:[%s5354_s6 + $0x70] sm:$0xff]  ;;  %v6806_v5 = vpop.f32.mrf.mxu0 }
 0x32f   : > { %v3532_v14 = vpop.f32.mrf.mxu1 }
 0x330   : > { %3943 = vst [vmem:[%s6467_s18 + $0x10] sm:$0xff] %v3815_v43  ;;  %v3816_v19 = vadd.f32 %v4978_v63, %v3688_v36  ;;  %v3691_v33 = vmax.f32 %v3531_v1, 0.0  ;;  %v3533_v61 = vadd.f32 %v3532_v14, %v6604_v50  ;;  %v4984_v43 = vld [vmem:[%s5354_s6 + $0x78] sm:$0xff]  ;;  %v4985_v63 = vld [vmem:[%s5354_s6 + $0x90] sm:$0xff] }
 0x331   : > { %v3536_v17 = vpop.f32.mrf.mxu1 }
 0x332   : > { %3944 = vst [vmem:[%s6467_s18 + $0x18] sm:$0xff] %v3816_v19  ;;  %v3819_v16 = vadd.f32 %v4979_v23, %v3691_v33  ;;  %v3692_v0 = vmax.f32 %v3533_v61, 0.0  ;;  %v3537_v6 = vadd.f32 %v3536_v17, %v6610_v55  ;;  %v6814_v61 = vpop.f32.mrf.mxu0  ;;  %v4986_v23 = vld [vmem:[%s5354_s6 + $0x98] sm:$0xff] }
 0x333   : > { %v3538_v11 = vpop.f32.mrf.mxu1 }
 0x334   : > { %3947 = vst [vmem:[%s6467_s18 + $0x30] sm:$0xff] %v3819_v16  ;;  %v3820_v42 = vadd.f32 %v4980_v8, %v3692_v0  ;;  %v3695_v26 = vmax.f32 %v3537_v6, 0.0  ;;  %v3539_v50 = vadd.f32 %v3538_v11, %v6615_v9  ;;  %v4987_v11 = vld [vmem:[%s5354_s6 + $0xb0] sm:$0xff] }
 0x335   : > { %v3540_v4 = vpop.f32.mrf.mxu1 }
 0x336   : > { %3948 = vst [vmem:[%s6467_s18 + $0x38] sm:$0xff] %v3820_v42  ;;  %v3823_v3 = vadd.f32 %v4981_v60, %v3695_v26  ;;  %v3696_v48 = vmax.f32 %v3539_v50, 0.0  ;;  %v3541_v55 = vadd.f32 %v3540_v4, %v6620_v52  ;;  %v6822_v26 = vpop.f32.mrf.mxu0  ;;  %v4988_v4 = vld [vmem:[%s5354_s6 + $0xb8] sm:$0xff] }
 0x337   : > { %v3542_v49 = vpop.f32.mrf.mxu1 }
 0x338   : > { %3951 = vst [vmem:[%s6467_s18 + $0x50] sm:$0xff] %v3823_v3  ;;  %v3824_v51 = vadd.f32 %v4982_v53, %v3696_v48  ;;  %v3699_v29 = vmax.f32 %v3541_v55, 0.0  ;;  %v3543_v9 = vadd.f32 %v3542_v49, %v6625_v37  ;;  %v4989_v55 = vld [vmem:[%s5354_s6 + $0xd0] sm:$0xff] }
 0x339   : > { %v3546_v38 = vpop.f32.mrf.mxu1 }
 0x33a   : > { %3952 = vst [vmem:[%s6467_s18 + $0x58] sm:$0xff] %v3824_v51  ;;  %v3827_v28 = vadd.f32 %v4983_v15, %v3699_v29  ;;  %v3700_v56 = vmax.f32 %v3543_v9, 0.0  ;;  %v3547_v52 = vadd.f32 %v3546_v38, %v6630_v2  ;;  %v6830_v51 = vpop.f32.mrf.mxu0  ;;  %v4990_v9 = vld [vmem:[%s5354_s6 + $0xd8] sm:$0xff] }
 0x33b   : > { %v3548_v41 = vpop.f32.mrf.mxu1 }
 0x33c   : > { %3955 = vst [vmem:[%s6467_s18 + $0x70] sm:$0xff] %v3827_v28  ;;  %v3828_v36 = vadd.f32 %v4984_v43, %v3700_v56  ;;  %v3703_v1 = vmax.f32 %v3547_v52, 0.0  ;;  %v3549_v37 = vadd.f32 %v3548_v41, %v6635_v13  ;;  %v4991_v56 = vld [vmem:[%s5354_s6 + $0xf0] sm:$0xff]  ;;  %v6838_v43 = vpop.f32.mrf.mxu0 }
 0x33d   : > { %v3550_v14 = vpop.f32.mrf.mxu1 }
 0x33e   : > { %3956 = vst [vmem:[%s6467_s18 + $0x78] sm:$0xff] %v3828_v36  ;;  %v3831_v19 = vadd.f32 %v4985_v63, %v3703_v1  ;;  %v3704_v33 = vmax.f32 %v3549_v37, 0.0  ;;  %v3551_v2 = vadd.f32 %v3550_v14, %v6640_v39  ;;  %v4992_v1 = vld [vmem:[%s5354_s6 + $0xf8] sm:$0xff] }
 0x33f   : > { %v3552_v17 = vpop.f32.mrf.mxu1 }
 0x340   : > { %3959 = vst [vmem:[%s6467_s18 + $0x90] sm:$0xff] %v3831_v19  ;;  %v3832_v16 = vadd.f32 %v4986_v23, %v3704_v33  ;;  %v3707_v0 = vmax.f32 %v3551_v2, 0.0  ;;  %v3553_v13 = vadd.f32 %v3552_v17, %v6645_v44  ;;  %v4993_v19 = vld [vmem:[%s5354_s6 + $0x110] sm:$0xff]  ;;  %v6846_v17 = vpop.f32.mrf.mxu0 }
 0x341   : > { %v3556_v6 = vpop.f32.mrf.mxu1 }
 0x342   : > { %3960 = vst [vmem:[%s6467_s18 + $0x98] sm:$0xff] %v3832_v16  ;;  %v3835_v8 = vadd.f32 %v4987_v11, %v3707_v0  ;;  %v3708_v42 = vmax.f32 %v3553_v13, 0.0  ;;  %v3557_v39 = vadd.f32 %v3556_v6, %v6650_v34  ;;  %v4994_v16 = vld [vmem:[%s5354_s6 + $0x118] sm:$0xff]  ;;  %v4995_v11 = vld [vmem:[%s5354_s6 + $0x130] sm:$0xff] }
 0x343   : > { %v3558_v50 = vpop.f32.mrf.mxu1 }
 0x344   : > { %3963 = vst [vmem:[%s6467_s18 + $0xb0] sm:$0xff] %v3835_v8  ;;  %v3836_v60 = vadd.f32 %v4988_v4, %v3708_v42  ;;  %v3711_v3 = vmax.f32 %v3557_v39, 0.0  ;;  %v3559_v44 = vadd.f32 %v3558_v50, %v6655_v54  ;;  %v6854_v39 = vpop.f32.mrf.mxu0  ;;  %v4996_v4 = vld [vmem:[%s5354_s6 + $0x138] sm:$0xff] }
 0x345   : > { %v3560_v48 = vpop.f32.mrf.mxu1 }
 0x346   : > { %3964 = vst [vmem:[%s6467_s18 + $0xb8] sm:$0xff] %v3836_v60  ;;  %v3839_v49 = vadd.f32 %v4989_v55, %v3711_v3  ;;  %v3712_v53 = vmax.f32 %v3559_v44, 0.0  ;;  %v3561_v34 = vadd.f32 %v3560_v48, %v6660_v40  ;;  %v4997_v48 = vld [vmem:[%s5354_s6 + $0x150] sm:$0xff] }
 0x347   : > { %v3562_v29 = vpop.f32.mrf.mxu1 }
 0x348   : > { %3967 = vst [vmem:[%s6467_s18 + $0xd0] sm:$0xff] %v3839_v49  ;;  %v3840_v38 = vadd.f32 %v4990_v9, %v3712_v53  ;;  %v3715_v15 = vmax.f32 %v3561_v34, 0.0  ;;  %v3563_v54 = vadd.f32 %v3562_v29, %v6665_v25  ;;  %v6862_v53 = vpop.f32.mrf.mxu0  ;;  %v4998_v29 = vld [vmem:[%s5354_s6 + $0x158] sm:$0xff] }
 0x349   : > { %v3566_v28 = vpop.f32.mrf.mxu1 }
 0x34a   : > { %3968 = vst [vmem:[%s6467_s18 + $0xd8] sm:$0xff] %v3840_v38  ;;  %v3843_v52 = vadd.f32 %v4991_v56, %v3715_v15  ;;  %v3716_v41 = vmax.f32 %v3563_v54, 0.0  ;;  %v3567_v40 = vadd.f32 %v3566_v28, %v6670_v27  ;;  %v4999_v54 = vld [vmem:[%s5354_s6 + $0x170] sm:$0xff] }
 0x34b   : > { %v3568_v36 = vpop.f32.mrf.mxu1 }
 0x34c   : > { %3971 = vst [vmem:[%s6467_s18 + $0xf0] sm:$0xff] %v3843_v52  ;;  %v3844_v37 = vadd.f32 %v4992_v1, %v3716_v41  ;;  %v3719_v14 = vmax.f32 %v3567_v40, 0.0  ;;  %v3569_v25 = vadd.f32 %v3568_v36, %v6675_v20  ;;  %v6870_v52 = vpop.f32.mrf.mxu0  ;;  %v5000_v40 = vld [vmem:[%s5354_s6 + $0x178] sm:$0xff] }
 0x34d   : > { %v3570_v63 = vpop.f32.mrf.mxu1 }
 0x34e   : > { %3972 = vst [vmem:[%s6467_s18 + $0xf8] sm:$0xff] %v3844_v37  ;;  %v3847_v33 = vadd.f32 %v4993_v19, %v3719_v14  ;;  %v3720_v2 = vmax.f32 %v3569_v25, 0.0  ;;  %v3571_v27 = vadd.f32 %v3570_v63, %v6680_v47  ;;  %v5001_v14 = vld [vmem:[%s5354_s6 + $0x190] sm:$0xff]  ;;  %v6878_v19 = vpop.f32.mrf.mxu0 }
 0x34f   : > { %v3572_v23 = vpop.f32.mrf.mxu1 }
 0x350   : > { %3975 = vst [vmem:[%s6467_s18 + $0x110] sm:$0xff] %v3847_v33  ;;  %v3848_v0 = vadd.f32 %v4994_v16, %v3720_v2  ;;  %v3723_v13 = vmax.f32 %v3571_v27, 0.0  ;;  %v3573_v20 = vadd.f32 %v3572_v23, %v6685_v10  ;;  %v5002_v2 = vld [vmem:[%s5354_s6 + $0x198] sm:$0xff] }
 0x351   : > { %v3576_v6 = vpop.f32.mrf.mxu1 }
 0x352   : > { %3976 = vst [vmem:[%s6467_s18 + $0x118] sm:$0xff] %v3848_v0  ;;  %v3851_v8 = vadd.f32 %v4995_v11, %v3723_v13  ;;  %v3724_v42 = vmax.f32 %v3573_v20, 0.0  ;;  %v3577_v47 = vadd.f32 %v3576_v6, %v6690_v22  ;;  %v5003_v0 = vld [vmem:[%s5354_s6 + $0x1b0] sm:$0xff]  ;;  %v6886_v6 = vpop.f32.mrf.mxu0 }
 0x353   : > { %v3578_v50 = vpop.f32.mrf.mxu1 }
 0x354   : > { %3979 = vst [vmem:[%s6467_s18 + $0x130] sm:$0xff] %v3851_v8  ;;  %v3852_v60 = vadd.f32 %v4996_v4, %v3724_v42  ;;  %v3727_v3 = vmax.f32 %v3577_v47, 0.0  ;;  %v3579_v10 = vadd.f32 %v3578_v50, %v6695_v32  ;;  %v5004_v8 = vld [vmem:[%s5354_s6 + $0x1b8] sm:$0xff]  ;;  %v5005_v4 = vld [vmem:[%s5354_s6 + $0x1d0] sm:$0xff] }
 0x355   : > { %v3580_v44 = vpop.f32.mrf.mxu1 }
 0x356   : > { %3980 = vst [vmem:[%s6467_s18 + $0x138] sm:$0xff] %v3852_v60  ;;  %v3855_v55 = vadd.f32 %v4997_v48, %v3727_v3  ;;  %v3728_v49 = vmax.f32 %v3579_v10, 0.0  ;;  %v3581_v22 = vadd.f32 %v3580_v44, %v6700_v59  ;;  %v6894_v10 = vpop.f32.mrf.mxu0  ;;  %v5006_v48 = vld [vmem:[%s5354_s6 + $0x1d8] sm:$0xff] }
 0x357   : > { %v3582_v34 = vpop.f32.mrf.mxu1 }
 0x358   : > { %3983 = vst [vmem:[%s6467_s18 + $0x150] sm:$0xff] %v3855_v55  ;;  %v3856_v9 = vadd.f32 %v4998_v29, %v3728_v49  ;;  %v3731_v38 = vmax.f32 %v3581_v22, 0.0  ;;  %v3583_v32 = vadd.f32 %v3582_v34, %v6705_v24  ;;  %v5007_v34 = vld [vmem:[%s5354_s6 + $0x1f0] sm:$0xff] }
 0x359   : > { %v3586_v15 = vpop.f32.mrf.mxu1 }
 0x35a   : > { %3984 = vst [vmem:[%s6467_s18 + $0x158] sm:$0xff] %v3856_v9  ;;  %v3859_v28 = vadd.f32 %v4999_v54, %v3731_v38  ;;  %v3732_v56 = vmax.f32 %v3583_v32, 0.0  ;;  %v3587_v59 = vadd.f32 %v3586_v15, %v6710_v31  ;;  %v6902_v38 = vpop.f32.mrf.mxu0  ;;  %v5008_v15 = vld [vmem:[%s5354_s6 + $0x1f8] sm:$0xff] }
 0x35b   : > { %v3588_v41 = vpop.f32.mrf.mxu1 }
 0x35c   : > { %3987 = vst [vmem:[%s6467_s18 + $0x170] sm:$0xff] %v3859_v28  ;;  %v3860_v36 = vadd.f32 %v5000_v40, %v3732_v56  ;;  %v3735_v1 = vmax.f32 %v3587_v59, 0.0  ;;  %v3589_v24 = vadd.f32 %v3588_v41, %v6718_v58  ;;  %v5009_v59 = vld [vmem:[%s5354_s6 + $0x210] sm:$0xff] }
 0x35d   : > { %v3590_v37 = vpop.f32.mrf.mxu1 }
 0x35e   : > { %3988 = vst [vmem:[%s6467_s18 + $0x178] sm:$0xff] %v3860_v36  ;;  %v3863_v25 = vadd.f32 %v5001_v14, %v3735_v1  ;;  %v3736_v63 = vmax.f32 %v3589_v24, 0.0  ;;  %v3591_v31 = vadd.f32 %v3590_v37, %v6726_v62  ;;  %v6910_v36 = vpop.f32.mrf.mxu0  ;;  %v5010_v24 = vld [vmem:[%s5354_s6 + $0x218] sm:$0xff] }
 0x35f   : > { %v3592_v33 = vpop.f32.mrf.mxu1 }
 0x360   : > { %3991 = vst [vmem:[%s6467_s18 + $0x190] sm:$0xff] %v3863_v25  ;;  %v3864_v27 = vadd.f32 %v5002_v2, %v3736_v63  ;;  %v3739_v23 = vmax.f32 %v3591_v31, 0.0  ;;  %v3593_v58 = vadd.f32 %v3592_v33, %v6734_v46  ;;  %v5011_v63 = vld [vmem:[%s5354_s6 + $0x230] sm:$0xff]  ;;  %v6918_v2 = vpop.f32.mrf.mxu0 }
 0x361   : > { %v3596_v16 = vpop.f32.mrf.mxu1 }
 0x362   : > { %3992 = vst [vmem:[%s6467_s18 + $0x198] sm:$0xff] %v3864_v27  ;;  %v3867_v13 = vadd.f32 %v5003_v0, %v3739_v23  ;;  %v3740_v20 = vmax.f32 %v3593_v58, 0.0  ;;  %v3597_v62 = vadd.f32 %v3596_v16, %v6742_v45  ;;  %v5012_v23 = vld [vmem:[%s5354_s6 + $0x238] sm:$0xff] }
 0x363   : > { %v3598_v11 = vpop.f32.mrf.mxu1 }
 0x364   : > { %3995 = vst [vmem:[%s6467_s18 + $0x1b0] sm:$0xff] %v3867_v13  ;;  %v3868_v42 = vadd.f32 %v5004_v8, %v3740_v20  ;;  %v3743_v47 = vmax.f32 %v3597_v62, 0.0  ;;  %v3599_v46 = vadd.f32 %v3598_v11, %v6750_v12  ;;  %v5013_v13 = vld [vmem:[%s5354_s6 + $0x250] sm:$0xff]  ;;  %v6926_v11 = vpop.f32.mrf.mxu0 }
 0x365   : > { %v3600_v50 = vpop.f32.mrf.mxu1 }
 0x366   : > { %3996 = vst [vmem:[%s6467_s18 + $0x1b8] sm:$0xff] %v3868_v42  ;;  %v3871_v60 = vadd.f32 %v5005_v4, %v3743_v47  ;;  %v3744_v3 = vmax.f32 %v3599_v46, 0.0  ;;  %v3601_v45 = vadd.f32 %v3600_v50, %v6758_v35  ;;  %v5014_v42 = vld [vmem:[%s5354_s6 + $0x258] sm:$0xff]  ;;  %v5015_v4 = vld [vmem:[%s5354_s6 + $0x270] sm:$0xff] }
 0x367   : > { %v3602_v44 = vpop.f32.mrf.mxu1 }
 0x368   : > { %3999 = vst [vmem:[%s6467_s18 + $0x1d0] sm:$0xff] %v3871_v60  ;;  %v3872_v55 = vadd.f32 %v5006_v48, %v3744_v3  ;;  %v3747_v49 = vmax.f32 %v3601_v45, 0.0  ;;  %v3603_v12 = vadd.f32 %v3602_v44, %v6766_v21  ;;  %v6934_v45 = vpop.f32.mrf.mxu0  ;;  %v5016_v48 = vld [vmem:[%s5354_s6 + $0x278] sm:$0xff] }
 0x369   : > { %v3606_v22 = vpop.f32.mrf.mxu1 }
 0x36a   : > { %4000 = vst [vmem:[%s6467_s18 + $0x1d8] sm:$0xff] %v3872_v55  ;;  %v3875_v29 = vadd.f32 %v5007_v34, %v3747_v49  ;;  %v3748_v9 = vmax.f32 %v3603_v12, 0.0  ;;  %v3607_v35 = vadd.f32 %v3606_v22, %v6774_v57  ;;  %v5017_v22 = vld [vmem:[%s5354_s6 + $0x290] sm:$0xff] }
 0x36b   : > { %v3608_v32 = vpop.f32.mrf.mxu1 }
 0x36c   : > { %4003 = vst [vmem:[%s6467_s18 + $0x1f0] sm:$0xff] %v3875_v29  ;;  %v3876_v54 = vadd.f32 %v5008_v15, %v3748_v9  ;;  %v3751_v28 = vmax.f32 %v3607_v35, 0.0  ;;  %v3609_v21 = vadd.f32 %v3608_v32, %v6782_v7  ;;  %v6942_v9 = vpop.f32.mrf.mxu0  ;;  %v5018_v32 = vld [vmem:[%s5354_s6 + $0x298] sm:$0xff] }
 0x36d   : > { %v3610_v56 = vpop.f32.mrf.mxu1 }
 0x36e   : > { %4004 = vst [vmem:[%s6467_s18 + $0x1f8] sm:$0xff] %v3876_v54  ;;  %v3879_v41 = vadd.f32 %v5009_v59, %v3751_v28  ;;  %v3752_v40 = vmax.f32 %v3609_v21, 0.0  ;;  %v3611_v57 = vadd.f32 %v3610_v56, %v6790_v18  ;;  %v5019_v21 = vld [vmem:[%s5354_s6 + $0x2b0] sm:$0xff] }
 0x36f   : > { %v3612_v1 = vpop.f32.mrf.mxu1 }
 0x370   : > { %4007 = vst [vmem:[%s6467_s18 + $0x210] sm:$0xff] %v3879_v41  ;;  %v3880_v37 = vadd.f32 %v5010_v24, %v3752_v40  ;;  %v3755_v14 = vmax.f32 %v3611_v57, 0.0  ;;  %v3613_v7 = vadd.f32 %v3612_v1, %v6798_v30  ;;  %v6950_v41 = vpop.f32.mrf.mxu0  ;;  %v5020_v57 = vld [vmem:[%s5354_s6 + $0x2b8] sm:$0xff] }
 0x371   : > { %v3616_v25 = vpop.f32.mrf.mxu1 }
 0x372   : > { %4008 = vst [vmem:[%s6467_s18 + $0x218] sm:$0xff] %v3880_v37  ;;  %v3883_v31 = vadd.f32 %v5011_v63, %v3755_v14  ;;  %v3756_v33 = vmax.f32 %v3613_v7, 0.0  ;;  %v3617_v18 = vadd.f32 %v3616_v25, %v6806_v5  ;;  %v5021_v14 = vld [vmem:[%s5354_s6 + $0x2d0] sm:$0xff]  ;;  %v3469_v63 = vpop.f32.mrf.mxu0 }
 0x373   : > { %v3618_v27 = vpop.f32.mrf.mxu1 }
 0x374   : > { %4011 = vst [vmem:[%s6467_s18 + $0x230] sm:$0xff] %v3883_v31  ;;  %v3884_v58 = vadd.f32 %v5012_v23, %v3756_v33  ;;  %v3759_v16 = vmax.f32 %v3617_v18, 0.0  ;;  %v3619_v30 = vadd.f32 %v3618_v27, %v6814_v61  ;;  %v5022_v33 = vld [vmem:[%s5354_s6 + $0x2d8] sm:$0xff] }
 0x375   : > { %v3620_v0 = vpop.f32.mrf.mxu1 }
 0x376   : > { %4012 = vst [vmem:[%s6467_s18 + $0x238] sm:$0xff] %v3884_v58  ;;  %v3887_v20 = vadd.f32 %v5013_v13, %v3759_v16  ;;  %v3760_v62 = vmax.f32 %v3619_v30, 0.0  ;;  %v3621_v5 = vadd.f32 %v3620_v0, %v6822_v26  ;;  %v5023_v58 = vld [vmem:[%s5354_s6 + $0x2f0] sm:$0xff] }
 0x377   : > { %v3622_v8 = vpop.f32.mrf.mxu1 }
 0x378   : > { %4015 = vst [vmem:[%s6467_s18 + $0x250] sm:$0xff] %v3887_v20  ;;  %v3888_v47 = vadd.f32 %v5014_v42, %v3760_v62  ;;  %v3763_v46 = vmax.f32 %v3621_v5, 0.0  ;;  %v3623_v61 = vadd.f32 %v3622_v8, %v6830_v51  ;;  %v5024_v20 = vld [vmem:[%s5354_s6 + $0x2f8] sm:$0xff]  ;;  %v5025_v42 = vld [vmem:[%s5354_s6 + $0x310] sm:$0xff] }
 0x379   : > { %v3626_v50 = vpop.f32.mrf.mxu1 }
 0x37a   : > { %4016 = vst [vmem:[%s6467_s18 + $0x258] sm:$0xff] %v3888_v47  ;;  %v3891_v60 = vadd.f32 %v5015_v4, %v3763_v46  ;;  %v3764_v3 = vmax.f32 %v3623_v61, 0.0  ;;  %v3627_v26 = vadd.f32 %v3626_v50, %v6838_v43  ;;  %v5026_v4 = vld [vmem:[%s5354_s6 + $0x318] sm:$0xff] }
 0x37b   : > { %v3628_v44 = vpop.f32.mrf.mxu1 }
 0x37c   : > { %4019 = vst [vmem:[%s6467_s18 + $0x270] sm:$0xff] %v3891_v60  ;;  %v3892_v55 = vadd.f32 %v5016_v48, %v3764_v3  ;;  %v3767_v49 = vmax.f32 %v3627_v26, 0.0  ;;  %v3629_v51 = vadd.f32 %v3628_v44, %v6846_v17  ;;  %v5027_v44 = vld [vmem:[%s5354_s6 + $0x330] sm:$0xff] }
 0x37d   : > { %v3630_v12 = vpop.f32.mrf.mxu1 }
 0x37e   : > { %4020 = vst [vmem:[%s6467_s18 + $0x278] sm:$0xff] %v3892_v55  ;;  %v3895_v34 = vadd.f32 %v5017_v22, %v3767_v49  ;;  %v3768_v29 = vmax.f32 %v3629_v51, 0.0  ;;  %v3631_v43 = vadd.f32 %v3630_v12, %v6854_v39  ;;  %v5028_v12 = vld [vmem:[%s5354_s6 + $0x338] sm:$0xff] }
 0x37f   : > { %v3632_v35 = vpop.f32.mrf.mxu1 }
 0x380   : > { %4023 = vst [vmem:[%s6467_s18 + $0x290] sm:$0xff] %v3895_v34  ;;  %v3896_v15 = vadd.f32 %v5018_v32, %v3768_v29  ;;  %v3771_v54 = vmax.f32 %v3631_v43, 0.0  ;;  %v3633_v17 = vadd.f32 %v3632_v35, %v6862_v53  ;;  %v5029_v43 = vld [vmem:[%s5354_s6 + $0x350] sm:$0xff] }
 0x381   : > { %v3636_v28 = vpop.f32.mrf.mxu1 }
 0x382   : > { %4024 = vst [vmem:[%s6467_s18 + $0x298] sm:$0xff] %v3896_v15  ;;  %v3899_v56 = vadd.f32 %v5019_v21, %v3771_v54  ;;  %v3772_v59 = vmax.f32 %v3633_v17, 0.0  ;;  %v3637_v39 = vadd.f32 %v3636_v28, %v6870_v52  ;;  %v5030_v17 = vld [vmem:[%s5354_s6 + $0x358] sm:$0xff] }
 0x383   : > { %v3638_v40 = vpop.f32.mrf.mxu1 }
 0x384   : > { %4027 = vst [vmem:[%s6467_s18 + $0x2b0] sm:$0xff] %v3899_v56  ;;  %v3900_v1 = vadd.f32 %v5020_v57, %v3772_v59  ;;  %v3775_v24 = vmax.f32 %v3637_v39, 0.0  ;;  %v3639_v53 = vadd.f32 %v3638_v40, %v6878_v19  ;;  %v5031_v59 = vld [vmem:[%s5354_s6 + $0x370] sm:$0xff] }
 0x385   : > { %v3640_v37 = vpop.f32.mrf.mxu1 }
 0x386   : > { %4028 = vst [vmem:[%s6467_s18 + $0x2b8] sm:$0xff] %v3900_v1  ;;  %v3903_v7 = vadd.f32 %v5021_v14, %v3775_v24  ;;  %v3776_v25 = vmax.f32 %v3639_v53, 0.0  ;;  %v3641_v52 = vadd.f32 %v3640_v37, %v6886_v6  ;;  %v3473_v6 = vpop.f32.mrf.mxu0  ;;  %v5032_v24 = vld [vmem:[%s5354_s6 + $0x378] sm:$0xff] }
 0x387   : > { %v3642_v31 = vpop.f32.mrf.mxu1 }
 0x388   : > { %4031 = vst [vmem:[%s6467_s18 + $0x2d0] sm:$0xff] %v3903_v7  ;;  %v3904_v18 = vadd.f32 %v5022_v33, %v3776_v25  ;;  %v3779_v27 = vmax.f32 %v3641_v52, 0.0  ;;  %v3643_v23 = vadd.f32 %v3642_v31, %v6894_v10  ;;  %v5033_v25 = vld [vmem:[%s5354_s6 + $0x390] sm:$0xff] }
 0x389   : > { %v3646_v19 = vpop.f32.mrf.mxu1 }
 0x38a   : > { %4032 = vst [vmem:[%s6467_s18 + $0x2d8] sm:$0xff] %v3904_v18  ;;  %v3907_v16 = vadd.f32 %v5023_v58, %v3779_v27  ;;  %v3780_v30 = vmax.f32 %v3643_v23, 0.0  ;;  %v3647_v0 = vadd.f32 %v3646_v19, %v6902_v38  ;;  %v3475_v38 = vpop.f32.mrf.mxu0  ;;  %v5034_v27 = vld [vmem:[%s5354_s6 + $0x398] sm:$0xff] }
 0x38b   : > { %v3648_v13 = vpop.f32.mrf.mxu1 }
 0x38c   : > { %4035 = vst [vmem:[%s6467_s18 + $0x2f0] sm:$0xff] %v3907_v16  ;;  %v3908_v62 = vadd.f32 %v5024_v20, %v3780_v30  ;;  %v3783_v5 = vmax.f32 %v3647_v0, 0.0  ;;  %v3649_v8 = vadd.f32 %v3648_v13, %v6910_v36  ;;  %v5035_v30 = vld [vmem:[%s5354_s6 + $0x3b0] sm:$0xff] }
 0x38d   : > { %v3650_v10 = vpop.f32.mrf.mxu1 }
 0x38e   : > { %4036 = vst [vmem:[%s6467_s18 + $0x2f8] sm:$0xff] %v3908_v62  ;;  %v3911_v47 = vadd.f32 %v5025_v42, %v3783_v5  ;;  %v3784_v46 = vmax.f32 %v3649_v8, 0.0  ;;  %v3651_v61 = vadd.f32 %v3650_v10, %v6918_v2  ;;  %v3477_v2 = vpop.f32.mrf.mxu0  ;;  %v5036_v5 = vld [vmem:[%s5354_s6 + $0x3b8] sm:$0xff] }
 0x38f   : > { %v3652_v50 = vpop.f32.mrf.mxu1 }
 0x390   : > { %4039 = vst [vmem:[%s6467_s18 + $0x310] sm:$0xff] %v3911_v47  ;;  %v3912_v60 = vadd.f32 %v5026_v4, %v3784_v46  ;;  %v3787_v3 = vmax.f32 %v3651_v61, 0.0  ;;  %v3653_v26 = vadd.f32 %v3652_v50, %v6926_v11  ;;  %v5037_v46 = vld [vmem:[%s5354_s6 + $0x3d0] sm:$0xff] }
 0x391   : > { %v3656_v36 = vpop.f32.mrf.mxu1 }
 0x392   : > { %4040 = vst [vmem:[%s6467_s18 + $0x318] sm:$0xff] %v3912_v60  ;;  %v3915_v48 = vadd.f32 %v5027_v44, %v3787_v3  ;;  %v3788_v55 = vmax.f32 %v3653_v26, 0.0  ;;  %v3657_v49 = vadd.f32 %v3656_v36, %v6934_v45  ;;  %v3479_v45 = vpop.f32.mrf.mxu0  ;;  %v5038_v3 = vld [vmem:[%s5354_s6 + $0x3d8] sm:$0xff] }
 0x393   : > { %v3658_v51 = vpop.f32.mrf.mxu1 }
 0x394   : > { %4043 = vst [vmem:[%s6467_s18 + $0x330] sm:$0xff] %v3915_v48  ;;  %v3916_v22 = vadd.f32 %v5028_v12, %v3788_v55  ;;  %v3791_v34 = vmax.f32 %v3657_v49, 0.0  ;;  %v3659_v29 = vadd.f32 %v3658_v51, %v6942_v9  ;;  %v3483_v1 = vpop.f32.mrf.mxu0  ;;  %v5039_v48 = vld [vmem:[%s5354_s6 + $0x3f0] sm:$0xff] }
 0x395   : > { %v3660_v11 = vpop.f32.mrf.mxu1 }
 0x396   : > { %4044 = vst [vmem:[%s6467_s18 + $0x338] sm:$0xff] %v3916_v22  ;;  %v3919_v35 = vadd.f32 %v5029_v43, %v3791_v34  ;;  %v3792_v32 = vmax.f32 %v3659_v29, 0.0  ;;  %v3661_v15 = vadd.f32 %v3660_v11, %v6950_v41  ;;  %v3485_v33 = vpop.f32.mrf.mxu0 }
 0x397   : > { %v3662_v54 = vpop.f32.mrf.mxu1 }
 0x398   : > { %4047 = vst [vmem:[%s6467_s18 + $0x350] sm:$0xff] %v3919_v35  ;;  %v3920_v28 = vadd.f32 %v5030_v17, %v3792_v32  ;;  %v3795_v21 = vmax.f32 %v3661_v15, 0.0  ;;  %v3663_v56 = vadd.f32 %v3662_v54, %v3469_v63  ;;  %v3487_v20 = vpop.f32.mrf.mxu0 }
 0x399   : > { %v3666_v9 = vpop.f32.mrf.mxu1 }
 0x39a   : > { %4048 = vst [vmem:[%s6467_s18 + $0x358] sm:$0xff] %v3920_v28  ;;  %v3923_v39 = vadd.f32 %v5031_v59, %v3795_v21  ;;  %v3796_v40 = vmax.f32 %v3663_v56, 0.0  ;;  %v3667_v57 = vadd.f32 %v3666_v9, %v3473_v6  ;;  %v3489_v4 = vpop.f32.mrf.mxu0 }
 0x39b   : > { %v3668_v41 = vpop.f32.mrf.mxu1 }
 0x39c   : > { %4051 = vst [vmem:[%s6467_s18 + $0x370] sm:$0xff] %v3923_v39  ;;  %v3924_v53 = vadd.f32 %v5032_v24, %v3796_v40  ;;  %v3799_v37 = vmax.f32 %v3667_v57, 0.0  ;;  %v3669_v14 = vadd.f32 %v3668_v41, %v3475_v38 }
 0x39d   : > { %v3670_v7 = vpop.f32.mrf.mxu1 }
 0x39e   : > { %4052 = vst [vmem:[%s6467_s18 + $0x378] sm:$0xff] %v3924_v53  ;;  %v3927_v52 = vadd.f32 %v5033_v25, %v3799_v37  ;;  %v3800_v63 = vmax.f32 %v3669_v14, 0.0  ;;  %v3671_v31 = vadd.f32 %v3670_v7, %v3477_v2  ;;  %v5040_v2 = vld [vmem:[%s5354_s6 + $0x3f8] sm:$0xff] }
 0x39f   : > { %v3672_v18 = vpop.f32.mrf.mxu1 }
 0x3a0   : > { %4055 = vst [vmem:[%s6467_s18 + $0x390] sm:$0xff] %v3927_v52  ;;  %v3928_v23 = vadd.f32 %v5034_v27, %v3800_v63  ;;  %v3803_v19 = vmax.f32 %v3671_v31, 0.0  ;;  %v3673_v58 = vadd.f32 %v3672_v18, %v3479_v45 }
 0x3a1   : > { %v3676_v16 = vpop.f32.mrf.mxu1 }
 0x3a2   : > { %4056 = vst [vmem:[%s6467_s18 + $0x398] sm:$0xff] %v3928_v23  ;;  %v3931_v0 = vadd.f32 %v5035_v30, %v3803_v19  ;;  %v3804_v6 = vmax.f32 %v3673_v58, 0.0  ;;  %v3677_v13 = vadd.f32 %v3676_v16, %v3483_v1 }
 0x3a3   : > { %v3678_v62 = vpop.f32.mrf.mxu1 }
 0x3a4   : > { %4059 = vst [vmem:[%s6467_s18 + $0x3b0] sm:$0xff] %v3931_v0  ;;  %v3932_v8 = vadd.f32 %v5036_v5, %v3804_v6  ;;  %v3807_v10 = vmax.f32 %v3677_v13, 0.0  ;;  %v3679_v42 = vadd.f32 %v3678_v62, %v3485_v33 }
 0x3a5   : > { %v3680_v47 = vpop.f32.mrf.mxu1 }
 0x3a6   : > { %4060 = vst [vmem:[%s6467_s18 + $0x3b8] sm:$0xff] %v3932_v8  ;;  %v3935_v61 = vadd.f32 %v5037_v46, %v3807_v10  ;;  %v3808_v38 = vmax.f32 %v3679_v42, 0.0  ;;  %v3681_v50 = vadd.f32 %v3680_v47, %v3487_v20 }
 0x3a7   : > { %v3682_v60 = vpop.f32.mrf.mxu1 }
 0x3a8   : > { %4063 = vst [vmem:[%s6467_s18 + $0x3d0] sm:$0xff] %v3935_v61  ;;  %v3936_v26 = vadd.f32 %v5038_v3, %v3808_v38  ;;  %v3811_v36 = vmax.f32 %v3681_v50, 0.0  ;;  %v3683_v44 = vadd.f32 %v3682_v60, %v3489_v4 }
 0x3aa   : > { %4064 = vst [vmem:[%s6467_s18 + $0x3d8] sm:$0xff] %v3936_v26  ;;  %v3939_v55 = vadd.f32 %v5039_v48, %v3811_v36  ;;  %v3812_v49 = vmax.f32 %v3683_v44, 0.0 }
 0x3ac   : > { %4067 = vst [vmem:[%s6467_s18 + $0x3f0] sm:$0xff] %v3939_v55  ;;  %v3940_v51 = vadd.f32 %v5040_v2, %v3812_v49 }
 0x3ae   : > { %4068 = vst [vmem:[%s6467_s18 + $0x3f8] sm:$0xff] %v3940_v51 }
 0x3af   : > { %5134 = shalt.err (!%p5131_p9)
}
 0x3b0   : > { %s5135_s22 = scalar_lea.hbm %s7007_s29, 16384  ;;  %s5139_s26 = scalar_lea.hbm %s7058_s3, 32768 }
 0x3b1   : > { %p5136_p13 = scmp.ne.s32.totalorder %s7007_s29, %s5135_s22  ;;  %p5140_p4 = scmp.lt.s32.totalorder %s7007_s29, %s7058_s3 }
 0x3b2   : > { %p5141_p8 = scmp.lt.s32.totalorder %s5139_s26, %s5135_s22 }
 0x3b3   : > { %p5137_p5 = pnand %p5136_p13, %p7175_p10 }
 0x3b4   : > { %p5142_p3 = por %p5141_p8, %p5140_p4 }
 0x3b5   : > { %p5138_p0 = pneg %p5137_p5 }
 0x3b7   : > { %p5143_p11 = pnand %p5142_p3, %p5138_p0 }
 0x3b9   : > { %5146 = shalt.err (!%p5143_p11)
}
 0x3ba   : > { %s5199_s6 = smov 512   ;;  %s5200_s18 = smov 32  }
 0x3bb   : > { %4466 = dma.vmem_to_hbm [thread:$0]  (%p7175_p10), %s7009_s25, 16384, %s7007_s29, %s4070_s16, %s5199_s6, %s5199_s6, %s5200_s18  }
 0x3bc PF: > { %s4099_s20 = sand.u32 1, %s5177_s12   ;;  %p7176_p1 = scmp.ne.s32.totalorder %s7093_s19, 0 }
 0x3bd   : > { %p7177_p2 = scmp.ge.s32.totalorder %s5189_s15, 2  ;;  %s4100_s27 = scalar_lea.sflag [#allocation4], %s4099_s20 }
 0x3bf   : > { %p4480_p6 = pnand %p7177_p2, %p7176_p1 }
 0x3c1   : > { %p4481_p12 = pneg %p4480_p6 }
 0x3c3   : > { %5172 = dma.done.wait (%p4481_p12), %s4100_s27, 16384  }
 0x3c4   : > { %5174 = vsyncadd (%p4481_p12), %s4100_s27, 4294950912  ;;  %p17_p7 = scmp.ge.s32.totalorder %s5293_s7, 4   ;;  %s7178_s12 = smov %s5181_s13 }
 0x3c5   : > { %s7179_s13 = smov %s5185_s14  ;;  %s7180_s14 = smov %s5309_s11 }
 0x3c6   : > { %s7181_s15 = smov %s5293_s7  ;;  %19 = sbr.rel (!%p17_p7) target bundleno = 6 (0x6), region = 85 }
 0x3cb   :  { %4105 = vsyncpa [#allocation3], 1 }
 0x3cc   :  { %4107 = vsyncpa [#allocation3 + $0x1], 1 }
 0x3cd   :  { %4108 = vsyncpa [#allocation6], 1 }
 0x3ce   :  { %4109 = vsyncpa [#allocation4], 1 }
 0x3cf   :  { %4111 = vsyncpa [#allocation4 + $0x1], 1 }

</bundles_post_ra>
